<compile_context>
chip_gen: v6e
topology: v6e:2x2x1
jax: 0.10.0
libtpu: 0.0.40
codegen_flags: <defaults>
</compile_context>

<pallas_src>
import jax
import jax.numpy as jnp
from jax.experimental import pallas as pl
from jax.experimental.pallas import tpu as pltpu


# ------------------------------------------------------------------ kernel ---

def tlstm_encoder_kernel(x_ref, t_ref,
                         w1_ref, b1_ref, wd1_ref, bd1_ref,
                         w2_ref, b2_ref, wd2_ref, bd2_ref,
                         repr_ref, dc_ref):
    """Runs the full two-layer TLSTM recurrence in one kernel invocation.

    x_ref : (seq, b, in_dim) f32     t_ref : (seq, b, 1) f32
    w1    : (in_dim+h1, 4*h1) bf16   [W_all1 ; U_all1] (already transposed)
    b1    : (1, 4*h1) f32            ball1 + uball1
    wd1   : (h1, h1) bf16            bd1 : (1, h1) f32
    w2    : (h1+h2, 4*h2) bf16       [W_out1^T @ W_all2^T ; U_all2^T]
    b2    : (1, 4*h2) f32            bout1 @ W_all2^T + ball2 + uball2
    wd2   : (h2, h2) bf16            bd2 : (1, h2) f32
    """
    seq, bsz, _ = x_ref.shape
    h1dim = wd1_ref.shape[0]
    h2dim = wd2_ref.shape[0]
    cdt = w1_ref.dtype                       # bf16 MXU-operand dtype

    # Load weights once; hoist bias broadcasts out of the recurrence
    # (JAX does not CSE broadcast_in_dim).
    w1, wd1 = w1_ref[...], wd1_ref[...]
    w2, wd2 = w2_ref[...], wd2_ref[...]
    b1 = jnp.broadcast_to(b1_ref[...], (bsz, 4 * h1dim))
    bd1 = jnp.broadcast_to(bd1_ref[...], (bsz, h1dim))
    b2 = jnp.broadcast_to(b2_ref[...], (bsz, 4 * h2dim))
    bd2 = jnp.broadcast_to(bd2_ref[...], (bsz, h2dim))

    def tlstm_unit(h, c, xin, t, w, bias, wd, bd, hid):
        # Exact TLSTM_Unit math; bf16 MXU operands, f32 accumulation/state.
        c_st = jax.nn.sigmoid(
            jnp.dot(c.astype(cdt), wd, preferred_element_type=jnp.float32) + bd)
        c_adj = c - c_st + c_st * t
        xh = jnp.concatenate([xin, h], axis=1).astype(cdt)     # fused [x|h] path
        outs = jnp.dot(xh, w, preferred_element_type=jnp.float32) + bias
        f = jax.nn.sigmoid(outs[:, 0 * hid:1 * hid])
        i = jax.nn.sigmoid(outs[:, 1 * hid:2 * hid])
        o = jax.nn.sigmoid(outs[:, 2 * hid:3 * hid])
        g = jnp.tanh(outs[:, 3 * hid:4 * hid])
        c_t = f * c_adj + i * g
        return o * jnp.tanh(c_t), c_t

    h1 = jnp.zeros((bsz, h1dim), jnp.float32)
    c1 = jnp.zeros((bsz, h1dim), jnp.float32)
    h2 = jnp.zeros((bsz, h2dim), jnp.float32)
    c2 = jnp.zeros((bsz, h2dim), jnp.float32)

    # Fully-unrolled in-kernel recurrence (seq is small & static): this is the
    # unroll=True form of the reviewer-requested fori_loop fusion and gives
    # the LLO scheduler full visibility.  For long sequences, switch to
    # lax.fori_loop / a seq-chunked grid with VMEM-carried state.
    for s in range(seq):
        x = x_ref[s]                          # (b, in_dim)
        t = t_ref[s]                          # (b, 1)
        h1, c1 = tlstm_unit(h1, c1, x, t, w1, b1, wd1, bd1, h1dim)
        # W_out1 is folded into w2/b2, so layer 2 consumes h1 directly.
        h2, c2 = tlstm_unit(h2, c2, h1, t, w2, b2, wd2, bd2, h2dim)

    # Write the outputs exactly once, after the recurrence.
    repr_ref[...] = h2
    dc_ref[...] = c2


# --------------------------------------------------------------- wrapper -----

def _prepare_weights(params, compute_dtype=jnp.bfloat16):
    """Host-side weight fusion / folding (exact algebra, done once)."""
    f32 = jnp.float32
    wall1 = jnp.asarray(params["wall1"], f32).T          # (in, 4*h1)
    uall1 = jnp.asarray(params["uall1"], f32).T          # (h1, 4*h1)
    w1 = jnp.concatenate([wall1, uall1], axis=0).astype(compute_dtype)
    b1 = (jnp.asarray(params["ball1"], f32)
          + jnp.asarray(params["uball1"], f32)).reshape(1, -1)
    wd1 = jnp.asarray(params["wd1"], f32).T.astype(compute_dtype)
    bd1 = jnp.asarray(params["bd1"], f32).reshape(1, -1)

    wout1 = jnp.asarray(params["wout1"], f32).T          # (h1, out1)
    bout1 = jnp.asarray(params["bout1"], f32)            # (out1,)
    wall2 = jnp.asarray(params["wall2"], f32).T          # (out1, 4*h2)
    uall2 = jnp.asarray(params["uall2"], f32).T          # (h2, 4*h2)
    # Fold the layer-1 output projection into layer-2's x-path gate weights:
    #   (h1 @ wout1 + bout1) @ wall2 + ball2
    # == h1 @ (wout1 @ wall2) + (bout1 @ wall2 + ball2)
    wcomb2 = wout1 @ wall2                                # (h1, 4*h2)
    w2 = jnp.concatenate([wcomb2, uall2], axis=0).astype(compute_dtype)
    b2 = (bout1 @ wall2
          + jnp.asarray(params["ball2"], f32)
          + jnp.asarray(params["uball2"], f32)).reshape(1, -1)
    wd2 = jnp.asarray(params["wd2"], f32).T.astype(compute_dtype)
    bd2 = jnp.asarray(params["bd2"], f32).reshape(1, -1)
    return [w1, b1, wd1, bd1, w2, b2, wd2, bd2]


def tlstm_encoder_forward(x, time_diffs, seq_lens, params,
                          compute_dtype=jnp.bfloat16):
    """x: (b, seq, in_dim); time_diffs: (b, seq); seq_lens unused (as in PyTorch)."""
    del seq_lens  # unused by the reference forward pass
    b, seq, in_dim = x.shape
    enc = params["wd2"].shape[0]

    # seq-major layout so each recurrence step reads a contiguous (b, in) slab
    x_sm = jnp.transpose(x, (1, 0, 2)).astype(jnp.float32)                    # (seq, b, in)
    t_sm = jnp.transpose(time_diffs, (1, 0))[:, :, None].astype(jnp.float32)  # (seq, b, 1)

    weights = _prepare_weights(params, compute_dtype)

    # Full-array blocks: inputs + fused weights are fully VMEM-resident for the
    # single grid step.  (At production hidden sizes, add
    # pipeline_mode=pl.Buffered(1) on the constant-index weight specs and set
    # vmem_limit_bytes for v7x's 64 MiB VMEM; with batch >= 16, add a leading
    # batch-split "parallel" grid axis so v7x's second TensorCore gets work.)
    w_specs = [pl.BlockSpec(w.shape, lambda i: (0, 0)) for w in weights]

    grid_spec = pltpu.PrefetchScalarGridSpec(
        num_scalar_prefetch=0,
        grid=(1,),  # whole recurrence fused into one kernel invocation
        in_specs=[pl.BlockSpec((seq, b, in_dim), lambda i: (0, 0, 0)),
                  pl.BlockSpec((seq, b, 1), lambda i: (0, 0, 0))] + w_specs,
        out_specs=[pl.BlockSpec((b, enc), lambda i: (0, 0)),
                   pl.BlockSpec((b, enc), lambda i: (0, 0))],
    )

    representation, decoder_cs = pl.pallas_call(
        tlstm_encoder_kernel,
        grid_spec=grid_spec,
        out_shape=(jax.ShapeDtypeStruct((b, enc), jnp.float32),
                   jax.ShapeDtypeStruct((b, enc), jnp.float32)),
        compiler_params=pltpu.CompilerParams(dimension_semantics=("arbitrary",)),
    )(x_sm, t_sm, *weights)
    return representation, decoder_cs


# ------------------------------------------------------------ params / ref ---

def init_params(key, in_channels, hidden_dim1, encoded_dim, output_dim1, output_dim2):
    """Deterministic init mirroring nn.Linear default (U[-1/sqrt(fan_in), ...])."""
    def linear(k, out_f, in_f):
        k1, k2 = jax.random.split(k)
        lim = 1.0 / float(in_f) ** 0.5
        w = jax.random.uniform(k1, (out_f, in_f), jnp.float32, -lim, lim)
        b = jax.random.uniform(k2, (out_f,), jnp.float32, -lim, lim)
        return w, b

    ks = jax.random.split(key, 8)
    p = {}
    # layer 1 (TLSTM(in_channels, hidden_dim1, output_dim1))
    p["wall1"], p["ball1"] = linear(ks[0], hidden_dim1 * 4, in_channels)
    p["uall1"], p["uball1"] = linear(ks[1], hidden_dim1 * 4, hidden_dim1)
    p["wd1"], p["bd1"] = linear(ks[2], hidden_dim1, hidden_dim1)
    p["wout1"], p["bout1"] = linear(ks[3], output_dim1, hidden_dim1)
    # layer 2 (TLSTM(output_dim1, encoded_dim, output_dim2))
    p["wall2"], p["ball2"] = linear(ks[4], encoded_dim * 4, output_dim1)
    p["uall2"], p["uball2"] = linear(ks[5], encoded_dim * 4, encoded_dim)
    p["wd2"], p["bd2"] = linear(ks[6], encoded_dim, encoded_dim)
    # output_layer of TLSTM #2 exists in the module but does not affect the
    # encoder's returned (representation, decoder_cs); omitted from the kernel.
    p["wout2"], p["bout2"] = linear(ks[7], output_dim2, encoded_dim)
    return p


def reference_forward(x, time_diffs, params):
    """Pure-JAX float32 replica of the PyTorch forward (unfused, unfolded)."""
    def lin(v, w, b):
        return v @ w.T + b

    def unit(h, c, xi, t, wd, bd, wall, ball, uall, uball, hid):
        c_st = jax.nn.sigmoid(lin(c, wd, bd))
        c = c - c_st + c_st * t
        outs = lin(xi, wall, ball) + lin(h, uall, uball)
        f, i, o, ct = (outs[:, :hid], outs[:, hid:2 * hid],
                       outs[:, 2 * hid:3 * hid], outs[:, 3 * hid:])
        f, i, o, ct = (jax.nn.sigmoid(f), jax.nn.sigmoid(i),
                       jax.nn.sigmoid(o), jnp.tanh(ct))
        c_t = f * c + i * ct
        return o * jnp.tanh(c_t), c_t

    b, seq, _ = x.shape
    hid1, hid2 = params["wd1"].shape[0], params["wd2"].shape[0]
    h1 = jnp.zeros((b, hid1), jnp.float32); c1 = jnp.zeros_like(h1)
    h2 = jnp.zeros((b, hid2), jnp.float32); c2 = jnp.zeros_like(h2)
    for s in range(seq):
        xi = x[:, s, :]
        t = time_diffs[:, s][:, None]
        h1, c1 = unit(h1, c1, xi, t, params["wd1"], params["bd1"],
                      params["wall1"], params["ball1"],
                      params["uall1"], params["uball1"], hid1)
        out1 = lin(h1, params["wout1"], params["bout1"])
        h2, c2 = unit(h2, c2, out1, t, params["wd2"], params["bd2"],
                      params["wall2"], params["ball2"],
                      params["uall2"], params["uball2"], hid2)
    return h2, c2


def mirror_forward(x, time_diffs, params, compute_dtype=jnp.bfloat16):
    """Pure-JAX mirror of the exact kernel math (same folded/fused weights,
    same bf16 MXU-operand cast, f32 accumulation) — tight correctness ref."""
    w1, b1, wd1, bd1, w2, b2, wd2, bd2 = _prepare_weights(params, compute_dtype)
    bsz, seq, _ = x.shape
    h1dim, h2dim = wd1.shape[0], wd2.shape[0]

    def mm(a, w):
        return jnp.dot(a.astype(w.dtype), w, preferred_element_type=jnp.float32)

    def unit(h, c, xin, t, w, bias, wd, bd, hid):
        c_st = jax.nn.sigmoid(mm(c, wd) + bd)
        c_adj = c - c_st + c_st * t
        outs = mm(jnp.concatenate([xin, h], axis=1), w) + bias
        f = jax.nn.sigmoid(outs[:, :hid])
        i = jax.nn.sigmoid(outs[:, hid:2 * hid])
        o = jax.nn.sigmoid(outs[:, 2 * hid:3 * hid])
        g = jnp.tanh(outs[:, 3 * hid:])
        c_t = f * c_adj + i * g
        return o * jnp.tanh(c_t), c_t

    h1 = jnp.zeros((bsz, h1dim), jnp.float32); c1 = jnp.zeros_like(h1)
    h2 = jnp.zeros((bsz, h2dim), jnp.float32); c2 = jnp.zeros_like(h2)
    for s in range(seq):
        xi = x[:, s, :].astype(jnp.float32)
        t = time_diffs[:, s][:, None].astype(jnp.float32)
        h1, c1 = unit(h1, c1, xi, t, w1, b1, wd1, bd1, h1dim)
        h2, c2 = unit(h2, c2, h1, t, w2, b2, wd2, bd2, h2dim)
    return h2, c2


# ------------------------------------------------------------------- main ----

if __name__ == "__main__":
    key = jax.random.PRNGKey(0)
    k_x, k_t, k_p = jax.random.split(key, 3)

    batch, seq = 8, 8
    in_channels, hidden_dim1, encoded_dim = 16, 32, 32
    output_dim1, output_dim2 = 16, 8

    x = jax.random.normal(k_x, (batch, seq, in_channels), jnp.float32)
    time_diffs = jax.random.uniform(k_t, (batch, seq), jnp.float32, 0.0, 2.0)
    seq_lens = jnp.full((batch,), seq, jnp.int32)  # unused by forward (matches PyTorch)

    params = init_params(k_p, in_channels, hidden_dim1, encoded_dim,
                         output_dim1, output_dim2)

    representation, decoder_cs = tlstm_encoder_forward(x, time_diffs, seq_lens, params)
    representation = jax.block_until_ready(representation)
    decoder_cs = jax.block_until_ready(decoder_cs)

    # (1) kernel-logic check: jnp mirror of the exact kernel math (same fused
    #     bf16 weights, f32 accumulation) -- tight tolerance.
    mir_h, mir_c = mirror_forward(x, time_diffs, params)
    if not (jnp.allclose(representation, mir_h, atol=2e-3, rtol=2e-3) and
            jnp.allclose(decoder_cs, mir_c, atol=2e-3, rtol=2e-3)):
        raise AssertionError("Pallas TLSTM kernel mismatch vs precision-matched JAX mirror")

    # (2) semantics check vs the PyTorch-faithful float32 reference; tolerance
    #     covers the bf16 MXU-operand cast applied per the perf review.
    ref_h, ref_c = reference_forward(x, time_diffs, params)
    if not (jnp.allclose(representation, ref_h, atol=5e-2, rtol=5e-2) and
            jnp.allclose(decoder_cs, ref_c, atol=5e-2, rtol=5e-2)):
        raise AssertionError("Pallas TLSTM kernel mismatch vs float32 reference")

    print("KERNEL_OK")
</pallas_src>

<mosaic_0001>
module attributes {stable_mosaic.version = 11 : i64} {
  func.func @tlstm_encoder_kernel(%arg0: i32, %arg1: memref<8x8x16xf32, #tpu.memory_space<vmem>>, %arg2: memref<8x8x1xf32, #tpu.memory_space<vmem>>, %arg3: memref<48x128xbf16, #tpu.memory_space<vmem>>, %arg4: memref<1x128xf32, #tpu.memory_space<vmem>>, %arg5: memref<32x32xbf16, #tpu.memory_space<vmem>>, %arg6: memref<1x32xf32, #tpu.memory_space<vmem>>, %arg7: memref<64x128xbf16, #tpu.memory_space<vmem>>, %arg8: memref<1x128xf32, #tpu.memory_space<vmem>>, %arg9: memref<32x32xbf16, #tpu.memory_space<vmem>>, %arg10: memref<1x32xf32, #tpu.memory_space<vmem>>, %arg11: memref<8x32xf32, #tpu.memory_space<vmem>>, %arg12: memref<8x32xf32, #tpu.memory_space<vmem>>) attributes {dimension_semantics = [#tpu.dimension_semantics<arbitrary>], iteration_bounds = array<i64: 1>, scalar_prefetch = 0 : i64, scratch_operands = 0 : i64, tpu.core_type = #tpu.core_type<tc>, window_params = [{pipeline_mode = #tpu.pipeline_mode<synchronous>, transform_indices = @transform_0, window_bounds = array<i64: 8, 8, 16>}, {pipeline_mode = #tpu.pipeline_mode<synchronous>, transform_indices = @transform_1, window_bounds = array<i64: 8, 8, 1>}, {pipeline_mode = #tpu.pipeline_mode<synchronous>, transform_indices = @transform_2, window_bounds = array<i64: 48, 128>}, {pipeline_mode = #tpu.pipeline_mode<synchronous>, transform_indices = @transform_3, window_bounds = array<i64: 1, 128>}, {pipeline_mode = #tpu.pipeline_mode<synchronous>, transform_indices = @transform_4, window_bounds = array<i64: 32, 32>}, {pipeline_mode = #tpu.pipeline_mode<synchronous>, transform_indices = @transform_5, window_bounds = array<i64: 1, 32>}, {pipeline_mode = #tpu.pipeline_mode<synchronous>, transform_indices = @transform_6, window_bounds = array<i64: 64, 128>}, {pipeline_mode = #tpu.pipeline_mode<synchronous>, transform_indices = @transform_7, window_bounds = array<i64: 1, 128>}, {pipeline_mode = #tpu.pipeline_mode<synchronous>, transform_indices = @transform_8, window_bounds = array<i64: 32, 32>}, {pipeline_mode = #tpu.pipeline_mode<synchronous>, transform_indices = @transform_9, window_bounds = array<i64: 1, 32>}, {pipeline_mode = #tpu.pipeline_mode<synchronous>, transform_indices = @transform_10, window_bounds = array<i64: 8, 32>}, {pipeline_mode = #tpu.pipeline_mode<synchronous>, transform_indices = @transform_11, window_bounds = array<i64: 8, 32>}]} {
    %c0 = arith.constant 0 : index
    %c0_0 = arith.constant 0 : index
    %0 = vector.load %arg3[%c0, %c0_0] : memref<48x128xbf16, #tpu.memory_space<vmem>>, vector<48x128xbf16>
    %c0_1 = arith.constant 0 : index
    %c0_2 = arith.constant 0 : index
    %1 = vector.load %arg5[%c0_1, %c0_2] : memref<32x32xbf16, #tpu.memory_space<vmem>>, vector<32x32xbf16>
    %c0_3 = arith.constant 0 : index
    %c0_4 = arith.constant 0 : index
    %2 = vector.load %arg7[%c0_3, %c0_4] : memref<64x128xbf16, #tpu.memory_space<vmem>>, vector<64x128xbf16>
    %c0_5 = arith.constant 0 : index
    %c0_6 = arith.constant 0 : index
    %3 = vector.load %arg9[%c0_5, %c0_6] : memref<32x32xbf16, #tpu.memory_space<vmem>>, vector<32x32xbf16>
    %c0_7 = arith.constant 0 : index
    %c0_8 = arith.constant 0 : index
    %4 = vector.load %arg4[%c0_7, %c0_8] : memref<1x128xf32, #tpu.memory_space<vmem>>, vector<1x128xf32>
    %5 = vector.shape_cast %4 : vector<1x128xf32> to vector<1x128xf32>
    %6 = vector.broadcast %5 : vector<1x128xf32> to vector<8x128xf32>
    %c0_9 = arith.constant 0 : index
    %c0_10 = arith.constant 0 : index
    %7 = vector.load %arg6[%c0_9, %c0_10] : memref<1x32xf32, #tpu.memory_space<vmem>>, vector<1x32xf32>
    %8 = vector.shape_cast %7 : vector<1x32xf32> to vector<1x32xf32>
    %9 = vector.broadcast %8 : vector<1x32xf32> to vector<8x32xf32>
    %c0_11 = arith.constant 0 : index
    %c0_12 = arith.constant 0 : index
    %10 = vector.load %arg8[%c0_11, %c0_12] : memref<1x128xf32, #tpu.memory_space<vmem>>, vector<1x128xf32>
    %11 = vector.shape_cast %10 : vector<1x128xf32> to vector<1x128xf32>
    %12 = vector.broadcast %11 : vector<1x128xf32> to vector<8x128xf32>
    %c0_13 = arith.constant 0 : index
    %c0_14 = arith.constant 0 : index
    %13 = vector.load %arg10[%c0_13, %c0_14] : memref<1x32xf32, #tpu.memory_space<vmem>>, vector<1x32xf32>
    %14 = vector.shape_cast %13 : vector<1x32xf32> to vector<1x32xf32>
    %15 = vector.broadcast %14 : vector<1x32xf32> to vector<8x32xf32>
    %cst = arith.constant 0.000000e+00 : f32
    %16 = vector.broadcast %cst : f32 to vector<8x32xf32>
    %cst_15 = arith.constant 0.000000e+00 : f32
    %17 = vector.broadcast %cst_15 : f32 to vector<8x32xf32>
    %cst_16 = arith.constant 0.000000e+00 : f32
    %18 = vector.broadcast %cst_16 : f32 to vector<8x32xf32>
    %cst_17 = arith.constant 0.000000e+00 : f32
    %19 = vector.broadcast %cst_17 : f32 to vector<8x32xf32>
    %c0_18 = arith.constant 0 : index
    %c0_19 = arith.constant 0 : index
    %c0_20 = arith.constant 0 : index
    %20 = vector.load %arg1[%c0_18, %c0_19, %c0_20] : memref<8x8x16xf32, #tpu.memory_space<vmem>>, vector<1x8x16xf32>
    %21 = vector.shape_cast %20 : vector<1x8x16xf32> to vector<8x16xf32>
    %c0_21 = arith.constant 0 : index
    %c0_22 = arith.constant 0 : index
    %c0_23 = arith.constant 0 : index
    %22 = vector.load %arg2[%c0_21, %c0_22, %c0_23] : memref<8x8x1xf32, #tpu.memory_space<vmem>>, vector<1x8x1xf32>
    %23 = vector.shape_cast %22 : vector<1x8x1xf32> to vector<8x1xf32>
    %24 = arith.truncf %17 : vector<8x32xf32> to vector<8x32xbf16>
    %cst_24 = arith.constant dense<0.000000e+00> : vector<8x32xf32>
    %25 = tpu.matmul %24, %1, %cst_24 {dimension_numbers = #tpu.dot_dimension_numbers<[1], [0], [0], [1], [0, 0, 1, 1], [], []>} : vector<8x32xbf16>, vector<32x32xbf16>, vector<8x32xf32> -> vector<8x32xf32>
    %26 = arith.addf %25, %9 : vector<8x32xf32>
    %27 = arith.negf %26 : vector<8x32xf32>
    %28 = math.exp %27 : vector<8x32xf32>
    %cst_25 = arith.constant 1.000000e+00 : f32
    %29 = vector.broadcast %cst_25 : f32 to vector<8x32xf32>
    %30 = arith.addf %29, %28 : vector<8x32xf32>
    %31 = arith.divf %29, %30 : vector<8x32xf32>
    %32 = arith.subf %17, %31 : vector<8x32xf32>
    %33 = vector.broadcast %23 : vector<8x1xf32> to vector<8x32xf32>
    %34 = arith.mulf %31, %33 : vector<8x32xf32>
    %35 = arith.addf %32, %34 : vector<8x32xf32>
    %36 = tpu.concatenate %21, %16 in 1 : vector<8x16xf32>, vector<8x32xf32> -> vector<8x48xf32>
    %37 = arith.truncf %36 : vector<8x48xf32> to vector<8x48xbf16>
    %cst_26 = arith.constant dense<0.000000e+00> : vector<8x128xf32>
    %38 = tpu.matmul %37, %0, %cst_26 {dimension_numbers = #tpu.dot_dimension_numbers<[1], [0], [0], [1], [0, 0, 1, 1], [], []>} : vector<8x48xbf16>, vector<48x128xbf16>, vector<8x128xf32> -> vector<8x128xf32>
    %39 = arith.addf %38, %6 : vector<8x128xf32>
    %40 = vector.extract_strided_slice %39 {offsets = [0, 0], sizes = [8, 32], strides = [1, 1]} : vector<8x128xf32> to vector<8x32xf32>
    %41 = arith.negf %40 : vector<8x32xf32>
    %42 = math.exp %41 : vector<8x32xf32>
    %cst_27 = arith.constant 1.000000e+00 : f32
    %43 = vector.broadcast %cst_27 : f32 to vector<8x32xf32>
    %44 = arith.addf %43, %42 : vector<8x32xf32>
    %45 = arith.divf %43, %44 : vector<8x32xf32>
    %46 = vector.extract_strided_slice %39 {offsets = [0, 32], sizes = [8, 32], strides = [1, 1]} : vector<8x128xf32> to vector<8x32xf32>
    %47 = arith.negf %46 : vector<8x32xf32>
    %48 = math.exp %47 : vector<8x32xf32>
    %cst_28 = arith.constant 1.000000e+00 : f32
    %49 = vector.broadcast %cst_28 : f32 to vector<8x32xf32>
    %50 = arith.addf %49, %48 : vector<8x32xf32>
    %51 = arith.divf %49, %50 : vector<8x32xf32>
    %52 = vector.extract_strided_slice %39 {offsets = [0, 64], sizes = [8, 32], strides = [1, 1]} : vector<8x128xf32> to vector<8x32xf32>
    %53 = arith.negf %52 : vector<8x32xf32>
    %54 = math.exp %53 : vector<8x32xf32>
    %cst_29 = arith.constant 1.000000e+00 : f32
    %55 = vector.broadcast %cst_29 : f32 to vector<8x32xf32>
    %56 = arith.addf %55, %54 : vector<8x32xf32>
    %57 = arith.divf %55, %56 : vector<8x32xf32>
    %58 = vector.extract_strided_slice %39 {offsets = [0, 96], sizes = [8, 32], strides = [1, 1]} : vector<8x128xf32> to vector<8x32xf32>
    %59 = math.tanh %58 : vector<8x32xf32>
    %60 = arith.mulf %45, %35 : vector<8x32xf32>
    %61 = arith.mulf %51, %59 : vector<8x32xf32>
    %62 = arith.addf %60, %61 : vector<8x32xf32>
    %63 = math.tanh %62 : vector<8x32xf32>
    %64 = arith.mulf %57, %63 : vector<8x32xf32>
    %65 = arith.truncf %19 : vector<8x32xf32> to vector<8x32xbf16>
    %cst_30 = arith.constant dense<0.000000e+00> : vector<8x32xf32>
    %66 = tpu.matmul %65, %3, %cst_30 {dimension_numbers = #tpu.dot_dimension_numbers<[1], [0], [0], [1], [0, 0, 1, 1], [], []>} : vector<8x32xbf16>, vector<32x32xbf16>, vector<8x32xf32> -> vector<8x32xf32>
    %67 = arith.addf %66, %15 : vector<8x32xf32>
    %68 = arith.negf %67 : vector<8x32xf32>
    %69 = math.exp %68 : vector<8x32xf32>
    %cst_31 = arith.constant 1.000000e+00 : f32
    %70 = vector.broadcast %cst_31 : f32 to vector<8x32xf32>
    %71 = arith.addf %70, %69 : vector<8x32xf32>
    %72 = arith.divf %70, %71 : vector<8x32xf32>
    %73 = arith.subf %19, %72 : vector<8x32xf32>
    %74 = vector.broadcast %23 : vector<8x1xf32> to vector<8x32xf32>
    %75 = arith.mulf %72, %74 : vector<8x32xf32>
    %76 = arith.addf %73, %75 : vector<8x32xf32>
    %77 = tpu.concatenate %64, %18 in 1 : vector<8x32xf32>, vector<8x32xf32> -> vector<8x64xf32>
    %78 = arith.truncf %77 : vector<8x64xf32> to vector<8x64xbf16>
    %cst_32 = arith.constant dense<0.000000e+00> : vector<8x128xf32>
    %79 = tpu.matmul %78, %2, %cst_32 {dimension_numbers = #tpu.dot_dimension_numbers<[1], [0], [0], [1], [0, 0, 1, 1], [], []>} : vector<8x64xbf16>, vector<64x128xbf16>, vector<8x128xf32> -> vector<8x128xf32>
    %80 = arith.addf %79, %12 : vector<8x128xf32>
    %81 = vector.extract_strided_slice %80 {offsets = [0, 0], sizes = [8, 32], strides = [1, 1]} : vector<8x128xf32> to vector<8x32xf32>
    %82 = arith.negf %81 : vector<8x32xf32>
    %83 = math.exp %82 : vector<8x32xf32>
    %cst_33 = arith.constant 1.000000e+00 : f32
    %84 = vector.broadcast %cst_33 : f32 to vector<8x32xf32>
    %85 = arith.addf %84, %83 : vector<8x32xf32>
    %86 = arith.divf %84, %85 : vector<8x32xf32>
    %87 = vector.extract_strided_slice %80 {offsets = [0, 32], sizes = [8, 32], strides = [1, 1]} : vector<8x128xf32> to vector<8x32xf32>
    %88 = arith.negf %87 : vector<8x32xf32>
    %89 = math.exp %88 : vector<8x32xf32>
    %cst_34 = arith.constant 1.000000e+00 : f32
    %90 = vector.broadcast %cst_34 : f32 to vector<8x32xf32>
    %91 = arith.addf %90, %89 : vector<8x32xf32>
    %92 = arith.divf %90, %91 : vector<8x32xf32>
    %93 = vector.extract_strided_slice %80 {offsets = [0, 64], sizes = [8, 32], strides = [1, 1]} : vector<8x128xf32> to vector<8x32xf32>
    %94 = arith.negf %93 : vector<8x32xf32>
    %95 = math.exp %94 : vector<8x32xf32>
    %cst_35 = arith.constant 1.000000e+00 : f32
    %96 = vector.broadcast %cst_35 : f32 to vector<8x32xf32>
    %97 = arith.addf %96, %95 : vector<8x32xf32>
    %98 = arith.divf %96, %97 : vector<8x32xf32>
    %99 = vector.extract_strided_slice %80 {offsets = [0, 96], sizes = [8, 32], strides = [1, 1]} : vector<8x128xf32> to vector<8x32xf32>
    %100 = math.tanh %99 : vector<8x32xf32>
    %101 = arith.mulf %86, %76 : vector<8x32xf32>
    %102 = arith.mulf %92, %100 : vector<8x32xf32>
    %103 = arith.addf %101, %102 : vector<8x32xf32>
    %104 = math.tanh %103 : vector<8x32xf32>
    %105 = arith.mulf %98, %104 : vector<8x32xf32>
    %c1 = arith.constant 1 : index
    %c0_36 = arith.constant 0 : index
    %c0_37 = arith.constant 0 : index
    %106 = vector.load %arg1[%c1, %c0_36, %c0_37] : memref<8x8x16xf32, #tpu.memory_space<vmem>>, vector<1x8x16xf32>
    %107 = vector.shape_cast %106 : vector<1x8x16xf32> to vector<8x16xf32>
    %c1_38 = arith.constant 1 : index
    %c0_39 = arith.constant 0 : index
    %c0_40 = arith.constant 0 : index
    %108 = vector.load %arg2[%c1_38, %c0_39, %c0_40] : memref<8x8x1xf32, #tpu.memory_space<vmem>>, vector<1x8x1xf32>
    %109 = vector.shape_cast %108 : vector<1x8x1xf32> to vector<8x1xf32>
    %110 = arith.truncf %62 : vector<8x32xf32> to vector<8x32xbf16>
    %cst_41 = arith.constant dense<0.000000e+00> : vector<8x32xf32>
    %111 = tpu.matmul %110, %1, %cst_41 {dimension_numbers = #tpu.dot_dimension_numbers<[1], [0], [0], [1], [0, 0, 1, 1], [], []>} : vector<8x32xbf16>, vector<32x32xbf16>, vector<8x32xf32> -> vector<8x32xf32>
    %112 = arith.addf %111, %9 : vector<8x32xf32>
    %113 = arith.negf %112 : vector<8x32xf32>
    %114 = math.exp %113 : vector<8x32xf32>
    %cst_42 = arith.constant 1.000000e+00 : f32
    %115 = vector.broadcast %cst_42 : f32 to vector<8x32xf32>
    %116 = arith.addf %115, %114 : vector<8x32xf32>
    %117 = arith.divf %115, %116 : vector<8x32xf32>
    %118 = arith.subf %62, %117 : vector<8x32xf32>
    %119 = vector.broadcast %109 : vector<8x1xf32> to vector<8x32xf32>
    %120 = arith.mulf %117, %119 : vector<8x32xf32>
    %121 = arith.addf %118, %120 : vector<8x32xf32>
    %122 = tpu.concatenate %107, %64 in 1 : vector<8x16xf32>, vector<8x32xf32> -> vector<8x48xf32>
    %123 = arith.truncf %122 : vector<8x48xf32> to vector<8x48xbf16>
    %cst_43 = arith.constant dense<0.000000e+00> : vector<8x128xf32>
    %124 = tpu.matmul %123, %0, %cst_43 {dimension_numbers = #tpu.dot_dimension_numbers<[1], [0], [0], [1], [0, 0, 1, 1], [], []>} : vector<8x48xbf16>, vector<48x128xbf16>, vector<8x128xf32> -> vector<8x128xf32>
    %125 = arith.addf %124, %6 : vector<8x128xf32>
    %126 = vector.extract_strided_slice %125 {offsets = [0, 0], sizes = [8, 32], strides = [1, 1]} : vector<8x128xf32> to vector<8x32xf32>
    %127 = arith.negf %126 : vector<8x32xf32>
    %128 = math.exp %127 : vector<8x32xf32>
    %cst_44 = arith.constant 1.000000e+00 : f32
    %129 = vector.broadcast %cst_44 : f32 to vector<8x32xf32>
    %130 = arith.addf %129, %128 : vector<8x32xf32>
    %131 = arith.divf %129, %130 : vector<8x32xf32>
    %132 = vector.extract_strided_slice %125 {offsets = [0, 32], sizes = [8, 32], strides = [1, 1]} : vector<8x128xf32> to vector<8x32xf32>
    %133 = arith.negf %132 : vector<8x32xf32>
    %134 = math.exp %133 : vector<8x32xf32>
    %cst_45 = arith.constant 1.000000e+00 : f32
    %135 = vector.broadcast %cst_45 : f32 to vector<8x32xf32>
    %136 = arith.addf %135, %134 : vector<8x32xf32>
    %137 = arith.divf %135, %136 : vector<8x32xf32>
    %138 = vector.extract_strided_slice %125 {offsets = [0, 64], sizes = [8, 32], strides = [1, 1]} : vector<8x128xf32> to vector<8x32xf32>
    %139 = arith.negf %138 : vector<8x32xf32>
    %140 = math.exp %139 : vector<8x32xf32>
    %cst_46 = arith.constant 1.000000e+00 : f32
    %141 = vector.broadcast %cst_46 : f32 to vector<8x32xf32>
    %142 = arith.addf %141, %140 : vector<8x32xf32>
    %143 = arith.divf %141, %142 : vector<8x32xf32>
    %144 = vector.extract_strided_slice %125 {offsets = [0, 96], sizes = [8, 32], strides = [1, 1]} : vector<8x128xf32> to vector<8x32xf32>
    %145 = math.tanh %144 : vector<8x32xf32>
    %146 = arith.mulf %131, %121 : vector<8x32xf32>
    %147 = arith.mulf %137, %145 : vector<8x32xf32>
    %148 = arith.addf %146, %147 : vector<8x32xf32>
    %149 = math.tanh %148 : vector<8x32xf32>
    %150 = arith.mulf %143, %149 : vector<8x32xf32>
    %151 = arith.truncf %103 : vector<8x32xf32> to vector<8x32xbf16>
    %cst_47 = arith.constant dense<0.000000e+00> : vector<8x32xf32>
    %152 = tpu.matmul %151, %3, %cst_47 {dimension_numbers = #tpu.dot_dimension_numbers<[1], [0], [0], [1], [0, 0, 1, 1], [], []>} : vector<8x32xbf16>, vector<32x32xbf16>, vector<8x32xf32> -> vector<8x32xf32>
    %153 = arith.addf %152, %15 : vector<8x32xf32>
    %154 = arith.negf %153 : vector<8x32xf32>
    %155 = math.exp %154 : vector<8x32xf32>
    %cst_48 = arith.constant 1.000000e+00 : f32
    %156 = vector.broadcast %cst_48 : f32 to vector<8x32xf32>
    %157 = arith.addf %156, %155 : vector<8x32xf32>
    %158 = arith.divf %156, %157 : vector<8x32xf32>
    %159 = arith.subf %103, %158 : vector<8x32xf32>
    %160 = vector.broadcast %109 : vector<8x1xf32> to vector<8x32xf32>
    %161 = arith.mulf %158, %160 : vector<8x32xf32>
    %162 = arith.addf %159, %161 : vector<8x32xf32>
    %163 = tpu.concatenate %150, %105 in 1 : vector<8x32xf32>, vector<8x32xf32> -> vector<8x64xf32>
    %164 = arith.truncf %163 : vector<8x64xf32> to vector<8x64xbf16>
    %cst_49 = arith.constant dense<0.000000e+00> : vector<8x128xf32>
    %165 = tpu.matmul %164, %2, %cst_49 {dimension_numbers = #tpu.dot_dimension_numbers<[1], [0], [0], [1], [0, 0, 1, 1], [], []>} : vector<8x64xbf16>, vector<64x128xbf16>, vector<8x128xf32> -> vector<8x128xf32>
    %166 = arith.addf %165, %12 : vector<8x128xf32>
    %167 = vector.extract_strided_slice %166 {offsets = [0, 0], sizes = [8, 32], strides = [1, 1]} : vector<8x128xf32> to vector<8x32xf32>
    %168 = arith.negf %167 : vector<8x32xf32>
    %169 = math.exp %168 : vector<8x32xf32>
    %cst_50 = arith.constant 1.000000e+00 : f32
    %170 = vector.broadcast %cst_50 : f32 to vector<8x32xf32>
    %171 = arith.addf %170, %169 : vector<8x32xf32>
    %172 = arith.divf %170, %171 : vector<8x32xf32>
    %173 = vector.extract_strided_slice %166 {offsets = [0, 32], sizes = [8, 32], strides = [1, 1]} : vector<8x128xf32> to vector<8x32xf32>
    %174 = arith.negf %173 : vector<8x32xf32>
    %175 = math.exp %174 : vector<8x32xf32>
    %cst_51 = arith.constant 1.000000e+00 : f32
    %176 = vector.broadcast %cst_51 : f32 to vector<8x32xf32>
    %177 = arith.addf %176, %175 : vector<8x32xf32>
    %178 = arith.divf %176, %177 : vector<8x32xf32>
    %179 = vector.extract_strided_slice %166 {offsets = [0, 64], sizes = [8, 32], strides = [1, 1]} : vector<8x128xf32> to vector<8x32xf32>
    %180 = arith.negf %179 : vector<8x32xf32>
    %181 = math.exp %180 : vector<8x32xf32>
    %cst_52 = arith.constant 1.000000e+00 : f32
    %182 = vector.broadcast %cst_52 : f32 to vector<8x32xf32>
    %183 = arith.addf %182, %181 : vector<8x32xf32>
    %184 = arith.divf %182, %183 : vector<8x32xf32>
    %185 = vector.extract_strided_slice %166 {offsets = [0, 96], sizes = [8, 32], strides = [1, 1]} : vector<8x128xf32> to vector<8x32xf32>
    %186 = math.tanh %185 : vector<8x32xf32>
    %187 = arith.mulf %172, %162 : vector<8x32xf32>
    %188 = arith.mulf %178, %186 : vector<8x32xf32>
    %189 = arith.addf %187, %188 : vector<8x32xf32>
    %190 = math.tanh %189 : vector<8x32xf32>
    %191 = arith.mulf %184, %190 : vector<8x32xf32>
    %c2 = arith.constant 2 : index
    %c0_53 = arith.constant 0 : index
    %c0_54 = arith.constant 0 : index
    %192 = vector.load %arg1[%c2, %c0_53, %c0_54] : memref<8x8x16xf32, #tpu.memory_space<vmem>>, vector<1x8x16xf32>
    %193 = vector.shape_cast %192 : vector<1x8x16xf32> to vector<8x16xf32>
    %c2_55 = arith.constant 2 : index
    %c0_56 = arith.constant 0 : index
    %c0_57 = arith.constant 0 : index
    %194 = vector.load %arg2[%c2_55, %c0_56, %c0_57] : memref<8x8x1xf32, #tpu.memory_space<vmem>>, vector<1x8x1xf32>
    %195 = vector.shape_cast %194 : vector<1x8x1xf32> to vector<8x1xf32>
    %196 = arith.truncf %148 : vector<8x32xf32> to vector<8x32xbf16>
    %cst_58 = arith.constant dense<0.000000e+00> : vector<8x32xf32>
    %197 = tpu.matmul %196, %1, %cst_58 {dimension_numbers = #tpu.dot_dimension_numbers<[1], [0], [0], [1], [0, 0, 1, 1], [], []>} : vector<8x32xbf16>, vector<32x32xbf16>, vector<8x32xf32> -> vector<8x32xf32>
    %198 = arith.addf %197, %9 : vector<8x32xf32>
    %199 = arith.negf %198 : vector<8x32xf32>
    %200 = math.exp %199 : vector<8x32xf32>
    %cst_59 = arith.constant 1.000000e+00 : f32
    %201 = vector.broadcast %cst_59 : f32 to vector<8x32xf32>
    %202 = arith.addf %201, %200 : vector<8x32xf32>
    %203 = arith.divf %201, %202 : vector<8x32xf32>
    %204 = arith.subf %148, %203 : vector<8x32xf32>
    %205 = vector.broadcast %195 : vector<8x1xf32> to vector<8x32xf32>
    %206 = arith.mulf %203, %205 : vector<8x32xf32>
    %207 = arith.addf %204, %206 : vector<8x32xf32>
    %208 = tpu.concatenate %193, %150 in 1 : vector<8x16xf32>, vector<8x32xf32> -> vector<8x48xf32>
    %209 = arith.truncf %208 : vector<8x48xf32> to vector<8x48xbf16>
    %cst_60 = arith.constant dense<0.000000e+00> : vector<8x128xf32>
    %210 = tpu.matmul %209, %0, %cst_60 {dimension_numbers = #tpu.dot_dimension_numbers<[1], [0], [0], [1], [0, 0, 1, 1], [], []>} : vector<8x48xbf16>, vector<48x128xbf16>, vector<8x128xf32> -> vector<8x128xf32>
    %211 = arith.addf %210, %6 : vector<8x128xf32>
    %212 = vector.extract_strided_slice %211 {offsets = [0, 0], sizes = [8, 32], strides = [1, 1]} : vector<8x128xf32> to vector<8x32xf32>
    %213 = arith.negf %212 : vector<8x32xf32>
    %214 = math.exp %213 : vector<8x32xf32>
    %cst_61 = arith.constant 1.000000e+00 : f32
    %215 = vector.broadcast %cst_61 : f32 to vector<8x32xf32>
    %216 = arith.addf %215, %214 : vector<8x32xf32>
    %217 = arith.divf %215, %216 : vector<8x32xf32>
    %218 = vector.extract_strided_slice %211 {offsets = [0, 32], sizes = [8, 32], strides = [1, 1]} : vector<8x128xf32> to vector<8x32xf32>
    %219 = arith.negf %218 : vector<8x32xf32>
    %220 = math.exp %219 : vector<8x32xf32>
    %cst_62 = arith.constant 1.000000e+00 : f32
    %221 = vector.broadcast %cst_62 : f32 to vector<8x32xf32>
    %222 = arith.addf %221, %220 : vector<8x32xf32>
    %223 = arith.divf %221, %222 : vector<8x32xf32>
    %224 = vector.extract_strided_slice %211 {offsets = [0, 64], sizes = [8, 32], strides = [1, 1]} : vector<8x128xf32> to vector<8x32xf32>
    %225 = arith.negf %224 : vector<8x32xf32>
    %226 = math.exp %225 : vector<8x32xf32>
    %cst_63 = arith.constant 1.000000e+00 : f32
    %227 = vector.broadcast %cst_63 : f32 to vector<8x32xf32>
    %228 = arith.addf %227, %226 : vector<8x32xf32>
    %229 = arith.divf %227, %228 : vector<8x32xf32>
    %230 = vector.extract_strided_slice %211 {offsets = [0, 96], sizes = [8, 32], strides = [1, 1]} : vector<8x128xf32> to vector<8x32xf32>
    %231 = math.tanh %230 : vector<8x32xf32>
    %232 = arith.mulf %217, %207 : vector<8x32xf32>
    %233 = arith.mulf %223, %231 : vector<8x32xf32>
    %234 = arith.addf %232, %233 : vector<8x32xf32>
    %235 = math.tanh %234 : vector<8x32xf32>
    %236 = arith.mulf %229, %235 : vector<8x32xf32>
    %237 = arith.truncf %189 : vector<8x32xf32> to vector<8x32xbf16>
    %cst_64 = arith.constant dense<0.000000e+00> : vector<8x32xf32>
    %238 = tpu.matmul %237, %3, %cst_64 {dimension_numbers = #tpu.dot_dimension_numbers<[1], [0], [0], [1], [0, 0, 1, 1], [], []>} : vector<8x32xbf16>, vector<32x32xbf16>, vector<8x32xf32> -> vector<8x32xf32>
    %239 = arith.addf %238, %15 : vector<8x32xf32>
    %240 = arith.negf %239 : vector<8x32xf32>
    %241 = math.exp %240 : vector<8x32xf32>
    %cst_65 = arith.constant 1.000000e+00 : f32
    %242 = vector.broadcast %cst_65 : f32 to vector<8x32xf32>
    %243 = arith.addf %242, %241 : vector<8x32xf32>
    %244 = arith.divf %242, %243 : vector<8x32xf32>
    %245 = arith.subf %189, %244 : vector<8x32xf32>
    %246 = vector.broadcast %195 : vector<8x1xf32> to vector<8x32xf32>
    %247 = arith.mulf %244, %246 : vector<8x32xf32>
    %248 = arith.addf %245, %247 : vector<8x32xf32>
    %249 = tpu.concatenate %236, %191 in 1 : vector<8x32xf32>, vector<8x32xf32> -> vector<8x64xf32>
    %250 = arith.truncf %249 : vector<8x64xf32> to vector<8x64xbf16>
    %cst_66 = arith.constant dense<0.000000e+00> : vector<8x128xf32>
    %251 = tpu.matmul %250, %2, %cst_66 {dimension_numbers = #tpu.dot_dimension_numbers<[1], [0], [0], [1], [0, 0, 1, 1], [], []>} : vector<8x64xbf16>, vector<64x128xbf16>, vector<8x128xf32> -> vector<8x128xf32>
    %252 = arith.addf %251, %12 : vector<8x128xf32>
    %253 = vector.extract_strided_slice %252 {offsets = [0, 0], sizes = [8, 32], strides = [1, 1]} : vector<8x128xf32> to vector<8x32xf32>
    %254 = arith.negf %253 : vector<8x32xf32>
    %255 = math.exp %254 : vector<8x32xf32>
    %cst_67 = arith.constant 1.000000e+00 : f32
    %256 = vector.broadcast %cst_67 : f32 to vector<8x32xf32>
    %257 = arith.addf %256, %255 : vector<8x32xf32>
    %258 = arith.divf %256, %257 : vector<8x32xf32>
    %259 = vector.extract_strided_slice %252 {offsets = [0, 32], sizes = [8, 32], strides = [1, 1]} : vector<8x128xf32> to vector<8x32xf32>
    %260 = arith.negf %259 : vector<8x32xf32>
    %261 = math.exp %260 : vector<8x32xf32>
    %cst_68 = arith.constant 1.000000e+00 : f32
    %262 = vector.broadcast %cst_68 : f32 to vector<8x32xf32>
    %263 = arith.addf %262, %261 : vector<8x32xf32>
    %264 = arith.divf %262, %263 : vector<8x32xf32>
    %265 = vector.extract_strided_slice %252 {offsets = [0, 64], sizes = [8, 32], strides = [1, 1]} : vector<8x128xf32> to vector<8x32xf32>
    %266 = arith.negf %265 : vector<8x32xf32>
    %267 = math.exp %266 : vector<8x32xf32>
    %cst_69 = arith.constant 1.000000e+00 : f32
    %268 = vector.broadcast %cst_69 : f32 to vector<8x32xf32>
    %269 = arith.addf %268, %267 : vector<8x32xf32>
    %270 = arith.divf %268, %269 : vector<8x32xf32>
    %271 = vector.extract_strided_slice %252 {offsets = [0, 96], sizes = [8, 32], strides = [1, 1]} : vector<8x128xf32> to vector<8x32xf32>
    %272 = math.tanh %271 : vector<8x32xf32>
    %273 = arith.mulf %258, %248 : vector<8x32xf32>
    %274 = arith.mulf %264, %272 : vector<8x32xf32>
    %275 = arith.addf %273, %274 : vector<8x32xf32>
    %276 = math.tanh %275 : vector<8x32xf32>
    %277 = arith.mulf %270, %276 : vector<8x32xf32>
    %c3 = arith.constant 3 : index
    %c0_70 = arith.constant 0 : index
    %c0_71 = arith.constant 0 : index
    %278 = vector.load %arg1[%c3, %c0_70, %c0_71] : memref<8x8x16xf32, #tpu.memory_space<vmem>>, vector<1x8x16xf32>
    %279 = vector.shape_cast %278 : vector<1x8x16xf32> to vector<8x16xf32>
    %c3_72 = arith.constant 3 : index
    %c0_73 = arith.constant 0 : index
    %c0_74 = arith.constant 0 : index
    %280 = vector.load %arg2[%c3_72, %c0_73, %c0_74] : memref<8x8x1xf32, #tpu.memory_space<vmem>>, vector<1x8x1xf32>
    %281 = vector.shape_cast %280 : vector<1x8x1xf32> to vector<8x1xf32>
    %282 = arith.truncf %234 : vector<8x32xf32> to vector<8x32xbf16>
    %cst_75 = arith.constant dense<0.000000e+00> : vector<8x32xf32>
    %283 = tpu.matmul %282, %1, %cst_75 {dimension_numbers = #tpu.dot_dimension_numbers<[1], [0], [0], [1], [0, 0, 1, 1], [], []>} : vector<8x32xbf16>, vector<32x32xbf16>, vector<8x32xf32> -> vector<8x32xf32>
    %284 = arith.addf %283, %9 : vector<8x32xf32>
    %285 = arith.negf %284 : vector<8x32xf32>
    %286 = math.exp %285 : vector<8x32xf32>
    %cst_76 = arith.constant 1.000000e+00 : f32
    %287 = vector.broadcast %cst_76 : f32 to vector<8x32xf32>
    %288 = arith.addf %287, %286 : vector<8x32xf32>
    %289 = arith.divf %287, %288 : vector<8x32xf32>
    %290 = arith.subf %234, %289 : vector<8x32xf32>
    %291 = vector.broadcast %281 : vector<8x1xf32> to vector<8x32xf32>
    %292 = arith.mulf %289, %291 : vector<8x32xf32>
    %293 = arith.addf %290, %292 : vector<8x32xf32>
    %294 = tpu.concatenate %279, %236 in 1 : vector<8x16xf32>, vector<8x32xf32> -> vector<8x48xf32>
    %295 = arith.truncf %294 : vector<8x48xf32> to vector<8x48xbf16>
    %cst_77 = arith.constant dense<0.000000e+00> : vector<8x128xf32>
    %296 = tpu.matmul %295, %0, %cst_77 {dimension_numbers = #tpu.dot_dimension_numbers<[1], [0], [0], [1], [0, 0, 1, 1], [], []>} : vector<8x48xbf16>, vector<48x128xbf16>, vector<8x128xf32> -> vector<8x128xf32>
    %297 = arith.addf %296, %6 : vector<8x128xf32>
    %298 = vector.extract_strided_slice %297 {offsets = [0, 0], sizes = [8, 32], strides = [1, 1]} : vector<8x128xf32> to vector<8x32xf32>
    %299 = arith.negf %298 : vector<8x32xf32>
    %300 = math.exp %299 : vector<8x32xf32>
    %cst_78 = arith.constant 1.000000e+00 : f32
    %301 = vector.broadcast %cst_78 : f32 to vector<8x32xf32>
    %302 = arith.addf %301, %300 : vector<8x32xf32>
    %303 = arith.divf %301, %302 : vector<8x32xf32>
    %304 = vector.extract_strided_slice %297 {offsets = [0, 32], sizes = [8, 32], strides = [1, 1]} : vector<8x128xf32> to vector<8x32xf32>
    %305 = arith.negf %304 : vector<8x32xf32>
    %306 = math.exp %305 : vector<8x32xf32>
    %cst_79 = arith.constant 1.000000e+00 : f32
    %307 = vector.broadcast %cst_79 : f32 to vector<8x32xf32>
    %308 = arith.addf %307, %306 : vector<8x32xf32>
    %309 = arith.divf %307, %308 : vector<8x32xf32>
    %310 = vector.extract_strided_slice %297 {offsets = [0, 64], sizes = [8, 32], strides = [1, 1]} : vector<8x128xf32> to vector<8x32xf32>
    %311 = arith.negf %310 : vector<8x32xf32>
    %312 = math.exp %311 : vector<8x32xf32>
    %cst_80 = arith.constant 1.000000e+00 : f32
    %313 = vector.broadcast %cst_80 : f32 to vector<8x32xf32>
    %314 = arith.addf %313, %312 : vector<8x32xf32>
    %315 = arith.divf %313, %314 : vector<8x32xf32>
    %316 = vector.extract_strided_slice %297 {offsets = [0, 96], sizes = [8, 32], strides = [1, 1]} : vector<8x128xf32> to vector<8x32xf32>
    %317 = math.tanh %316 : vector<8x32xf32>
    %318 = arith.mulf %303, %293 : vector<8x32xf32>
    %319 = arith.mulf %309, %317 : vector<8x32xf32>
    %320 = arith.addf %318, %319 : vector<8x32xf32>
    %321 = math.tanh %320 : vector<8x32xf32>
    %322 = arith.mulf %315, %321 : vector<8x32xf32>
    %323 = arith.truncf %275 : vector<8x32xf32> to vector<8x32xbf16>
    %cst_81 = arith.constant dense<0.000000e+00> : vector<8x32xf32>
    %324 = tpu.matmul %323, %3, %cst_81 {dimension_numbers = #tpu.dot_dimension_numbers<[1], [0], [0], [1], [0, 0, 1, 1], [], []>} : vector<8x32xbf16>, vector<32x32xbf16>, vector<8x32xf32> -> vector<8x32xf32>
    %325 = arith.addf %324, %15 : vector<8x32xf32>
    %326 = arith.negf %325 : vector<8x32xf32>
    %327 = math.exp %326 : vector<8x32xf32>
    %cst_82 = arith.constant 1.000000e+00 : f32
    %328 = vector.broadcast %cst_82 : f32 to vector<8x32xf32>
    %329 = arith.addf %328, %327 : vector<8x32xf32>
    %330 = arith.divf %328, %329 : vector<8x32xf32>
    %331 = arith.subf %275, %330 : vector<8x32xf32>
    %332 = vector.broadcast %281 : vector<8x1xf32> to vector<8x32xf32>
    %333 = arith.mulf %330, %332 : vector<8x32xf32>
    %334 = arith.addf %331, %333 : vector<8x32xf32>
    %335 = tpu.concatenate %322, %277 in 1 : vector<8x32xf32>, vector<8x32xf32> -> vector<8x64xf32>
    %336 = arith.truncf %335 : vector<8x64xf32> to vector<8x64xbf16>
    %cst_83 = arith.constant dense<0.000000e+00> : vector<8x128xf32>
    %337 = tpu.matmul %336, %2, %cst_83 {dimension_numbers = #tpu.dot_dimension_numbers<[1], [0], [0], [1], [0, 0, 1, 1], [], []>} : vector<8x64xbf16>, vector<64x128xbf16>, vector<8x128xf32> -> vector<8x128xf32>
    %338 = arith.addf %337, %12 : vector<8x128xf32>
    %339 = vector.extract_strided_slice %338 {offsets = [0, 0], sizes = [8, 32], strides = [1, 1]} : vector<8x128xf32> to vector<8x32xf32>
    %340 = arith.negf %339 : vector<8x32xf32>
    %341 = math.exp %340 : vector<8x32xf32>
    %cst_84 = arith.constant 1.000000e+00 : f32
    %342 = vector.broadcast %cst_84 : f32 to vector<8x32xf32>
    %343 = arith.addf %342, %341 : vector<8x32xf32>
    %344 = arith.divf %342, %343 : vector<8x32xf32>
    %345 = vector.extract_strided_slice %338 {offsets = [0, 32], sizes = [8, 32], strides = [1, 1]} : vector<8x128xf32> to vector<8x32xf32>
    %346 = arith.negf %345 : vector<8x32xf32>
    %347 = math.exp %346 : vector<8x32xf32>
    %cst_85 = arith.constant 1.000000e+00 : f32
    %348 = vector.broadcast %cst_85 : f32 to vector<8x32xf32>
    %349 = arith.addf %348, %347 : vector<8x32xf32>
    %350 = arith.divf %348, %349 : vector<8x32xf32>
    %351 = vector.extract_strided_slice %338 {offsets = [0, 64], sizes = [8, 32], strides = [1, 1]} : vector<8x128xf32> to vector<8x32xf32>
    %352 = arith.negf %351 : vector<8x32xf32>
    %353 = math.exp %352 : vector<8x32xf32>
    %cst_86 = arith.constant 1.000000e+00 : f32
    %354 = vector.broadcast %cst_86 : f32 to vector<8x32xf32>
    %355 = arith.addf %354, %353 : vector<8x32xf32>
    %356 = arith.divf %354, %355 : vector<8x32xf32>
    %357 = vector.extract_strided_slice %338 {offsets = [0, 96], sizes = [8, 32], strides = [1, 1]} : vector<8x128xf32> to vector<8x32xf32>
    %358 = math.tanh %357 : vector<8x32xf32>
    %359 = arith.mulf %344, %334 : vector<8x32xf32>
    %360 = arith.mulf %350, %358 : vector<8x32xf32>
    %361 = arith.addf %359, %360 : vector<8x32xf32>
    %362 = math.tanh %361 : vector<8x32xf32>
    %363 = arith.mulf %356, %362 : vector<8x32xf32>
    %c4 = arith.constant 4 : index
    %c0_87 = arith.constant 0 : index
    %c0_88 = arith.constant 0 : index
    %364 = vector.load %arg1[%c4, %c0_87, %c0_88] : memref<8x8x16xf32, #tpu.memory_space<vmem>>, vector<1x8x16xf32>
    %365 = vector.shape_cast %364 : vector<1x8x16xf32> to vector<8x16xf32>
    %c4_89 = arith.constant 4 : index
    %c0_90 = arith.constant 0 : index
    %c0_91 = arith.constant 0 : index
    %366 = vector.load %arg2[%c4_89, %c0_90, %c0_91] : memref<8x8x1xf32, #tpu.memory_space<vmem>>, vector<1x8x1xf32>
    %367 = vector.shape_cast %366 : vector<1x8x1xf32> to vector<8x1xf32>
    %368 = arith.truncf %320 : vector<8x32xf32> to vector<8x32xbf16>
    %cst_92 = arith.constant dense<0.000000e+00> : vector<8x32xf32>
    %369 = tpu.matmul %368, %1, %cst_92 {dimension_numbers = #tpu.dot_dimension_numbers<[1], [0], [0], [1], [0, 0, 1, 1], [], []>} : vector<8x32xbf16>, vector<32x32xbf16>, vector<8x32xf32> -> vector<8x32xf32>
    %370 = arith.addf %369, %9 : vector<8x32xf32>
    %371 = arith.negf %370 : vector<8x32xf32>
    %372 = math.exp %371 : vector<8x32xf32>
    %cst_93 = arith.constant 1.000000e+00 : f32
    %373 = vector.broadcast %cst_93 : f32 to vector<8x32xf32>
    %374 = arith.addf %373, %372 : vector<8x32xf32>
    %375 = arith.divf %373, %374 : vector<8x32xf32>
    %376 = arith.subf %320, %375 : vector<8x32xf32>
    %377 = vector.broadcast %367 : vector<8x1xf32> to vector<8x32xf32>
    %378 = arith.mulf %375, %377 : vector<8x32xf32>
    %379 = arith.addf %376, %378 : vector<8x32xf32>
    %380 = tpu.concatenate %365, %322 in 1 : vector<8x16xf32>, vector<8x32xf32> -> vector<8x48xf32>
    %381 = arith.truncf %380 : vector<8x48xf32> to vector<8x48xbf16>
    %cst_94 = arith.constant dense<0.000000e+00> : vector<8x128xf32>
    %382 = tpu.matmul %381, %0, %cst_94 {dimension_numbers = #tpu.dot_dimension_numbers<[1], [0], [0], [1], [0, 0, 1, 1], [], []>} : vector<8x48xbf16>, vector<48x128xbf16>, vector<8x128xf32> -> vector<8x128xf32>
    %383 = arith.addf %382, %6 : vector<8x128xf32>
    %384 = vector.extract_strided_slice %383 {offsets = [0, 0], sizes = [8, 32], strides = [1, 1]} : vector<8x128xf32> to vector<8x32xf32>
    %385 = arith.negf %384 : vector<8x32xf32>
    %386 = math.exp %385 : vector<8x32xf32>
    %cst_95 = arith.constant 1.000000e+00 : f32
    %387 = vector.broadcast %cst_95 : f32 to vector<8x32xf32>
    %388 = arith.addf %387, %386 : vector<8x32xf32>
    %389 = arith.divf %387, %388 : vector<8x32xf32>
    %390 = vector.extract_strided_slice %383 {offsets = [0, 32], sizes = [8, 32], strides = [1, 1]} : vector<8x128xf32> to vector<8x32xf32>
    %391 = arith.negf %390 : vector<8x32xf32>
    %392 = math.exp %391 : vector<8x32xf32>
    %cst_96 = arith.constant 1.000000e+00 : f32
    %393 = vector.broadcast %cst_96 : f32 to vector<8x32xf32>
    %394 = arith.addf %393, %392 : vector<8x32xf32>
    %395 = arith.divf %393, %394 : vector<8x32xf32>
    %396 = vector.extract_strided_slice %383 {offsets = [0, 64], sizes = [8, 32], strides = [1, 1]} : vector<8x128xf32> to vector<8x32xf32>
    %397 = arith.negf %396 : vector<8x32xf32>
    %398 = math.exp %397 : vector<8x32xf32>
    %cst_97 = arith.constant 1.000000e+00 : f32
    %399 = vector.broadcast %cst_97 : f32 to vector<8x32xf32>
    %400 = arith.addf %399, %398 : vector<8x32xf32>
    %401 = arith.divf %399, %400 : vector<8x32xf32>
    %402 = vector.extract_strided_slice %383 {offsets = [0, 96], sizes = [8, 32], strides = [1, 1]} : vector<8x128xf32> to vector<8x32xf32>
    %403 = math.tanh %402 : vector<8x32xf32>
    %404 = arith.mulf %389, %379 : vector<8x32xf32>
    %405 = arith.mulf %395, %403 : vector<8x32xf32>
    %406 = arith.addf %404, %405 : vector<8x32xf32>
    %407 = math.tanh %406 : vector<8x32xf32>
    %408 = arith.mulf %401, %407 : vector<8x32xf32>
    %409 = arith.truncf %361 : vector<8x32xf32> to vector<8x32xbf16>
    %cst_98 = arith.constant dense<0.000000e+00> : vector<8x32xf32>
    %410 = tpu.matmul %409, %3, %cst_98 {dimension_numbers = #tpu.dot_dimension_numbers<[1], [0], [0], [1], [0, 0, 1, 1], [], []>} : vector<8x32xbf16>, vector<32x32xbf16>, vector<8x32xf32> -> vector<8x32xf32>
    %411 = arith.addf %410, %15 : vector<8x32xf32>
    %412 = arith.negf %411 : vector<8x32xf32>
    %413 = math.exp %412 : vector<8x32xf32>
    %cst_99 = arith.constant 1.000000e+00 : f32
    %414 = vector.broadcast %cst_99 : f32 to vector<8x32xf32>
    %415 = arith.addf %414, %413 : vector<8x32xf32>
    %416 = arith.divf %414, %415 : vector<8x32xf32>
    %417 = arith.subf %361, %416 : vector<8x32xf32>
    %418 = vector.broadcast %367 : vector<8x1xf32> to vector<8x32xf32>
    %419 = arith.mulf %416, %418 : vector<8x32xf32>
    %420 = arith.addf %417, %419 : vector<8x32xf32>
    %421 = tpu.concatenate %408, %363 in 1 : vector<8x32xf32>, vector<8x32xf32> -> vector<8x64xf32>
    %422 = arith.truncf %421 : vector<8x64xf32> to vector<8x64xbf16>
    %cst_100 = arith.constant dense<0.000000e+00> : vector<8x128xf32>
    %423 = tpu.matmul %422, %2, %cst_100 {dimension_numbers = #tpu.dot_dimension_numbers<[1], [0], [0], [1], [0, 0, 1, 1], [], []>} : vector<8x64xbf16>, vector<64x128xbf16>, vector<8x128xf32> -> vector<8x128xf32>
    %424 = arith.addf %423, %12 : vector<8x128xf32>
    %425 = vector.extract_strided_slice %424 {offsets = [0, 0], sizes = [8, 32], strides = [1, 1]} : vector<8x128xf32> to vector<8x32xf32>
    %426 = arith.negf %425 : vector<8x32xf32>
    %427 = math.exp %426 : vector<8x32xf32>
    %cst_101 = arith.constant 1.000000e+00 : f32
    %428 = vector.broadcast %cst_101 : f32 to vector<8x32xf32>
    %429 = arith.addf %428, %427 : vector<8x32xf32>
    %430 = arith.divf %428, %429 : vector<8x32xf32>
    %431 = vector.extract_strided_slice %424 {offsets = [0, 32], sizes = [8, 32], strides = [1, 1]} : vector<8x128xf32> to vector<8x32xf32>
    %432 = arith.negf %431 : vector<8x32xf32>
    %433 = math.exp %432 : vector<8x32xf32>
    %cst_102 = arith.constant 1.000000e+00 : f32
    %434 = vector.broadcast %cst_102 : f32 to vector<8x32xf32>
    %435 = arith.addf %434, %433 : vector<8x32xf32>
    %436 = arith.divf %434, %435 : vector<8x32xf32>
    %437 = vector.extract_strided_slice %424 {offsets = [0, 64], sizes = [8, 32], strides = [1, 1]} : vector<8x128xf32> to vector<8x32xf32>
    %438 = arith.negf %437 : vector<8x32xf32>
    %439 = math.exp %438 : vector<8x32xf32>
    %cst_103 = arith.constant 1.000000e+00 : f32
    %440 = vector.broadcast %cst_103 : f32 to vector<8x32xf32>
    %441 = arith.addf %440, %439 : vector<8x32xf32>
    %442 = arith.divf %440, %441 : vector<8x32xf32>
    %443 = vector.extract_strided_slice %424 {offsets = [0, 96], sizes = [8, 32], strides = [1, 1]} : vector<8x128xf32> to vector<8x32xf32>
    %444 = math.tanh %443 : vector<8x32xf32>
    %445 = arith.mulf %430, %420 : vector<8x32xf32>
    %446 = arith.mulf %436, %444 : vector<8x32xf32>
    %447 = arith.addf %445, %446 : vector<8x32xf32>
    %448 = math.tanh %447 : vector<8x32xf32>
    %449 = arith.mulf %442, %448 : vector<8x32xf32>
    %c5 = arith.constant 5 : index
    %c0_104 = arith.constant 0 : index
    %c0_105 = arith.constant 0 : index
    %450 = vector.load %arg1[%c5, %c0_104, %c0_105] : memref<8x8x16xf32, #tpu.memory_space<vmem>>, vector<1x8x16xf32>
    %451 = vector.shape_cast %450 : vector<1x8x16xf32> to vector<8x16xf32>
    %c5_106 = arith.constant 5 : index
    %c0_107 = arith.constant 0 : index
    %c0_108 = arith.constant 0 : index
    %452 = vector.load %arg2[%c5_106, %c0_107, %c0_108] : memref<8x8x1xf32, #tpu.memory_space<vmem>>, vector<1x8x1xf32>
    %453 = vector.shape_cast %452 : vector<1x8x1xf32> to vector<8x1xf32>
    %454 = arith.truncf %406 : vector<8x32xf32> to vector<8x32xbf16>
    %cst_109 = arith.constant dense<0.000000e+00> : vector<8x32xf32>
    %455 = tpu.matmul %454, %1, %cst_109 {dimension_numbers = #tpu.dot_dimension_numbers<[1], [0], [0], [1], [0, 0, 1, 1], [], []>} : vector<8x32xbf16>, vector<32x32xbf16>, vector<8x32xf32> -> vector<8x32xf32>
    %456 = arith.addf %455, %9 : vector<8x32xf32>
    %457 = arith.negf %456 : vector<8x32xf32>
    %458 = math.exp %457 : vector<8x32xf32>
    %cst_110 = arith.constant 1.000000e+00 : f32
    %459 = vector.broadcast %cst_110 : f32 to vector<8x32xf32>
    %460 = arith.addf %459, %458 : vector<8x32xf32>
    %461 = arith.divf %459, %460 : vector<8x32xf32>
    %462 = arith.subf %406, %461 : vector<8x32xf32>
    %463 = vector.broadcast %453 : vector<8x1xf32> to vector<8x32xf32>
    %464 = arith.mulf %461, %463 : vector<8x32xf32>
    %465 = arith.addf %462, %464 : vector<8x32xf32>
    %466 = tpu.concatenate %451, %408 in 1 : vector<8x16xf32>, vector<8x32xf32> -> vector<8x48xf32>
    %467 = arith.truncf %466 : vector<8x48xf32> to vector<8x48xbf16>
    %cst_111 = arith.constant dense<0.000000e+00> : vector<8x128xf32>
    %468 = tpu.matmul %467, %0, %cst_111 {dimension_numbers = #tpu.dot_dimension_numbers<[1], [0], [0], [1], [0, 0, 1, 1], [], []>} : vector<8x48xbf16>, vector<48x128xbf16>, vector<8x128xf32> -> vector<8x128xf32>
    %469 = arith.addf %468, %6 : vector<8x128xf32>
    %470 = vector.extract_strided_slice %469 {offsets = [0, 0], sizes = [8, 32], strides = [1, 1]} : vector<8x128xf32> to vector<8x32xf32>
    %471 = arith.negf %470 : vector<8x32xf32>
    %472 = math.exp %471 : vector<8x32xf32>
    %cst_112 = arith.constant 1.000000e+00 : f32
    %473 = vector.broadcast %cst_112 : f32 to vector<8x32xf32>
    %474 = arith.addf %473, %472 : vector<8x32xf32>
    %475 = arith.divf %473, %474 : vector<8x32xf32>
    %476 = vector.extract_strided_slice %469 {offsets = [0, 32], sizes = [8, 32], strides = [1, 1]} : vector<8x128xf32> to vector<8x32xf32>
    %477 = arith.negf %476 : vector<8x32xf32>
    %478 = math.exp %477 : vector<8x32xf32>
    %cst_113 = arith.constant 1.000000e+00 : f32
    %479 = vector.broadcast %cst_113 : f32 to vector<8x32xf32>
    %480 = arith.addf %479, %478 : vector<8x32xf32>
    %481 = arith.divf %479, %480 : vector<8x32xf32>
    %482 = vector.extract_strided_slice %469 {offsets = [0, 64], sizes = [8, 32], strides = [1, 1]} : vector<8x128xf32> to vector<8x32xf32>
    %483 = arith.negf %482 : vector<8x32xf32>
    %484 = math.exp %483 : vector<8x32xf32>
    %cst_114 = arith.constant 1.000000e+00 : f32
    %485 = vector.broadcast %cst_114 : f32 to vector<8x32xf32>
    %486 = arith.addf %485, %484 : vector<8x32xf32>
    %487 = arith.divf %485, %486 : vector<8x32xf32>
    %488 = vector.extract_strided_slice %469 {offsets = [0, 96], sizes = [8, 32], strides = [1, 1]} : vector<8x128xf32> to vector<8x32xf32>
    %489 = math.tanh %488 : vector<8x32xf32>
    %490 = arith.mulf %475, %465 : vector<8x32xf32>
    %491 = arith.mulf %481, %489 : vector<8x32xf32>
    %492 = arith.addf %490, %491 : vector<8x32xf32>
    %493 = math.tanh %492 : vector<8x32xf32>
    %494 = arith.mulf %487, %493 : vector<8x32xf32>
    %495 = arith.truncf %447 : vector<8x32xf32> to vector<8x32xbf16>
    %cst_115 = arith.constant dense<0.000000e+00> : vector<8x32xf32>
    %496 = tpu.matmul %495, %3, %cst_115 {dimension_numbers = #tpu.dot_dimension_numbers<[1], [0], [0], [1], [0, 0, 1, 1], [], []>} : vector<8x32xbf16>, vector<32x32xbf16>, vector<8x32xf32> -> vector<8x32xf32>
    %497 = arith.addf %496, %15 : vector<8x32xf32>
    %498 = arith.negf %497 : vector<8x32xf32>
    %499 = math.exp %498 : vector<8x32xf32>
    %cst_116 = arith.constant 1.000000e+00 : f32
    %500 = vector.broadcast %cst_116 : f32 to vector<8x32xf32>
    %501 = arith.addf %500, %499 : vector<8x32xf32>
    %502 = arith.divf %500, %501 : vector<8x32xf32>
    %503 = arith.subf %447, %502 : vector<8x32xf32>
    %504 = vector.broadcast %453 : vector<8x1xf32> to vector<8x32xf32>
    %505 = arith.mulf %502, %504 : vector<8x32xf32>
    %506 = arith.addf %503, %505 : vector<8x32xf32>
    %507 = tpu.concatenate %494, %449 in 1 : vector<8x32xf32>, vector<8x32xf32> -> vector<8x64xf32>
    %508 = arith.truncf %507 : vector<8x64xf32> to vector<8x64xbf16>
    %cst_117 = arith.constant dense<0.000000e+00> : vector<8x128xf32>
    %509 = tpu.matmul %508, %2, %cst_117 {dimension_numbers = #tpu.dot_dimension_numbers<[1], [0], [0], [1], [0, 0, 1, 1], [], []>} : vector<8x64xbf16>, vector<64x128xbf16>, vector<8x128xf32> -> vector<8x128xf32>
    %510 = arith.addf %509, %12 : vector<8x128xf32>
    %511 = vector.extract_strided_slice %510 {offsets = [0, 0], sizes = [8, 32], strides = [1, 1]} : vector<8x128xf32> to vector<8x32xf32>
    %512 = arith.negf %511 : vector<8x32xf32>
    %513 = math.exp %512 : vector<8x32xf32>
    %cst_118 = arith.constant 1.000000e+00 : f32
    %514 = vector.broadcast %cst_118 : f32 to vector<8x32xf32>
    %515 = arith.addf %514, %513 : vector<8x32xf32>
    %516 = arith.divf %514, %515 : vector<8x32xf32>
    %517 = vector.extract_strided_slice %510 {offsets = [0, 32], sizes = [8, 32], strides = [1, 1]} : vector<8x128xf32> to vector<8x32xf32>
    %518 = arith.negf %517 : vector<8x32xf32>
    %519 = math.exp %518 : vector<8x32xf32>
    %cst_119 = arith.constant 1.000000e+00 : f32
    %520 = vector.broadcast %cst_119 : f32 to vector<8x32xf32>
    %521 = arith.addf %520, %519 : vector<8x32xf32>
    %522 = arith.divf %520, %521 : vector<8x32xf32>
    %523 = vector.extract_strided_slice %510 {offsets = [0, 64], sizes = [8, 32], strides = [1, 1]} : vector<8x128xf32> to vector<8x32xf32>
    %524 = arith.negf %523 : vector<8x32xf32>
    %525 = math.exp %524 : vector<8x32xf32>
    %cst_120 = arith.constant 1.000000e+00 : f32
    %526 = vector.broadcast %cst_120 : f32 to vector<8x32xf32>
    %527 = arith.addf %526, %525 : vector<8x32xf32>
    %528 = arith.divf %526, %527 : vector<8x32xf32>
    %529 = vector.extract_strided_slice %510 {offsets = [0, 96], sizes = [8, 32], strides = [1, 1]} : vector<8x128xf32> to vector<8x32xf32>
    %530 = math.tanh %529 : vector<8x32xf32>
    %531 = arith.mulf %516, %506 : vector<8x32xf32>
    %532 = arith.mulf %522, %530 : vector<8x32xf32>
    %533 = arith.addf %531, %532 : vector<8x32xf32>
    %534 = math.tanh %533 : vector<8x32xf32>
    %535 = arith.mulf %528, %534 : vector<8x32xf32>
    %c6 = arith.constant 6 : index
    %c0_121 = arith.constant 0 : index
    %c0_122 = arith.constant 0 : index
    %536 = vector.load %arg1[%c6, %c0_121, %c0_122] : memref<8x8x16xf32, #tpu.memory_space<vmem>>, vector<1x8x16xf32>
    %537 = vector.shape_cast %536 : vector<1x8x16xf32> to vector<8x16xf32>
    %c6_123 = arith.constant 6 : index
    %c0_124 = arith.constant 0 : index
    %c0_125 = arith.constant 0 : index
    %538 = vector.load %arg2[%c6_123, %c0_124, %c0_125] : memref<8x8x1xf32, #tpu.memory_space<vmem>>, vector<1x8x1xf32>
    %539 = vector.shape_cast %538 : vector<1x8x1xf32> to vector<8x1xf32>
    %540 = arith.truncf %492 : vector<8x32xf32> to vector<8x32xbf16>
    %cst_126 = arith.constant dense<0.000000e+00> : vector<8x32xf32>
    %541 = tpu.matmul %540, %1, %cst_126 {dimension_numbers = #tpu.dot_dimension_numbers<[1], [0], [0], [1], [0, 0, 1, 1], [], []>} : vector<8x32xbf16>, vector<32x32xbf16>, vector<8x32xf32> -> vector<8x32xf32>
    %542 = arith.addf %541, %9 : vector<8x32xf32>
    %543 = arith.negf %542 : vector<8x32xf32>
    %544 = math.exp %543 : vector<8x32xf32>
    %cst_127 = arith.constant 1.000000e+00 : f32
    %545 = vector.broadcast %cst_127 : f32 to vector<8x32xf32>
    %546 = arith.addf %545, %544 : vector<8x32xf32>
    %547 = arith.divf %545, %546 : vector<8x32xf32>
    %548 = arith.subf %492, %547 : vector<8x32xf32>
    %549 = vector.broadcast %539 : vector<8x1xf32> to vector<8x32xf32>
    %550 = arith.mulf %547, %549 : vector<8x32xf32>
    %551 = arith.addf %548, %550 : vector<8x32xf32>
    %552 = tpu.concatenate %537, %494 in 1 : vector<8x16xf32>, vector<8x32xf32> -> vector<8x48xf32>
    %553 = arith.truncf %552 : vector<8x48xf32> to vector<8x48xbf16>
    %cst_128 = arith.constant dense<0.000000e+00> : vector<8x128xf32>
    %554 = tpu.matmul %553, %0, %cst_128 {dimension_numbers = #tpu.dot_dimension_numbers<[1], [0], [0], [1], [0, 0, 1, 1], [], []>} : vector<8x48xbf16>, vector<48x128xbf16>, vector<8x128xf32> -> vector<8x128xf32>
    %555 = arith.addf %554, %6 : vector<8x128xf32>
    %556 = vector.extract_strided_slice %555 {offsets = [0, 0], sizes = [8, 32], strides = [1, 1]} : vector<8x128xf32> to vector<8x32xf32>
    %557 = arith.negf %556 : vector<8x32xf32>
    %558 = math.exp %557 : vector<8x32xf32>
    %cst_129 = arith.constant 1.000000e+00 : f32
    %559 = vector.broadcast %cst_129 : f32 to vector<8x32xf32>
    %560 = arith.addf %559, %558 : vector<8x32xf32>
    %561 = arith.divf %559, %560 : vector<8x32xf32>
    %562 = vector.extract_strided_slice %555 {offsets = [0, 32], sizes = [8, 32], strides = [1, 1]} : vector<8x128xf32> to vector<8x32xf32>
    %563 = arith.negf %562 : vector<8x32xf32>
    %564 = math.exp %563 : vector<8x32xf32>
    %cst_130 = arith.constant 1.000000e+00 : f32
    %565 = vector.broadcast %cst_130 : f32 to vector<8x32xf32>
    %566 = arith.addf %565, %564 : vector<8x32xf32>
    %567 = arith.divf %565, %566 : vector<8x32xf32>
    %568 = vector.extract_strided_slice %555 {offsets = [0, 64], sizes = [8, 32], strides = [1, 1]} : vector<8x128xf32> to vector<8x32xf32>
    %569 = arith.negf %568 : vector<8x32xf32>
    %570 = math.exp %569 : vector<8x32xf32>
    %cst_131 = arith.constant 1.000000e+00 : f32
    %571 = vector.broadcast %cst_131 : f32 to vector<8x32xf32>
    %572 = arith.addf %571, %570 : vector<8x32xf32>
    %573 = arith.divf %571, %572 : vector<8x32xf32>
    %574 = vector.extract_strided_slice %555 {offsets = [0, 96], sizes = [8, 32], strides = [1, 1]} : vector<8x128xf32> to vector<8x32xf32>
    %575 = math.tanh %574 : vector<8x32xf32>
    %576 = arith.mulf %561, %551 : vector<8x32xf32>
    %577 = arith.mulf %567, %575 : vector<8x32xf32>
    %578 = arith.addf %576, %577 : vector<8x32xf32>
    %579 = math.tanh %578 : vector<8x32xf32>
    %580 = arith.mulf %573, %579 : vector<8x32xf32>
    %581 = arith.truncf %533 : vector<8x32xf32> to vector<8x32xbf16>
    %cst_132 = arith.constant dense<0.000000e+00> : vector<8x32xf32>
    %582 = tpu.matmul %581, %3, %cst_132 {dimension_numbers = #tpu.dot_dimension_numbers<[1], [0], [0], [1], [0, 0, 1, 1], [], []>} : vector<8x32xbf16>, vector<32x32xbf16>, vector<8x32xf32> -> vector<8x32xf32>
    %583 = arith.addf %582, %15 : vector<8x32xf32>
    %584 = arith.negf %583 : vector<8x32xf32>
    %585 = math.exp %584 : vector<8x32xf32>
    %cst_133 = arith.constant 1.000000e+00 : f32
    %586 = vector.broadcast %cst_133 : f32 to vector<8x32xf32>
    %587 = arith.addf %586, %585 : vector<8x32xf32>
    %588 = arith.divf %586, %587 : vector<8x32xf32>
    %589 = arith.subf %533, %588 : vector<8x32xf32>
    %590 = vector.broadcast %539 : vector<8x1xf32> to vector<8x32xf32>
    %591 = arith.mulf %588, %590 : vector<8x32xf32>
    %592 = arith.addf %589, %591 : vector<8x32xf32>
    %593 = tpu.concatenate %580, %535 in 1 : vector<8x32xf32>, vector<8x32xf32> -> vector<8x64xf32>
    %594 = arith.truncf %593 : vector<8x64xf32> to vector<8x64xbf16>
    %cst_134 = arith.constant dense<0.000000e+00> : vector<8x128xf32>
    %595 = tpu.matmul %594, %2, %cst_134 {dimension_numbers = #tpu.dot_dimension_numbers<[1], [0], [0], [1], [0, 0, 1, 1], [], []>} : vector<8x64xbf16>, vector<64x128xbf16>, vector<8x128xf32> -> vector<8x128xf32>
    %596 = arith.addf %595, %12 : vector<8x128xf32>
    %597 = vector.extract_strided_slice %596 {offsets = [0, 0], sizes = [8, 32], strides = [1, 1]} : vector<8x128xf32> to vector<8x32xf32>
    %598 = arith.negf %597 : vector<8x32xf32>
    %599 = math.exp %598 : vector<8x32xf32>
    %cst_135 = arith.constant 1.000000e+00 : f32
    %600 = vector.broadcast %cst_135 : f32 to vector<8x32xf32>
    %601 = arith.addf %600, %599 : vector<8x32xf32>
    %602 = arith.divf %600, %601 : vector<8x32xf32>
    %603 = vector.extract_strided_slice %596 {offsets = [0, 32], sizes = [8, 32], strides = [1, 1]} : vector<8x128xf32> to vector<8x32xf32>
    %604 = arith.negf %603 : vector<8x32xf32>
    %605 = math.exp %604 : vector<8x32xf32>
    %cst_136 = arith.constant 1.000000e+00 : f32
    %606 = vector.broadcast %cst_136 : f32 to vector<8x32xf32>
    %607 = arith.addf %606, %605 : vector<8x32xf32>
    %608 = arith.divf %606, %607 : vector<8x32xf32>
    %609 = vector.extract_strided_slice %596 {offsets = [0, 64], sizes = [8, 32], strides = [1, 1]} : vector<8x128xf32> to vector<8x32xf32>
    %610 = arith.negf %609 : vector<8x32xf32>
    %611 = math.exp %610 : vector<8x32xf32>
    %cst_137 = arith.constant 1.000000e+00 : f32
    %612 = vector.broadcast %cst_137 : f32 to vector<8x32xf32>
    %613 = arith.addf %612, %611 : vector<8x32xf32>
    %614 = arith.divf %612, %613 : vector<8x32xf32>
    %615 = vector.extract_strided_slice %596 {offsets = [0, 96], sizes = [8, 32], strides = [1, 1]} : vector<8x128xf32> to vector<8x32xf32>
    %616 = math.tanh %615 : vector<8x32xf32>
    %617 = arith.mulf %602, %592 : vector<8x32xf32>
    %618 = arith.mulf %608, %616 : vector<8x32xf32>
    %619 = arith.addf %617, %618 : vector<8x32xf32>
    %620 = math.tanh %619 : vector<8x32xf32>
    %621 = arith.mulf %614, %620 : vector<8x32xf32>
    %c7 = arith.constant 7 : index
    %c0_138 = arith.constant 0 : index
    %c0_139 = arith.constant 0 : index
    %622 = vector.load %arg1[%c7, %c0_138, %c0_139] : memref<8x8x16xf32, #tpu.memory_space<vmem>>, vector<1x8x16xf32>
    %623 = vector.shape_cast %622 : vector<1x8x16xf32> to vector<8x16xf32>
    %c7_140 = arith.constant 7 : index
    %c0_141 = arith.constant 0 : index
    %c0_142 = arith.constant 0 : index
    %624 = vector.load %arg2[%c7_140, %c0_141, %c0_142] : memref<8x8x1xf32, #tpu.memory_space<vmem>>, vector<1x8x1xf32>
    %625 = vector.shape_cast %624 : vector<1x8x1xf32> to vector<8x1xf32>
    %626 = arith.truncf %578 : vector<8x32xf32> to vector<8x32xbf16>
    %cst_143 = arith.constant dense<0.000000e+00> : vector<8x32xf32>
    %627 = tpu.matmul %626, %1, %cst_143 {dimension_numbers = #tpu.dot_dimension_numbers<[1], [0], [0], [1], [0, 0, 1, 1], [], []>} : vector<8x32xbf16>, vector<32x32xbf16>, vector<8x32xf32> -> vector<8x32xf32>
    %628 = arith.addf %627, %9 : vector<8x32xf32>
    %629 = arith.negf %628 : vector<8x32xf32>
    %630 = math.exp %629 : vector<8x32xf32>
    %cst_144 = arith.constant 1.000000e+00 : f32
    %631 = vector.broadcast %cst_144 : f32 to vector<8x32xf32>
    %632 = arith.addf %631, %630 : vector<8x32xf32>
    %633 = arith.divf %631, %632 : vector<8x32xf32>
    %634 = arith.subf %578, %633 : vector<8x32xf32>
    %635 = vector.broadcast %625 : vector<8x1xf32> to vector<8x32xf32>
    %636 = arith.mulf %633, %635 : vector<8x32xf32>
    %637 = arith.addf %634, %636 : vector<8x32xf32>
    %638 = tpu.concatenate %623, %580 in 1 : vector<8x16xf32>, vector<8x32xf32> -> vector<8x48xf32>
    %639 = arith.truncf %638 : vector<8x48xf32> to vector<8x48xbf16>
    %cst_145 = arith.constant dense<0.000000e+00> : vector<8x128xf32>
    %640 = tpu.matmul %639, %0, %cst_145 {dimension_numbers = #tpu.dot_dimension_numbers<[1], [0], [0], [1], [0, 0, 1, 1], [], []>} : vector<8x48xbf16>, vector<48x128xbf16>, vector<8x128xf32> -> vector<8x128xf32>
    %641 = arith.addf %640, %6 : vector<8x128xf32>
    %642 = vector.extract_strided_slice %641 {offsets = [0, 0], sizes = [8, 32], strides = [1, 1]} : vector<8x128xf32> to vector<8x32xf32>
    %643 = arith.negf %642 : vector<8x32xf32>
    %644 = math.exp %643 : vector<8x32xf32>
    %cst_146 = arith.constant 1.000000e+00 : f32
    %645 = vector.broadcast %cst_146 : f32 to vector<8x32xf32>
    %646 = arith.addf %645, %644 : vector<8x32xf32>
    %647 = arith.divf %645, %646 : vector<8x32xf32>
    %648 = vector.extract_strided_slice %641 {offsets = [0, 32], sizes = [8, 32], strides = [1, 1]} : vector<8x128xf32> to vector<8x32xf32>
    %649 = arith.negf %648 : vector<8x32xf32>
    %650 = math.exp %649 : vector<8x32xf32>
    %cst_147 = arith.constant 1.000000e+00 : f32
    %651 = vector.broadcast %cst_147 : f32 to vector<8x32xf32>
    %652 = arith.addf %651, %650 : vector<8x32xf32>
    %653 = arith.divf %651, %652 : vector<8x32xf32>
    %654 = vector.extract_strided_slice %641 {offsets = [0, 64], sizes = [8, 32], strides = [1, 1]} : vector<8x128xf32> to vector<8x32xf32>
    %655 = arith.negf %654 : vector<8x32xf32>
    %656 = math.exp %655 : vector<8x32xf32>
    %cst_148 = arith.constant 1.000000e+00 : f32
    %657 = vector.broadcast %cst_148 : f32 to vector<8x32xf32>
    %658 = arith.addf %657, %656 : vector<8x32xf32>
    %659 = arith.divf %657, %658 : vector<8x32xf32>
    %660 = vector.extract_strided_slice %641 {offsets = [0, 96], sizes = [8, 32], strides = [1, 1]} : vector<8x128xf32> to vector<8x32xf32>
    %661 = math.tanh %660 : vector<8x32xf32>
    %662 = arith.mulf %647, %637 : vector<8x32xf32>
    %663 = arith.mulf %653, %661 : vector<8x32xf32>
    %664 = arith.addf %662, %663 : vector<8x32xf32>
    %665 = math.tanh %664 : vector<8x32xf32>
    %666 = arith.mulf %659, %665 : vector<8x32xf32>
    %667 = arith.truncf %619 : vector<8x32xf32> to vector<8x32xbf16>
    %cst_149 = arith.constant dense<0.000000e+00> : vector<8x32xf32>
    %668 = tpu.matmul %667, %3, %cst_149 {dimension_numbers = #tpu.dot_dimension_numbers<[1], [0], [0], [1], [0, 0, 1, 1], [], []>} : vector<8x32xbf16>, vector<32x32xbf16>, vector<8x32xf32> -> vector<8x32xf32>
    %669 = arith.addf %668, %15 : vector<8x32xf32>
    %670 = arith.negf %669 : vector<8x32xf32>
    %671 = math.exp %670 : vector<8x32xf32>
    %cst_150 = arith.constant 1.000000e+00 : f32
    %672 = vector.broadcast %cst_150 : f32 to vector<8x32xf32>
    %673 = arith.addf %672, %671 : vector<8x32xf32>
    %674 = arith.divf %672, %673 : vector<8x32xf32>
    %675 = arith.subf %619, %674 : vector<8x32xf32>
    %676 = vector.broadcast %625 : vector<8x1xf32> to vector<8x32xf32>
    %677 = arith.mulf %674, %676 : vector<8x32xf32>
    %678 = arith.addf %675, %677 : vector<8x32xf32>
    %679 = tpu.concatenate %666, %621 in 1 : vector<8x32xf32>, vector<8x32xf32> -> vector<8x64xf32>
    %680 = arith.truncf %679 : vector<8x64xf32> to vector<8x64xbf16>
    %cst_151 = arith.constant dense<0.000000e+00> : vector<8x128xf32>
    %681 = tpu.matmul %680, %2, %cst_151 {dimension_numbers = #tpu.dot_dimension_numbers<[1], [0], [0], [1], [0, 0, 1, 1], [], []>} : vector<8x64xbf16>, vector<64x128xbf16>, vector<8x128xf32> -> vector<8x128xf32>
    %682 = arith.addf %681, %12 : vector<8x128xf32>
    %683 = vector.extract_strided_slice %682 {offsets = [0, 0], sizes = [8, 32], strides = [1, 1]} : vector<8x128xf32> to vector<8x32xf32>
    %684 = arith.negf %683 : vector<8x32xf32>
    %685 = math.exp %684 : vector<8x32xf32>
    %cst_152 = arith.constant 1.000000e+00 : f32
    %686 = vector.broadcast %cst_152 : f32 to vector<8x32xf32>
    %687 = arith.addf %686, %685 : vector<8x32xf32>
    %688 = arith.divf %686, %687 : vector<8x32xf32>
    %689 = vector.extract_strided_slice %682 {offsets = [0, 32], sizes = [8, 32], strides = [1, 1]} : vector<8x128xf32> to vector<8x32xf32>
    %690 = arith.negf %689 : vector<8x32xf32>
    %691 = math.exp %690 : vector<8x32xf32>
    %cst_153 = arith.constant 1.000000e+00 : f32
    %692 = vector.broadcast %cst_153 : f32 to vector<8x32xf32>
    %693 = arith.addf %692, %691 : vector<8x32xf32>
    %694 = arith.divf %692, %693 : vector<8x32xf32>
    %695 = vector.extract_strided_slice %682 {offsets = [0, 64], sizes = [8, 32], strides = [1, 1]} : vector<8x128xf32> to vector<8x32xf32>
    %696 = arith.negf %695 : vector<8x32xf32>
    %697 = math.exp %696 : vector<8x32xf32>
    %cst_154 = arith.constant 1.000000e+00 : f32
    %698 = vector.broadcast %cst_154 : f32 to vector<8x32xf32>
    %699 = arith.addf %698, %697 : vector<8x32xf32>
    %700 = arith.divf %698, %699 : vector<8x32xf32>
    %701 = vector.extract_strided_slice %682 {offsets = [0, 96], sizes = [8, 32], strides = [1, 1]} : vector<8x128xf32> to vector<8x32xf32>
    %702 = math.tanh %701 : vector<8x32xf32>
    %703 = arith.mulf %688, %678 : vector<8x32xf32>
    %704 = arith.mulf %694, %702 : vector<8x32xf32>
    %705 = arith.addf %703, %704 : vector<8x32xf32>
    %706 = math.tanh %705 : vector<8x32xf32>
    %707 = arith.mulf %700, %706 : vector<8x32xf32>
    %c0_155 = arith.constant 0 : index
    %c0_156 = arith.constant 0 : index
    %708 = vector.load %arg11[%c0_155, %c0_156] : memref<8x32xf32, #tpu.memory_space<vmem>>, vector<8x32xf32>
    tpu.vector_store %arg11[%c0_155, %c0_156], %707 {strides = array<i32>} : memref<8x32xf32, #tpu.memory_space<vmem>>, vector<8x32xf32>,
    %c0_157 = arith.constant 0 : index
    %c0_158 = arith.constant 0 : index
    %709 = vector.load %arg12[%c0_157, %c0_158] : memref<8x32xf32, #tpu.memory_space<vmem>>, vector<8x32xf32>
    tpu.vector_store %arg12[%c0_157, %c0_158], %705 {strides = array<i32>} : memref<8x32xf32, #tpu.memory_space<vmem>>, vector<8x32xf32>,
    return
  }
  func.func @transform_0(%arg0: i32) -> (i32, i32, i32) {
    %c0_i32 = arith.constant 0 : i32
    %c0_i32_0 = arith.constant 0 : i32
    %c0_i32_1 = arith.constant 0 : i32
    %c0_i32_2 = arith.constant 0 : i32
    return %c0_i32, %c0_i32_0, %c0_i32_1 : i32, i32, i32
  }
  func.func @transform_1(%arg0: i32) -> (i32, i32, i32) {
    %c0_i32 = arith.constant 0 : i32
    %c0_i32_0 = arith.constant 0 : i32
    %c0_i32_1 = arith.constant 0 : i32
    %c0_i32_2 = arith.constant 0 : i32
    return %c0_i32, %c0_i32_0, %c0_i32_1 : i32, i32, i32
  }
  func.func @transform_2(%arg0: i32) -> (i32, i32) {
    %c0_i32 = arith.constant 0 : i32
    %c0_i32_0 = arith.constant 0 : i32
    %c0_i32_1 = arith.constant 0 : i32
    return %c0_i32, %c0_i32_0 : i32, i32
  }
  func.func @transform_3(%arg0: i32) -> (i32, i32) {
    %c0_i32 = arith.constant 0 : i32
    %c0_i32_0 = arith.constant 0 : i32
    %c0_i32_1 = arith.constant 0 : i32
    return %c0_i32, %c0_i32_0 : i32, i32
  }
  func.func @transform_4(%arg0: i32) -> (i32, i32) {
    %c0_i32 = arith.constant 0 : i32
    %c0_i32_0 = arith.constant 0 : i32
    %c0_i32_1 = arith.constant 0 : i32
    return %c0_i32, %c0_i32_0 : i32, i32
  }
  func.func @transform_5(%arg0: i32) -> (i32, i32) {
    %c0_i32 = arith.constant 0 : i32
    %c0_i32_0 = arith.constant 0 : i32
    %c0_i32_1 = arith.constant 0 : i32
    return %c0_i32, %c0_i32_0 : i32, i32
  }
  func.func @transform_6(%arg0: i32) -> (i32, i32) {
    %c0_i32 = arith.constant 0 : i32
    %c0_i32_0 = arith.constant 0 : i32
    %c0_i32_1 = arith.constant 0 : i32
    return %c0_i32, %c0_i32_0 : i32, i32
  }
  func.func @transform_7(%arg0: i32) -> (i32, i32) {
    %c0_i32 = arith.constant 0 : i32
    %c0_i32_0 = arith.constant 0 : i32
    %c0_i32_1 = arith.constant 0 : i32
    return %c0_i32, %c0_i32_0 : i32, i32
  }
  func.func @transform_8(%arg0: i32) -> (i32, i32) {
    %c0_i32 = arith.constant 0 : i32
    %c0_i32_0 = arith.constant 0 : i32
    %c0_i32_1 = arith.constant 0 : i32
    return %c0_i32, %c0_i32_0 : i32, i32
  }
  func.func @transform_9(%arg0: i32) -> (i32, i32) {
    %c0_i32 = arith.constant 0 : i32
    %c0_i32_0 = arith.constant 0 : i32
    %c0_i32_1 = arith.constant 0 : i32
    return %c0_i32, %c0_i32_0 : i32, i32
  }
  func.func @transform_10(%arg0: i32) -> (i32, i32) {
    %c0_i32 = arith.constant 0 : i32
    %c0_i32_0 = arith.constant 0 : i32
    %c0_i32_1 = arith.constant 0 : i32
    return %c0_i32, %c0_i32_0 : i32, i32
  }
  func.func @transform_11(%arg0: i32) -> (i32, i32) {
    %c0_i32 = arith.constant 0 : i32
    %c0_i32_0 = arith.constant 0 : i32
    %c0_i32_1 = arith.constant 0 : i32
    return %c0_i32, %c0_i32_0 : i32, i32
  }
}

</mosaic_0001>

<bundles_post_ra>
// kernel: tpu_custom_call.1
= control target key start
LH: loop header
LB: loop body
LE: loop exit
PB: predicated region body
PF: predicated region fallthrough
CT: control target
= control target key end

     0   :  { %17 = vsyncpa [#allocation3], 0  ;;  %s4008_s0 = inlined_call_operand.vmem [shape: f32[8,8,16], index: 0, kind: input, shape index: {}]   ;;  %s4009_s1 = inlined_call_operand.vmem [shape: f32[8,8,1], index: 1, kind: input, shape index: {}]   ;;  %s4010_s2 = inlined_call_operand.hbm [shape: bf16[48,128], index: 2, kind: input, shape index: {}]   ;;  %s4011_s3 = inlined_call_operand.vmem [shape: f32[1,128], index: 3, kind: input, shape index: {}]   ;;  %s4012_s4 = inlined_call_operand.hbm [shape: bf16[32,32], index: 4, kind: input, shape index: {}]   ;;  %s4013_s5 = inlined_call_operand.hbm [shape: f32[1,32], index: 5, kind: input, shape index: {}]   ;;  %s4014_s6 = inlined_call_operand.hbm [shape: bf16[64,128], index: 6, kind: input, shape index: {}]   ;;  %s4015_s7 = inlined_call_operand.vmem [shape: f32[1,128], index: 7, kind: input, shape index: {}]   ;;  %s4016_s8 = inlined_call_operand.vmem [shape: bf16[32,32], index: 8, kind: input, shape index: {}]   ;;  %s4017_s9 = inlined_call_operand.vmem [shape: f32[1,32], index: 9, kind: input, shape index: {}]   ;;  %s4018_s10 = inlined_call_operand.hbm [shape: f32[8,32], index: 10, kind: output, shape index: {0}]   ;;  %s4019_s11 = inlined_call_operand.hbm [shape: f32[8,32], index: 11, kind: output, shape index: {1}]  }
   0x1   :  { %18 = vsyncpa [#allocation6], 0 }
   0x2   :  { %19 = vsyncpa [#allocation9], 0 }
   0x3   :  { %20 = vsyncpa [#allocation4], 0 }
   0x4   :  { %21 = vsyncpa [#allocation12], 0  ;;  %s3226_s17 = smov [#allocation5]   ;;  %s3227_s19 = smov [#allocation2]  }
   0x5   :  { %s45_s18 = sshll.u32 %s3226_s17, 4  ;;  %s31_s20 = sshll.u32 %s3227_s19, 4  ;;  %s46_s18 = int_to_ptr.vmem [resolvable:$true] %s45_s18  ;;  %s32_s20 = int_to_ptr.vmem [resolvable:$true] %s31_s20 }
   0x6   :  { %s3104_s21 = scalar_lea.vmem %s46_s18, 256  ;;  %p3109_p1 = scmp.lt.s32.totalorder %s46_s18, %s46_s18 }
   0x7   :  { %p3105_p0 = scmp.ne.s32.totalorder %s46_s18, %s3104_s21  ;;  %p3110_p2 = scmp.lt.s32.totalorder %s3104_s21, %s3104_s21 }
   0x9   :  { %p3111_p3 = por %p3110_p2, %p3109_p1 }
   0xb   :  { %p3112_p4 = pnand %p3111_p3, %p3105_p0 }
   0xd   :  { %3115 = shalt.err (!%p3112_p4)
}
   0xe   :  { %s3228_s22 = smov 64   ;;  %s3229_s23 = smov 4  }
   0xf   :  { %51 = dma.hbm_to_vmem [thread:$0]  %s4012_s4, 256, %s46_s18, [#allocation6], %s3228_s22, %s3228_s22, %s3229_s23  }
  0x10   :  { %s3124_s26 = scalar_lea.vmem %s32_s20, 384  ;;  %p3129_p6 = scmp.lt.s32.totalorder %s32_s20, %s32_s20 }
  0x11   :  { %p3125_p5 = scmp.ne.s32.totalorder %s32_s20, %s3124_s26  ;;  %p3130_p7 = scmp.lt.s32.totalorder %s3124_s26, %s3124_s26 }
  0x13   :  { %p3131_p8 = por %p3130_p7, %p3129_p6 }
  0x15   :  { %p3132_p9 = pnand %p3131_p8, %p3125_p5 }
  0x17   :  { %3135 = shalt.err (!%p3132_p9)
}
  0x18   :  { %37 = dma.hbm_to_vmem [thread:$0]  %s4010_s2, 384, %s32_s20, [#allocation3], %s3228_s22, %s3228_s22, %s3229_s23  }
  0x19   :  { %s3230_s29 = smov [#allocation7]   ;;  %s3231_s12 = smov [#allocation8]  }
  0x1a   :  { %s58_s30 = sshll.u32 %s3230_s29, 4  ;;  %s67_s13 = sshll.u32 %s3231_s12, 4  ;;  %s59_s30 = int_to_ptr.vmem [resolvable:$true] %s58_s30  ;;  %s68_s13 = int_to_ptr.vmem [resolvable:$true] %s67_s13 }
  0x1b   :  { %s3144_s4 = scalar_lea.vmem %s59_s30, 16  ;;  %s3148_s14 = scalar_lea.vmem %s59_s30, 32 }
  0x1c   :  { %p3145_p10 = scmp.ne.s32.totalorder %s59_s30, %s3144_s4  ;;  %p3149_p11 = scmp.lt.s32.totalorder %s59_s30, %s59_s30 }
  0x1d   :  { %p3150_p12 = scmp.lt.s32.totalorder %s3148_s14, %s3144_s4 }
  0x1f   :  { %p3151_p13 = por %p3150_p12, %p3149_p11 }
  0x21   :  { %p3152_p0 = pnand %p3151_p13, %p3145_p10 }
  0x23   :  { %3155 = shalt.err (!%p3152_p0)
}
  0x24   :  { %61 = dma.hbm_to_vmem [thread:$0]  %s4013_s5, 16, %s59_s30, [#allocation6]  }
  0x25   :  { %s3164_s17 = scalar_lea.vmem %s68_s13, 512  ;;  %p3169_p2 = scmp.lt.s32.totalorder %s68_s13, %s68_s13 }
  0x26   :  { %p3165_p1 = scmp.ne.s32.totalorder %s68_s13, %s3164_s17  ;;  %p3170_p3 = scmp.lt.s32.totalorder %s3164_s17, %s3164_s17 }
  0x28   :  { %p3171_p4 = por %p3170_p3, %p3169_p2 }
  0x2a   :  { %p3172_p5 = pnand %p3171_p4, %p3165_p1 }
  0x2c   :  { %3175 = shalt.err (!%p3172_p5)
}
  0x2d   :  { %73 = dma.hbm_to_vmem [thread:$0]  %s4014_s6, 512, %s68_s13, [#allocation9], %s3228_s22, %s3228_s22, %s3229_s23  }
  0x2e   :  { %3216 = dma.done.wait [#allocation3], 384  }
  0x2f   :  { %3217 = vsyncadd [#allocation3], 4294966912 }
  0x30   :  { %3218 = dma.done.wait [#allocation6], 272  }
  0x31   :  { %3219 = vsyncadd [#allocation6], 4294967024 }
  0x32   :  { %3220 = dma.done.wait [#allocation9], 512  }
  0x33   :  { %3221 = vsyncadd [#allocation9], 4294966784  ;;  %v3232_v0 = vmov 0.0   ;;  %vm3233_vm0 = vmmov 0   ;;  %v3234_v1 = vmov 0   ;;  %v3326_v2 = vld [vmem:[#allocation5 + $0x8] sm:$0xff]  }
  0x34   :  { %2559 = vmatprep.subr.bf16.mxu1 %v3232_v0  ;;  %2563 = vmatprep.mubr.msk.bf16.mxu1 %vm3233_vm0, %v3232_v0  ;;  %v3329_v3 = vld [vmem:[#allocation5] sm:$0xff]   ;;  %v3333_v4 = vld [vmem:[#allocation2 + $0x10] sm:$0xff]   ;;  %v3337_v5 = vld [vmem:[#allocation2 + $0x8] sm:$0xff]   ;;  %vm215_vm1 = vcmask 130048   ;;  %vm236_vm2 = vcmask 392192   ;;  %s3235_s28 = smov 96  }
  0x35   :  { %2577 = vmatprep.subr.bf16.mxu0 %v3232_v0  ;;  %2581 = vmatprep.mubr.msk.bf16.mxu0 %vm3233_vm0, %v3232_v0  ;;  %v143_v6 = vld [vmem:[%s4008_s0] sm:$0xff]  ;;  %v3358_v10 = vld [vmem:[%s4016_s8 + $0x8] sm:$0xff]   ;;  %vm157_vm3 = vcmask 261120   ;;  %v3416_v51 = vld [vmem:[#allocation8 + $0x8] sm:$0xff]   ;;  %s3236_s29 = smov 80   ;;  %vm395_vm4 = vcmask 523264  }
  0x36   :  { %2876 = vset.pattern.permute.xlu0 %v3234_v1  ;;  %2877 = vset.pattern.permute.xlu1 %v3234_v1  ;;  %v3346_v7 = vld [vmem:[#allocation2] sm:$0xff]   ;;  %v216_v8 = vsel %vm215_vm1, %v143_v6, 0.0  ;;  %v3388_v34 = vld [vmem:[#allocation7] ss:$0 sm:$0xff]  ;;  %v3421_v52 = vld [vmem:[#allocation8] sm:$0xff]  }
  0x37   :  { %2560 = vmatpush3.bf16.msra.mxu1 %v3326_v2  ;;  %v217_v9 = vpack.c.bf16 %v216_v8, %v216_v8  ;;  %2578 = vmatpush3.bf16.msra.mxu0 %v3358_v10  ;;  %v3365_v11 = vld [vmem:[%s4016_s8] sm:$0xff]   ;;  %v2369_v59 = vld [vmem:[%s4008_s0 + $0x8] sm:$0xff] }
  0x38   :  { %2561 = vmatprep.subr.bf16.mxu1 %v3232_v0  ;;  %2579 = vmatprep.subr.bf16.mxu0 %v3232_v0  ;;  %v3378_v16 = vld [vmem:[%s4011_s3] ss:$0 sm:$0xff]  ;;  %v3409_v49 = vld [vmem:[#allocation8 + $0x18] sm:$0xff]  }
  0x39   :  { %v144_v23 = vld [vmem:[%s4009_s1] sm:$0xff] }
  0x3a   :  { %v3412_v50 = vld [vmem:[#allocation8 + $0x10] sm:$0xff]  }
  0x3b   :  { %2562 = vmatpush3.bf16.msra.mxu1 %v3329_v3  ;;  %2580 = vmatpush3.bf16.msra.mxu0 %v3365_v11  ;;  %v3455_v8 = vld [vmem:[%s4015_s7] ss:$0 sm:$0xff] }
  0x3c   :  { %2567 = vmatprep.subr.bf16.mxu1 %v3232_v0  ;;  %2597 = vmatprep.subr.bf16.mxu0 %v3232_v0 }
  0x3e   :  { %2564 = vmatmul.mubr.bf16.vlgmr.msra.gmra.mxu1 %v3234_v1  ;;  %2582 = vmatmul.mubr.bf16.vlgmr.msra.gmra.mxu0 %v3234_v1 }
  0x3f   :  { %2568 = vmatpush3.bf16.msra.mxu1 %v3333_v4  ;;  %2573 = vmatprep.mubr.msk.bf16.mxu1 %vm3233_vm0, %v3232_v0 }
  0x40   :  { %2569 = vmatprep.subr.bf16.mxu1 %v3232_v0  ;;  %2598 = vmatpush3.bf16.msra.mxu0 %v3326_v2 }
  0x41   :  { %2601 = vmatprep.mubr.msk.bf16.mxu0 %vm3233_vm0, %v3232_v0  ;;  %2599 = vmatprep.subr.bf16.mxu0 %v3232_v0 }
  0x43   :  { %2570 = vmatpush3.bf16.msra.mxu1 %v3337_v5 }
  0x44   :  { %2571 = vmatprep.subr.bf16.mxu1 %v3232_v0  ;;  %2600 = vmatpush3.bf16.msra.mxu0 %v3329_v3 }
  0x45   :  { %2605 = vmatprep.subr.bf16.mxu0 %v3232_v0 }
  0x47   :  { %2572 = vmatpush3.bf16.msra.mxu1 %v3346_v7 }
  0x48   :  { %2585 = vmatprep.subr.bf16.mxu1 %v3232_v0 }
  0x4a   :  { %2574 = vmatmul.mubr.msk.bf16.vlgmr.msra.gmra.mxu1 %vm236_vm2, %v217_v9 }
  0x4b   :  { %2593 = vmatprep.mubr.msk.bf16.mxu1 %vm3233_vm0, %v3232_v0  ;;  %2586 = vmatpush3.bf16.msra.mxu1 %v3409_v49 }
  0x4c   :  { %2587 = vmatprep.subr.bf16.mxu1 %v3232_v0 }
  0x4f   :  { %2588 = vmatpush3.bf16.msra.mxu1 %v3412_v50 }
  0x50   :  { %2589 = vmatprep.subr.bf16.mxu1 %v3232_v0 }
  0x53   :  { %2590 = vmatpush3.bf16.msra.mxu1 %v3416_v51 }
  0x54   :  { %2591 = vmatprep.subr.bf16.mxu1 %v3232_v0 }
  0x57   :  { %2592 = vmatpush3.bf16.msra.mxu1 %v3421_v52 }
  0x58   :  { %2615 = vmatprep.subr.bf16.mxu1 %v3232_v0 }
  0xfe   :  { %v195_v12 = vpop.f32.mrf.mxu1  ;;  %v3385_v24 = vpop.f32.mrf.mxu0 }
  0xff   :  { %v196_v35 = vadd.f32 %v3388_v34, %v195_v12 }
 0x100   :  { %v2565_v13 = vpop.f32.mrf.mxu1  ;;  %v2583_v25 = vpop.f32.mrf.mxu0 }
 0x101   :  { %v2354_v36 = vmul.f32 -1.442695, %v196_v35  ;;  %v2370_v25 = vld [vmem:[%s4009_s1 + $0x8] sm:$0xff] }
 0x102   :  { %v198_v14 = vpop.f32.mrf.mxu1  ;;  %v353_v26 = vpop.f32.mrf.mxu0 }
 0x104   :  { %v2566_v15 = vpop.f32.mrf.mxu1  ;;  %v2584_v27 = vpop.f32.mrf.mxu0 }
 0x10a   :  { %v274_v17 = vpop.f32.mrf.mxu1 }
 0x10b   :  { %v275_v18 = vadd.f32 %v3378_v16, %v274_v17 }
 0x10c   :  { %v2575_v19 = vpop.f32.mrf.mxu1 }
 0x10d   :  { %2889 = vtanh.f32 %v275_v18  ;;  %v2359_v28 = vmul.f32 -1.442695, %v275_v18 }
 0x10e   :  { %v277_v20 = vpop.f32.mrf.mxu1 }
 0x10f   :  { %2891 = vpow2.f32 %v2359_v28 }
 0x110   :  { %v2576_v21 = vpop.f32.mrf.mxu1 }
 0x11a   :  { %v2890_v22 = vpop.eup %2889 }
 0x11b   :  { %289 = vrot.lane.b32.xlu0 %v2890_v22, %s3228_s22 }
 0x11c   :  { %v2892_v29 = vpop.eup %2891 }
 0x11d   :  { %v283_v30 = vadd.f32 1.0, %v2892_v29 }
 0x11f   :  { %210 = vperm.xlu0 %2876, %v144_v23   ;;  %2893 = vrcp.f32 %v283_v30 }
 0x120   :  { %2895 = vpow2.f32 %v2354_v36 }
 0x12c   :  { %v2894_v31 = vpop.eup %2893 }
 0x12d   :  { %v2896_v37 = vpop.eup %2895 }
 0x12e   :  { %v204_v38 = vadd.f32 1.0, %v2896_v37 }
 0x130   :  { %2897 = vrcp.f32 %v204_v38 }
 0x13d   :  { %v2898_v40 = vpop.eup %2897 }
 0x13e   :  { %v207_v42 = vsub.f32 0.0, %v2898_v40 }
 0x18d   :  { %v290_v32 = vpop.permute.xlu0 %289 }
 0x18e   :  { %v292_v33 = vmul.f32 %v2894_v31, %v290_v32 }
 0x190   :  { %294 = vrot.lane.b32.xlu1 %v292_v33, %s3235_s28 }
 0x19a   :  { %v3391_v39 = vpop.permute.xlu0 %210 }
 0x19b   :  { %v213_v41 = vmul.f32 %v2898_v40, %v3391_v39  ;;  %v3469_v40 = vld [vmem:[%s4017_s9] ss:$0 sm:$0xff] }
 0x19d   :  { %v214_v43 = vadd.f32 %v213_v41, %v207_v42  ;;  %v351_v41 = vadd.f32 %v3469_v40, %v3385_v24 }
 0x19f   :  { %v287_v44 = vmul.f32 %v2894_v31, %v214_v43  ;;  %v2362_v43 = vmul.f32 -1.442695, %v351_v41 }
 0x202   :  { %v295_v45 = vpop.permute.xlu1 %294 }
 0x203   :  { %v3394_v46 = vadd.f32 %v295_v45, %v287_v44 }
 0x205   :  { %2899 = vtanh.f32 %v3394_v46  ;;  %v467_v47 = vpack.c.bf16 %v3394_v46, %v3394_v46 }
 0x207   :  { %2602 = vmatmul.mubr.msk.bf16.vlgmr.msra.gmra.mxu0 %vm157_vm3, %v467_v47 }
 0x208   :  { %2606 = vmatpush3.bf16.msra.mxu0 %v3333_v4  ;;  %2611 = vmatprep.mubr.msk.bf16.mxu0 %vm3233_vm0, %v3232_v0 }
 0x209   :  { %2607 = vmatprep.subr.bf16.mxu0 %v3232_v0 }
 0x20c   :  { %2608 = vmatpush3.bf16.msra.mxu0 %v3337_v5 }
 0x20d   :  { %2609 = vmatprep.subr.bf16.mxu0 %v3232_v0 }
 0x210   :  { %2610 = vmatpush3.bf16.msra.mxu0 %v3346_v7 }
 0x211   :  { %2623 = vmatprep.subr.bf16.mxu0 %v3232_v0 }
 0x212   :  { %v2900_v48 = vpop.eup %2899 }
 0x213   :  { %300 = vrot.lane.b32.xlu1 %v2900_v48, %s3228_s22 }
 0x285   :  { %v301_v53 = vpop.permute.xlu1 %300 }
 0x286   :  { %v303_v54 = vmul.f32 %v2894_v31, %v301_v53 }
 0x288   :  { %525 = vrot.lane.b32.xlu0 %v303_v54, %s3236_s29  ;;  %366 = vrot.lane.b32.xlu1 %v303_v54, %s3228_s22 }
 0x2c7   :  { %v3427_v55 = vpop.f32.mrf.mxu0 }
 0x2c8   :  { %v506_v42 = vadd.f32 %v3388_v34, %v3427_v55 }
 0x2c9   :  { %v2603_v56 = vpop.f32.mrf.mxu0 }
 0x2ca   :  { %v2372_v44 = vmul.f32 -1.442695, %v506_v42 }
 0x2cb   :  { %v508_v57 = vpop.f32.mrf.mxu0 }
 0x2cd   :  { %v2604_v58 = vpop.f32.mrf.mxu0 }
 0x2fa   :  { %v526_v60 = vpop.permute.xlu0 %525  ;;  %v367_v61 = vpop.permute.xlu1 %366 }
 0x2fb   :  { %v528_v62 = vsel %vm215_vm1, %v2369_v59, %v526_v60  ;;  %v369_v63 = vsel %vm157_vm3, %v367_v61, 0.0 }
 0x2fc   :  { %v529_v1 = vpack.c.bf16 %v528_v62, %v528_v62  ;;  %v370_v6 = vpack.c.bf16 %v369_v63, %v369_v63 }
 0x2fe   :  { %2594 = vmatmul.mubr.msk.bf16.vlgmr.msra.gmra.mxu1 %vm395_vm4, %v370_v6  ;;  %2612 = vmatmul.mubr.msk.bf16.vlgmr.msra.gmra.mxu0 %vm236_vm2, %v529_v1 }
 0x2ff   :  { %2616 = vmatpush3.bf16.msra.mxu1 %v3358_v10  ;;  %2619 = vmatprep.mubr.msk.bf16.mxu1 %vm3233_vm0, %v3232_v0 }
 0x300   :  { %2617 = vmatprep.subr.bf16.mxu1 %v3232_v0  ;;  %2624 = vmatpush3.bf16.msra.mxu0 %v3409_v49 }
 0x301   :  { %2625 = vmatprep.subr.bf16.mxu0 %v3232_v0  ;;  %2631 = vmatprep.mubr.msk.bf16.mxu0 %vm3233_vm0, %v3232_v0 }
 0x303   :  { %2618 = vmatpush3.bf16.msra.mxu1 %v3365_v11 }
 0x304   :  { %2635 = vmatprep.subr.bf16.mxu1 %v3232_v0  ;;  %2626 = vmatpush3.bf16.msra.mxu0 %v3412_v50 }
 0x305   :  { %2627 = vmatprep.subr.bf16.mxu0 %v3232_v0 }
 0x308   :  { %2628 = vmatpush3.bf16.msra.mxu0 %v3416_v51 }
 0x309   :  { %2629 = vmatprep.subr.bf16.mxu0 %v3232_v0 }
 0x30c   :  { %2630 = vmatpush3.bf16.msra.mxu0 %v3421_v52 }
 0x30d   :  { %2653 = vmatprep.subr.bf16.mxu0 %v3232_v0 }
 0x3be   :  { %v433_v9 = vpop.f32.mrf.mxu1  ;;  %v567_v12 = vpop.f32.mrf.mxu0 }
 0x3bf   :  { %v434_v13 = vadd.f32 %v3455_v8, %v433_v9  ;;  %v568_v14 = vadd.f32 %v3378_v16, %v567_v12 }
 0x3c0   :  { %v2595_v15 = vpop.f32.mrf.mxu1  ;;  %v2613_v17 = vpop.f32.mrf.mxu0 }
 0x3c1   :  { %2901 = vtanh.f32 %v434_v13  ;;  %v2368_v26 = vmul.f32 -1.442695, %v434_v13  ;;  %v2374_v27 = vmul.f32 -1.442695, %v568_v14 }
 0x3c2   :  { %2903 = vtanh.f32 %v568_v14  ;;  %v436_v18 = vpop.f32.mrf.mxu1  ;;  %v570_v19 = vpop.f32.mrf.mxu0 }
 0x3c3   :  { %2905 = vpow2.f32 %v2368_v26 }
 0x3c4   :  { %v2596_v20 = vpop.f32.mrf.mxu1  ;;  %v2614_v21 = vpop.f32.mrf.mxu0  ;;  %2907 = vpow2.f32 %v2374_v27 }
 0x3ce   :  { %v2902_v22 = vpop.eup %2901 }
 0x3cf   :  { %v2904_v23 = vpop.eup %2903  ;;  %448 = vrot.lane.b32.xlu1 %v2902_v22, %s3228_s22 }
 0x3d0   :  { %582 = vrot.lane.b32.xlu0 %v2904_v23, %s3228_s22  ;;  %v2906_v28 = vpop.eup %2905 }
 0x3d1   :  { %v2908_v29 = vpop.eup %2907  ;;  %v442_v30 = vadd.f32 1.0, %v2906_v28 }
 0x3d2   :  { %v576_v31 = vadd.f32 1.0, %v2908_v29 }
 0x3d3   :  { %520 = vperm.xlu1 %2877, %v2370_v25   ;;  %2909 = vrcp.f32 %v442_v30 }
 0x3d4   :  { %2911 = vrcp.f32 %v576_v31 }
 0x3d5   :  { %2913 = vpow2.f32 %v2362_v43 }
 0x3d6   :  { %2915 = vpow2.f32 %v2372_v44 }
 0x3e0   :  { %v2910_v32 = vpop.eup %2909 }
 0x3e1   :  { %v2912_v35 = vpop.eup %2911 }
 0x3e2   :  { %v2914_v45 = vpop.eup %2913 }
 0x3e3   :  { %v2916_v47 = vpop.eup %2915  ;;  %v359_v48 = vadd.f32 1.0, %v2914_v45 }
 0x3e4   :  { %v514_v53 = vadd.f32 1.0, %v2916_v47 }
 0x3e5   :  { %2917 = vrcp.f32 %v359_v48 }
 0x3e6   :  { %2919 = vrcp.f32 %v514_v53 }
 0x3f2   :  { %v2918_v56 = vpop.eup %2917 }
 0x3f3   :  { %v2920_v57 = vpop.eup %2919  ;;  %v362_v24 = vsub.f32 0.0, %v2918_v56  ;;  %v363_v59 = vmul.f32 %v2918_v56, %v3391_v39 }
 0x3f4   :  { %v517_v55 = vsub.f32 %v3394_v46, %v2920_v57 }
 0x3f5   :  { %v364_v61 = vadd.f32 %v363_v59, %v362_v24 }
 0x3f7   :  { %v446_v62 = vmul.f32 %v2910_v32, %v364_v61 }
 0x441   :  { %v449_v33 = vpop.permute.xlu1 %448 }
 0x442   :  { %v583_v36 = vpop.permute.xlu0 %582  ;;  %v451_v37 = vmul.f32 %v2910_v32, %v449_v33  ;;  %v2379_v33 = vld [vmem:[%s4008_s0 + $0x10] sm:$0xff] }
 0x443   :  { %v585_v38 = vmul.f32 %v2912_v35, %v583_v36 }
 0x444   :  { %453 = vrot.lane.b32.xlu0 %v451_v37, %s3235_s28 }
 0x445   :  { %587 = vrot.lane.b32.xlu1 %v585_v38, %s3235_s28 }
 0x44e   :  { %v3475_v54 = vpop.permute.xlu1 %520 }
 0x44f   :  { %v523_v58 = vmul.f32 %v2920_v57, %v3475_v54 }
 0x451   :  { %v524_v60 = vadd.f32 %v523_v58, %v517_v55  ;;  %v2380_v58 = vld [vmem:[%s4009_s1 + $0x10] sm:$0xff] }
 0x453   :  { %v580_v63 = vmul.f32 %v2912_v35, %v524_v60 }
 0x4b6   :  { %v454_v1 = vpop.permute.xlu0 %453 }
 0x4b7   :  { %v588_v6 = vpop.permute.xlu1 %587  ;;  %v3480_v9 = vadd.f32 %v454_v1, %v446_v62 }
 0x4b8   :  { %v3482_v12 = vadd.f32 %v588_v6, %v580_v63 }
 0x4b9   :  { %2921 = vtanh.f32 %v3480_v9  ;;  %v597_v13 = vpack.c.bf16 %v3480_v9, %v3480_v9 }
 0x4ba   :  { %2923 = vtanh.f32 %v3482_v12  ;;  %v731_v39 = vpack.c.bf16 %v3482_v12, %v3482_v12 }
 0x4bb   :  { %2620 = vmatmul.mubr.msk.bf16.vlgmr.msra.gmra.mxu1 %vm157_vm3, %v597_v13 }
 0x4bc   :  { %2636 = vmatpush3.bf16.msra.mxu1 %v3326_v2  ;;  %2639 = vmatprep.mubr.msk.bf16.mxu1 %vm3233_vm0, %v3232_v0 }
 0x4bd   :  { %2637 = vmatprep.subr.bf16.mxu1 %v3232_v0 }
 0x4c0   :  { %2638 = vmatpush3.bf16.msra.mxu1 %v3329_v3 }
 0x4c1   :  { %2643 = vmatprep.subr.bf16.mxu1 %v3232_v0 }
 0x4c3   :  { %2640 = vmatmul.mubr.msk.bf16.vlgmr.msra.gmra.mxu1 %vm157_vm3, %v731_v39 }
 0x4c4   :  { %2644 = vmatpush3.bf16.msra.mxu1 %v3333_v4  ;;  %2649 = vmatprep.mubr.msk.bf16.mxu1 %vm3233_vm0, %v3232_v0 }
 0x4c5   :  { %2645 = vmatprep.subr.bf16.mxu1 %v3232_v0 }
 0x4c6   :  { %v2922_v46 = vpop.eup %2921 }
 0x4c7   :  { %v2924_v14 = vpop.eup %2923  ;;  %459 = vrot.lane.b32.xlu0 %v2922_v46, %s3228_s22 }
 0x4c8   :  { %593 = vrot.lane.b32.xlu1 %v2924_v14, %s3228_s22  ;;  %2646 = vmatpush3.bf16.msra.mxu1 %v3337_v5 }
 0x4c9   :  { %2647 = vmatprep.subr.bf16.mxu1 %v3232_v0 }
 0x4cc   :  { %2648 = vmatpush3.bf16.msra.mxu1 %v3346_v7 }
 0x4cd   :  { %2661 = vmatprep.subr.bf16.mxu1 %v3232_v0 }
 0x539   :  { %v460_v15 = vpop.permute.xlu0 %459 }
 0x53a   :  { %v594_v17 = vpop.permute.xlu1 %593  ;;  %v462_v18 = vmul.f32 %v2910_v32, %v460_v15 }
 0x53b   :  { %v596_v19 = vmul.f32 %v2912_v35, %v594_v17 }
 0x53c   :  { %655 = vrot.lane.b32.xlu1 %v462_v18, %s3235_s28 }
 0x53d   :  { %651 = vrot.lane.b32.xlu0 %v596_v19, %s3228_s22 }
 0x541   :  { %789 = vrot.lane.b32.xlu0 %v596_v19, %s3236_s29 }
 0x57b   :  { %v3511_v20 = vpop.f32.mrf.mxu1 }
 0x57c   :  { %v636_v15 = vadd.f32 %v3469_v40, %v3511_v20 }
 0x57d   :  { %v2621_v21 = vpop.f32.mrf.mxu1 }
 0x57e   :  { %v2376_v17 = vmul.f32 -1.442695, %v636_v15 }
 0x57f   :  { %v638_v22 = vpop.f32.mrf.mxu1 }
 0x581   :  { %v2622_v23 = vpop.f32.mrf.mxu1 }
 0x583   :  { %v3513_v25 = vpop.f32.mrf.mxu1 }
 0x584   :  { %v770_v18 = vadd.f32 %v3388_v34, %v3513_v25 }
 0x585   :  { %v2641_v26 = vpop.f32.mrf.mxu1 }
 0x586   :  { %v2382_v19 = vmul.f32 -1.442695, %v770_v18 }
 0x587   :  { %v772_v27 = vpop.f32.mrf.mxu1 }
 0x589   :  { %v2642_v28 = vpop.f32.mrf.mxu1 }
 0x5ae   :  { %v656_v29 = vpop.permute.xlu1 %655 }
 0x5af   :  { %v652_v30 = vpop.permute.xlu0 %651 }
 0x5b0   :  { %v658_v31 = vsel %vm157_vm3, %v652_v30, %v656_v29 }
 0x5b1   :  { %v659_v32 = vpack.c.bf16 %v658_v31, %v658_v31 }
 0x5b3   :  { %2632 = vmatmul.mubr.msk.bf16.vlgmr.msra.gmra.mxu0 %vm395_vm4, %v659_v32  ;;  %v790_v35 = vpop.permute.xlu0 %789 }
 0x5b4   :  { %v792_v36 = vsel %vm215_vm1, %v2379_v33, %v790_v35  ;;  %2654 = vmatpush3.bf16.msra.mxu0 %v3358_v10  ;;  %2657 = vmatprep.mubr.msk.bf16.mxu0 %vm3233_vm0, %v3232_v0 }
 0x5b5   :  { %v793_v37 = vpack.c.bf16 %v792_v36, %v792_v36  ;;  %2655 = vmatprep.subr.bf16.mxu0 %v3232_v0 }
 0x5b7   :  { %2650 = vmatmul.mubr.msk.bf16.vlgmr.msra.gmra.mxu1 %vm236_vm2, %v793_v37 }
 0x5b8   :  { %2656 = vmatpush3.bf16.msra.mxu0 %v3365_v11  ;;  %2662 = vmatpush3.bf16.msra.mxu1 %v3409_v49 }
 0x5b9   :  { %2673 = vmatprep.subr.bf16.mxu0 %v3232_v0  ;;  %2663 = vmatprep.subr.bf16.mxu1 %v3232_v0 }
 0x5ba   :  { %2669 = vmatprep.mubr.msk.bf16.mxu1 %vm3233_vm0, %v3232_v0 }
 0x5bc   :  { %2664 = vmatpush3.bf16.msra.mxu1 %v3412_v50 }
 0x5bd   :  { %2665 = vmatprep.subr.bf16.mxu1 %v3232_v0 }
 0x5c0   :  { %2666 = vmatpush3.bf16.msra.mxu1 %v3416_v51 }
 0x5c1   :  { %2667 = vmatprep.subr.bf16.mxu1 %v3232_v0 }
 0x5c4   :  { %2668 = vmatpush3.bf16.msra.mxu1 %v3421_v52 }
 0x5c5   :  { %2691 = vmatprep.subr.bf16.mxu1 %v3232_v0 }
 0x673   :  { %v697_v38 = vpop.f32.mrf.mxu0 }
 0x674   :  { %v698_v41 = vadd.f32 %v3455_v8, %v697_v38 }
 0x675   :  { %v2633_v42 = vpop.f32.mrf.mxu0 }
 0x676   :  { %2925 = vtanh.f32 %v698_v41  ;;  %v2378_v59 = vmul.f32 -1.442695, %v698_v41 }
 0x677   :  { %v700_v43 = vpop.f32.mrf.mxu0  ;;  %v831_v44 = vpop.f32.mrf.mxu1 }
 0x678   :  { %v832_v45 = vadd.f32 %v3378_v16, %v831_v44 }
 0x679   :  { %v2634_v47 = vpop.f32.mrf.mxu0  ;;  %v2651_v48 = vpop.f32.mrf.mxu1 }
 0x67a   :  { %2927 = vtanh.f32 %v832_v45  ;;  %v2384_v55 = vmul.f32 -1.442695, %v832_v45 }
 0x67b   :  { %v834_v53 = vpop.f32.mrf.mxu1  ;;  %2929 = vpow2.f32 %v2378_v59 }
 0x67c   :  { %2931 = vpow2.f32 %v2384_v55 }
 0x67d   :  { %v2652_v56 = vpop.f32.mrf.mxu1 }
 0x683   :  { %v2926_v57 = vpop.eup %2925 }
 0x684   :  { %712 = vrot.lane.b32.xlu1 %v2926_v57, %s3228_s22 }
 0x687   :  { %v2928_v24 = vpop.eup %2927 }
 0x688   :  { %784 = vperm.xlu1 %2877, %v2380_v58   ;;  %846 = vrot.lane.b32.xlu0 %v2928_v24, %s3228_s22  ;;  %v2930_v60 = vpop.eup %2929 }
 0x689   :  { %v706_v61 = vadd.f32 1.0, %v2930_v60  ;;  %v2932_v62 = vpop.eup %2931 }
 0x68a   :  { %v840_v63 = vadd.f32 1.0, %v2932_v62 }
 0x68b   :  { %2933 = vrcp.f32 %v706_v61 }
 0x68c   :  { %2935 = vrcp.f32 %v840_v63 }
 0x68d   :  { %2937 = vpow2.f32 %v2376_v17 }
 0x68e   :  { %2939 = vpow2.f32 %v2382_v19 }
 0x698   :  { %v2934_v1 = vpop.eup %2933 }
 0x699   :  { %v2936_v39 = vpop.eup %2935 }
 0x69a   :  { %v2938_v21 = vpop.eup %2937 }
 0x69b   :  { %v644_v22 = vadd.f32 1.0, %v2938_v21  ;;  %v2940_v23 = vpop.eup %2939 }
 0x69c   :  { %v778_v26 = vadd.f32 1.0, %v2940_v23 }
 0x69d   :  { %2941 = vrcp.f32 %v644_v22 }
 0x69e   :  { %2943 = vrcp.f32 %v778_v26 }
 0x6aa   :  { %v2942_v27 = vpop.eup %2941 }
 0x6ab   :  { %v647_v29 = vsub.f32 %v3480_v9, %v2942_v27  ;;  %v648_v20 = vmul.f32 %v2942_v27, %v3475_v54  ;;  %v2944_v30 = vpop.eup %2943 }
 0x6ac   :  { %v781_v25 = vsub.f32 %v3482_v12, %v2944_v30 }
 0x6ad   :  { %v649_v32 = vadd.f32 %v648_v20, %v647_v29  ;;  %v2390_v20 = vld [vmem:[%s4009_s1 + $0x18] sm:$0xff] }
 0x6af   :  { %v710_v35 = vmul.f32 %v2934_v1, %v649_v32 }
 0x6f6   :  { %v713_v6 = vpop.permute.xlu1 %712 }
 0x6f7   :  { %v715_v13 = vmul.f32 %v2934_v1, %v713_v6  ;;  %v2389_v6 = vld [vmem:[%s4008_s0 + $0x18] sm:$0xff] }
 0x6f9   :  { %717 = vrot.lane.b32.xlu0 %v715_v13, %s3235_s28 }
 0x6fa   :  { %v847_v46 = vpop.permute.xlu0 %846 }
 0x6fb   :  { %v849_v14 = vmul.f32 %v2936_v39, %v847_v46 }
 0x6fd   :  { %851 = vrot.lane.b32.xlu1 %v849_v14, %s3235_s28 }
 0x703   :  { %v3551_v28 = vpop.permute.xlu1 %784 }
 0x704   :  { %v787_v31 = vmul.f32 %v2944_v30, %v3551_v28 }
 0x706   :  { %v788_v33 = vadd.f32 %v787_v31, %v781_v25 }
 0x708   :  { %v844_v41 = vmul.f32 %v2936_v39, %v788_v33 }
 0x76b   :  { %v718_v36 = vpop.permute.xlu0 %717 }
 0x76c   :  { %v3557_v37 = vadd.f32 %v718_v36, %v710_v35 }
 0x76e   :  { %2945 = vtanh.f32 %v3557_v37  ;;  %v861_v38 = vpack.c.bf16 %v3557_v37, %v3557_v37 }
 0x76f   :  { %v852_v9 = vpop.permute.xlu1 %851 }
 0x770   :  { %v3562_v42 = vadd.f32 %v852_v9, %v844_v41  ;;  %2658 = vmatmul.mubr.msk.bf16.vlgmr.msra.gmra.mxu0 %vm157_vm3, %v861_v38 }
 0x771   :  { %2674 = vmatpush3.bf16.msra.mxu0 %v3326_v2  ;;  %2677 = vmatprep.mubr.msk.bf16.mxu0 %vm3233_vm0, %v3232_v0 }
 0x772   :  { %2947 = vtanh.f32 %v3562_v42  ;;  %2675 = vmatprep.subr.bf16.mxu0 %v3232_v0  ;;  %v995_v54 = vpack.c.bf16 %v3562_v42, %v3562_v42 }
 0x775   :  { %2676 = vmatpush3.bf16.msra.mxu0 %v3329_v3 }
 0x776   :  { %2681 = vmatprep.subr.bf16.mxu0 %v3232_v0 }
 0x778   :  { %2678 = vmatmul.mubr.msk.bf16.vlgmr.msra.gmra.mxu0 %vm157_vm3, %v995_v54 }
 0x779   :  { %2682 = vmatpush3.bf16.msra.mxu0 %v3333_v4  ;;  %2687 = vmatprep.mubr.msk.bf16.mxu0 %vm3233_vm0, %v3232_v0 }
 0x77a   :  { %2683 = vmatprep.subr.bf16.mxu0 %v3232_v0 }
 0x77b   :  { %v2946_v12 = vpop.eup %2945 }
 0x77c   :  { %723 = vrot.lane.b32.xlu0 %v2946_v12, %s3228_s22 }
 0x77d   :  { %2684 = vmatpush3.bf16.msra.mxu0 %v3337_v5 }
 0x77e   :  { %2685 = vmatprep.subr.bf16.mxu0 %v3232_v0 }
 0x77f   :  { %v2948_v43 = vpop.eup %2947 }
 0x780   :  { %857 = vrot.lane.b32.xlu1 %v2948_v43, %s3228_s22 }
 0x781   :  { %2686 = vmatpush3.bf16.msra.mxu0 %v3346_v7 }
 0x782   :  { %2699 = vmatprep.subr.bf16.mxu0 %v3232_v0 }
 0x7ee   :  { %v724_v44 = vpop.permute.xlu0 %723 }
 0x7ef   :  { %v726_v45 = vmul.f32 %v2934_v1, %v724_v44 }
 0x7f1   :  { %919 = vrot.lane.b32.xlu1 %v726_v45, %s3235_s28 }
 0x7f2   :  { %v858_v47 = vpop.permute.xlu1 %857 }
 0x7f3   :  { %v860_v48 = vmul.f32 %v2936_v39, %v858_v47 }
 0x7f5   :  { %915 = vrot.lane.b32.xlu0 %v860_v48, %s3228_s22 }
 0x7f9   :  { %1053 = vrot.lane.b32.xlu0 %v860_v48, %s3236_s29 }
 0x830   :  { %v3588_v53 = vpop.f32.mrf.mxu0 }
 0x831   :  { %v900_v44 = vadd.f32 %v3469_v40, %v3588_v53 }
 0x832   :  { %v2659_v56 = vpop.f32.mrf.mxu0 }
 0x833   :  { %v2386_v45 = vmul.f32 -1.442695, %v900_v44 }
 0x834   :  { %v902_v57 = vpop.f32.mrf.mxu0 }
 0x836   :  { %v2660_v58 = vpop.f32.mrf.mxu0 }
 0x838   :  { %v3590_v24 = vpop.f32.mrf.mxu0 }
 0x839   :  { %v1034_v47 = vadd.f32 %v3388_v34, %v3590_v24 }
 0x83a   :  { %v2679_v59 = vpop.f32.mrf.mxu0 }
 0x83b   :  { %v2392_v48 = vmul.f32 -1.442695, %v1034_v47 }
 0x83c   :  { %v1036_v55 = vpop.f32.mrf.mxu0 }
 0x83e   :  { %v2680_v60 = vpop.f32.mrf.mxu0 }
 0x863   :  { %v920_v61 = vpop.permute.xlu1 %919 }
 0x867   :  { %v916_v62 = vpop.permute.xlu0 %915 }
 0x868   :  { %v922_v63 = vsel %vm157_vm3, %v916_v62, %v920_v61 }
 0x869   :  { %v923_v1 = vpack.c.bf16 %v922_v63, %v922_v63 }
 0x86b   :  { %v1054_v13 = vpop.permute.xlu0 %1053  ;;  %2670 = vmatmul.mubr.msk.bf16.vlgmr.msra.gmra.mxu1 %vm395_vm4, %v923_v1 }
 0x86c   :  { %v1056_v39 = vsel %vm215_vm1, %v2389_v6, %v1054_v13  ;;  %2692 = vmatpush3.bf16.msra.mxu1 %v3358_v10  ;;  %2695 = vmatprep.mubr.msk.bf16.mxu1 %vm3233_vm0, %v3232_v0 }
 0x86d   :  { %v1057_v46 = vpack.c.bf16 %v1056_v39, %v1056_v39  ;;  %2693 = vmatprep.subr.bf16.mxu1 %v3232_v0 }
 0x86f   :  { %2688 = vmatmul.mubr.msk.bf16.vlgmr.msra.gmra.mxu0 %vm236_vm2, %v1057_v46 }
 0x870   :  { %2694 = vmatpush3.bf16.msra.mxu1 %v3365_v11  ;;  %2700 = vmatpush3.bf16.msra.mxu0 %v3409_v49 }
 0x871   :  { %2711 = vmatprep.subr.bf16.mxu1 %v3232_v0  ;;  %2701 = vmatprep.subr.bf16.mxu0 %v3232_v0 }
 0x872   :  { %2707 = vmatprep.mubr.msk.bf16.mxu0 %vm3233_vm0, %v3232_v0 }
 0x874   :  { %2702 = vmatpush3.bf16.msra.mxu0 %v3412_v50 }
 0x875   :  { %2703 = vmatprep.subr.bf16.mxu0 %v3232_v0 }
 0x878   :  { %2704 = vmatpush3.bf16.msra.mxu0 %v3416_v51 }
 0x879   :  { %2705 = vmatprep.subr.bf16.mxu0 %v3232_v0 }
 0x87c   :  { %2706 = vmatpush3.bf16.msra.mxu0 %v3421_v52 }
 0x87d   :  { %2729 = vmatprep.subr.bf16.mxu0 %v3232_v0 }
 0x92b   :  { %v961_v14 = vpop.f32.mrf.mxu1 }
 0x92c   :  { %v962_v15 = vadd.f32 %v3455_v8, %v961_v14 }
 0x92d   :  { %v2671_v17 = vpop.f32.mrf.mxu1 }
 0x92e   :  { %2949 = vtanh.f32 %v962_v15  ;;  %v2388_v31 = vmul.f32 -1.442695, %v962_v15 }
 0x92f   :  { %v964_v18 = vpop.f32.mrf.mxu1  ;;  %v1095_v19 = vpop.f32.mrf.mxu0 }
 0x930   :  { %v1096_v21 = vadd.f32 %v3378_v16, %v1095_v19 }
 0x931   :  { %v2672_v22 = vpop.f32.mrf.mxu1  ;;  %v2689_v23 = vpop.f32.mrf.mxu0 }
 0x932   :  { %2951 = vtanh.f32 %v1096_v21  ;;  %v2394_v25 = vmul.f32 -1.442695, %v1096_v21 }
 0x933   :  { %v1098_v26 = vpop.f32.mrf.mxu0  ;;  %2953 = vpow2.f32 %v2388_v31 }
 0x934   :  { %2955 = vpow2.f32 %v2394_v25 }
 0x935   :  { %v2690_v27 = vpop.f32.mrf.mxu0 }
 0x93b   :  { %v2950_v29 = vpop.eup %2949 }
 0x93c   :  { %976 = vrot.lane.b32.xlu1 %v2950_v29, %s3228_s22 }
 0x93f   :  { %v2952_v30 = vpop.eup %2951 }
 0x940   :  { %1110 = vrot.lane.b32.xlu0 %v2952_v30, %s3228_s22  ;;  %1048 = vperm.xlu1 %2877, %v2390_v20   ;;  %v2954_v32 = vpop.eup %2953 }
 0x941   :  { %v970_v33 = vadd.f32 1.0, %v2954_v32  ;;  %v2956_v35 = vpop.eup %2955  ;;  %v2399_v32 = vld [vmem:[%s4008_s0 + $0x20] sm:$0xff] }
 0x942   :  { %v1104_v36 = vadd.f32 1.0, %v2956_v35 }
 0x943   :  { %2957 = vrcp.f32 %v970_v33 }
 0x944   :  { %2959 = vrcp.f32 %v1104_v36 }
 0x945   :  { %2961 = vpow2.f32 %v2386_v45 }
 0x946   :  { %2963 = vpow2.f32 %v2392_v48 }
 0x950   :  { %v2958_v38 = vpop.eup %2957 }
 0x951   :  { %v2960_v54 = vpop.eup %2959 }
 0x952   :  { %v2962_v56 = vpop.eup %2961 }
 0x953   :  { %v908_v57 = vadd.f32 1.0, %v2962_v56  ;;  %v2964_v58 = vpop.eup %2963 }
 0x954   :  { %v1042_v59 = vadd.f32 1.0, %v2964_v58 }
 0x955   :  { %2965 = vrcp.f32 %v908_v57 }
 0x956   :  { %2967 = vrcp.f32 %v1042_v59 }
 0x962   :  { %v2966_v55 = vpop.eup %2965 }
 0x963   :  { %v911_v61 = vsub.f32 %v3557_v37, %v2966_v55  ;;  %v912_v53 = vmul.f32 %v2966_v55, %v3551_v28  ;;  %v2968_v62 = vpop.eup %2967 }
 0x964   :  { %v1045_v24 = vsub.f32 %v3562_v42, %v2968_v62 }
 0x965   :  { %v913_v1 = vadd.f32 %v912_v53, %v911_v61 }
 0x967   :  { %v974_v13 = vmul.f32 %v2958_v38, %v913_v1 }
 0x9ae   :  { %v977_v41 = vpop.permute.xlu1 %976 }
 0x9af   :  { %v979_v9 = vmul.f32 %v2958_v38, %v977_v41 }
 0x9b1   :  { %981 = vrot.lane.b32.xlu0 %v979_v9, %s3235_s28 }
 0x9b2   :  { %v1111_v12 = vpop.permute.xlu0 %1110 }
 0x9b3   :  { %v1113_v43 = vmul.f32 %v2960_v54, %v1111_v12 }
 0x9b5   :  { %1115 = vrot.lane.b32.xlu1 %v1113_v43, %s3235_s28 }
 0x9bb   :  { %v3628_v60 = vpop.permute.xlu1 %1048 }
 0x9bc   :  { %v1051_v63 = vmul.f32 %v2968_v62, %v3628_v60 }
 0x9be   :  { %v1052_v6 = vadd.f32 %v1051_v63, %v1045_v24 }
 0x9c0   :  { %v1108_v15 = vmul.f32 %v2960_v54, %v1052_v6 }
 0xa23   :  { %v982_v39 = vpop.permute.xlu0 %981 }
 0xa24   :  { %v3634_v46 = vadd.f32 %v982_v39, %v974_v13 }
 0xa26   :  { %2969 = vtanh.f32 %v3634_v46  ;;  %v1125_v14 = vpack.c.bf16 %v3634_v46, %v3634_v46 }
 0xa27   :  { %v1116_v37 = vpop.permute.xlu1 %1115 }
 0xa28   :  { %v3639_v17 = vadd.f32 %v1116_v37, %v1108_v15  ;;  %2696 = vmatmul.mubr.msk.bf16.vlgmr.msra.gmra.mxu1 %vm157_vm3, %v1125_v14 }
 0xa29   :  { %2712 = vmatpush3.bf16.msra.mxu1 %v3326_v2  ;;  %2715 = vmatprep.mubr.msk.bf16.mxu1 %vm3233_vm0, %v3232_v0 }
 0xa2a   :  { %2971 = vtanh.f32 %v3639_v17  ;;  %2713 = vmatprep.subr.bf16.mxu1 %v3232_v0  ;;  %v1259_v28 = vpack.c.bf16 %v3639_v17, %v3639_v17 }
 0xa2d   :  { %2714 = vmatpush3.bf16.msra.mxu1 %v3329_v3 }
 0xa2e   :  { %2719 = vmatprep.subr.bf16.mxu1 %v3232_v0 }
 0xa30   :  { %2716 = vmatmul.mubr.msk.bf16.vlgmr.msra.gmra.mxu1 %vm157_vm3, %v1259_v28 }
 0xa31   :  { %2720 = vmatpush3.bf16.msra.mxu1 %v3333_v4  ;;  %2725 = vmatprep.mubr.msk.bf16.mxu1 %vm3233_vm0, %v3232_v0 }
 0xa32   :  { %2721 = vmatprep.subr.bf16.mxu1 %v3232_v0 }
 0xa33   :  { %v2970_v2 = vpop.eup %2969 }
 0xa34   :  { %987 = vrot.lane.b32.xlu0 %v2970_v2, %s3228_s22 }
 0xa35   :  { %2722 = vmatpush3.bf16.msra.mxu1 %v3337_v5 }
 0xa36   :  { %2723 = vmatprep.subr.bf16.mxu1 %v3232_v0 }
 0xa37   :  { %v2972_v3 = vpop.eup %2971 }
 0xa38   :  { %1121 = vrot.lane.b32.xlu1 %v2972_v3, %s3228_s22 }
 0xa39   :  { %2724 = vmatpush3.bf16.msra.mxu1 %v3346_v7 }
 0xa3a   :  { %2737 = vmatprep.subr.bf16.mxu1 %v3232_v0 }
 0xaa6   :  { %v988_v4 = vpop.permute.xlu0 %987 }
 0xaa7   :  { %v990_v42 = vmul.f32 %v2958_v38, %v988_v4 }
 0xaa9   :  { %1183 = vrot.lane.b32.xlu1 %v990_v42, %s3235_s28 }
 0xaaa   :  { %v1122_v18 = vpop.permute.xlu1 %1121 }
 0xaab   :  { %v1124_v19 = vmul.f32 %v2960_v54, %v1122_v18 }
 0xaad   :  { %1179 = vrot.lane.b32.xlu0 %v1124_v19, %s3228_s22 }
 0xab1   :  { %1317 = vrot.lane.b32.xlu0 %v1124_v19, %s3236_s29 }
 0xae8   :  { %v3665_v5 = vpop.f32.mrf.mxu1 }
 0xae9   :  { %v1164_v63 = vadd.f32 %v3469_v40, %v3665_v5 }
 0xaea   :  { %v2697_v21 = vpop.f32.mrf.mxu1 }
 0xaeb   :  { %v2396_v24 = vmul.f32 -1.442695, %v1164_v63 }
 0xaec   :  { %v1166_v22 = vpop.f32.mrf.mxu1 }
 0xaee   :  { %v2698_v23 = vpop.f32.mrf.mxu1 }
 0xaf0   :  { %v3667_v26 = vpop.f32.mrf.mxu1 }
 0xaf1   :  { %v1298_v1 = vadd.f32 %v3388_v34, %v3667_v26 }
 0xaf2   :  { %v2717_v7 = vpop.f32.mrf.mxu1 }
 0xaf3   :  { %v2402_v6 = vmul.f32 -1.442695, %v1298_v1  ;;  %v3723_v7 = vld [vmem:[#allocation5 + $0x8] sm:$0xff]  }
 0xaf4   :  { %v1300_v27 = vpop.f32.mrf.mxu1  ;;  %v3806_v1 = vld [vmem:[%s4011_s3] ss:$0 sm:$0xff] }
 0xaf6   :  { %v2718_v29 = vpop.f32.mrf.mxu1 }
 0xaf7   :  { %v3737_v29 = vld [vmem:[#allocation2 + $0x10] sm:$0xff]  }
 0xb1b   :  { %v1184_v20 = vpop.permute.xlu1 %1183 }
 0xb1f   :  { %v1180_v30 = vpop.permute.xlu0 %1179 }
 0xb20   :  { %v1186_v31 = vsel %vm157_vm3, %v1180_v30, %v1184_v20  ;;  %v3744_v30 = vld [vmem:[#allocation2 + $0x8] sm:$0xff]  }
 0xb21   :  { %v1187_v25 = vpack.c.bf16 %v1186_v31, %v1186_v31 }
 0xb23   :  { %2708 = vmatmul.mubr.msk.bf16.vlgmr.msra.gmra.mxu0 %vm395_vm4, %v1187_v25  ;;  %v1318_v33 = vpop.permute.xlu0 %1317  ;;  %v3749_v25 = vld [vmem:[#allocation2] sm:$0xff]  }
 0xb24   :  { %v1320_v35 = vsel %vm215_vm1, %v2399_v32, %v1318_v33  ;;  %2730 = vmatpush3.bf16.msra.mxu0 %v3358_v10  ;;  %2733 = vmatprep.mubr.msk.bf16.mxu0 %vm3233_vm0, %v3232_v0 }
 0xb25   :  { %v1321_v36 = vpack.c.bf16 %v1320_v35, %v1320_v35  ;;  %2731 = vmatprep.subr.bf16.mxu0 %v3232_v0 }
 0xb27   :  { %2726 = vmatmul.mubr.msk.bf16.vlgmr.msra.gmra.mxu1 %vm236_vm2, %v1321_v36 }
 0xb28   :  { %2732 = vmatpush3.bf16.msra.mxu0 %v3365_v11  ;;  %2738 = vmatpush3.bf16.msra.mxu1 %v3409_v49 }
 0xb29   :  { %2749 = vmatprep.subr.bf16.mxu0 %v3232_v0  ;;  %2739 = vmatprep.subr.bf16.mxu1 %v3232_v0 }
 0xb2a   :  { %2745 = vmatprep.mubr.msk.bf16.mxu1 %vm3233_vm0, %v3232_v0 }
 0xb2c   :  { %2740 = vmatpush3.bf16.msra.mxu1 %v3412_v50 }
 0xb2d   :  { %2741 = vmatprep.subr.bf16.mxu1 %v3232_v0 }
 0xb30   :  { %2742 = vmatpush3.bf16.msra.mxu1 %v3416_v51 }
 0xb31   :  { %2743 = vmatprep.subr.bf16.mxu1 %v3232_v0 }
 0xb34   :  { %2744 = vmatpush3.bf16.msra.mxu1 %v3421_v52  ;;  %v2400_v52 = vld [vmem:[%s4009_s1 + $0x20] sm:$0xff] }
 0xb35   :  { %2767 = vmatprep.subr.bf16.mxu1 %v3232_v0 }
 0xbe3   :  { %v1225_v10 = vpop.f32.mrf.mxu0 }
 0xbe4   :  { %v1226_v11 = vadd.f32 %v3455_v8, %v1225_v10 }
 0xbe5   :  { %v2709_v49 = vpop.f32.mrf.mxu0 }
 0xbe6   :  { %2973 = vtanh.f32 %v1226_v11  ;;  %v2398_v45 = vmul.f32 -1.442695, %v1226_v11 }
 0xbe7   :  { %v1228_v38 = vpop.f32.mrf.mxu0  ;;  %v1359_v41 = vpop.f32.mrf.mxu1 }
 0xbe8   :  { %v1360_v9 = vadd.f32 %v3378_v16, %v1359_v41 }
 0xbe9   :  { %v2710_v50 = vpop.f32.mrf.mxu0  ;;  %v2727_v54 = vpop.f32.mrf.mxu1 }
 0xbea   :  { %2975 = vtanh.f32 %v1360_v9  ;;  %v2404_v47 = vmul.f32 -1.442695, %v1360_v9 }
 0xbeb   :  { %v1362_v12 = vpop.f32.mrf.mxu1  ;;  %2977 = vpow2.f32 %v2398_v45 }
 0xbec   :  { %2979 = vpow2.f32 %v2404_v47 }
 0xbed   :  { %v2728_v51 = vpop.f32.mrf.mxu1 }
 0xbf3   :  { %v2974_v43 = vpop.eup %2973 }
 0xbf4   :  { %1240 = vrot.lane.b32.xlu1 %v2974_v43, %s3228_s22 }
 0xbf7   :  { %v2976_v44 = vpop.eup %2975 }
 0xbf8   :  { %1312 = vperm.xlu1 %2877, %v2400_v52   ;;  %1374 = vrot.lane.b32.xlu0 %v2976_v44, %s3228_s22  ;;  %v2978_v16 = vpop.eup %2977  ;;  %v2409_v44 = vld [vmem:[%s4008_s0 + $0x28] sm:$0xff] }
 0xbf9   :  { %v1234_v48 = vadd.f32 1.0, %v2978_v16  ;;  %v2980_v56 = vpop.eup %2979  ;;  %v3770_v16 = vld [vmem:[%s4016_s8 + $0x8] sm:$0xff]  }
 0xbfa   :  { %v1368_v57 = vadd.f32 1.0, %v2980_v56  ;;  %v3780_v56 = vld [vmem:[%s4016_s8] sm:$0xff]  }
 0xbfb   :  { %2981 = vrcp.f32 %v1234_v48 }
 0xbfc   :  { %2983 = vrcp.f32 %v1368_v57  ;;  %v3783_v57 = vld [vmem:[#allocation8 + $0x18] sm:$0xff]  }
 0xbfd   :  { %2985 = vpow2.f32 %v2396_v24 }
 0xbfe   :  { %2987 = vpow2.f32 %v2402_v6 }
 0xc08   :  { %v3699_v58 = vpop.eup %2981 }
 0xc09   :  { %v2984_v61 = vpop.eup %2983 }
 0xc0a   :  { %v2986_v13 = vpop.eup %2985 }
 0xc0b   :  { %v1172_v39 = vadd.f32 1.0, %v2986_v13  ;;  %v2988_v14 = vpop.eup %2987 }
 0xc0c   :  { %v1306_v15 = vadd.f32 1.0, %v2988_v14 }
 0xc0d   :  { %2989 = vrcp.f32 %v1172_v39 }
 0xc0e   :  { %2991 = vrcp.f32 %v1306_v15 }
 0xc1a   :  { %v2990_v37 = vpop.eup %2989 }
 0xc1b   :  { %v1175_v2 = vsub.f32 %v3634_v46, %v2990_v37  ;;  %v1176_v3 = vmul.f32 %v2990_v37, %v3628_v60  ;;  %v2992_v4 = vpop.eup %2991 }
 0xc1c   :  { %v1309_v34 = vsub.f32 %v3639_v17, %v2992_v4  ;;  %v3730_v17 = vld [vmem:[#allocation5] sm:$0xff]  }
 0xc1d   :  { %v1177_v18 = vadd.f32 %v1176_v3, %v1175_v2 }
 0xc1f   :  { %v1238_v5 = vmul.f32 %v3699_v58, %v1177_v18 }
 0xc66   :  { %v1241_v59 = vpop.permute.xlu1 %1240 }
 0xc67   :  { %v1243_v55 = vmul.f32 %v3699_v58, %v1241_v59  ;;  %v3794_v59 = vld [vmem:[#allocation8 + $0x8] sm:$0xff]  }
 0xc69   :  { %1245 = vrot.lane.b32.xlu0 %v1243_v55, %s3235_s28  ;;  %v3798_v55 = vld [vmem:[#allocation8] sm:$0xff]  }
 0xc6a   :  { %v1375_v53 = vpop.permute.xlu0 %1374 }
 0xc6b   :  { %v1377_v62 = vmul.f32 %v2984_v61, %v1375_v53 }
 0xc6d   :  { %1379 = vrot.lane.b32.xlu1 %v1377_v62, %s3235_s28 }
 0xc73   :  { %v3708_v28 = vpop.permute.xlu1 %1312 }
 0xc74   :  { %v1315_v42 = vmul.f32 %v2992_v4, %v3708_v28 }
 0xc76   :  { %v1316_v19 = vadd.f32 %v1315_v42, %v1309_v34 }
 0xc78   :  { %v1372_v46 = vmul.f32 %v2984_v61, %v1316_v19 }
 0xcdb   :  { %v1246_v21 = vpop.permute.xlu0 %1245 }
 0xcdc   :  { %v3715_v22 = vadd.f32 %v1246_v21, %v1238_v5 }
 0xcde   :  { %2993 = vtanh.f32 %v3715_v22  ;;  %v1389_v23 = vpack.c.bf16 %v3715_v22, %v3715_v22 }
 0xcdf   :  { %v1380_v26 = vpop.permute.xlu1 %1379 }
 0xce0   :  { %v3720_v60 = vadd.f32 %v1380_v26, %v1372_v46  ;;  %2734 = vmatmul.mubr.msk.bf16.vlgmr.msra.gmra.mxu0 %vm157_vm3, %v1389_v23 }
 0xce1   :  { %2750 = vmatpush3.bf16.msra.mxu0 %v3723_v7  ;;  %2753 = vmatprep.mubr.msk.bf16.mxu0 %vm3233_vm0, %v3232_v0 }
 0xce2   :  { %2995 = vtanh.f32 %v3720_v60  ;;  %2751 = vmatprep.subr.bf16.mxu0 %v3232_v0  ;;  %v1523_v27 = vpack.c.bf16 %v3720_v60, %v3720_v60 }
 0xce5   :  { %2752 = vmatpush3.bf16.msra.mxu0 %v3730_v17 }
 0xce6   :  { %2757 = vmatprep.subr.bf16.mxu0 %v3232_v0 }
 0xce8   :  { %2754 = vmatmul.mubr.msk.bf16.vlgmr.msra.gmra.mxu0 %vm157_vm3, %v1523_v27 }
 0xce9   :  { %2758 = vmatpush3.bf16.msra.mxu0 %v3737_v29  ;;  %2763 = vmatprep.mubr.msk.bf16.mxu0 %vm3233_vm0, %v3232_v0 }
 0xcea   :  { %2759 = vmatprep.subr.bf16.mxu0 %v3232_v0 }
 0xceb   :  { %v2994_v20 = vpop.eup %2993 }
 0xcec   :  { %1251 = vrot.lane.b32.xlu0 %v2994_v20, %s3228_s22 }
 0xced   :  { %2760 = vmatpush3.bf16.msra.mxu0 %v3744_v30 }
 0xcee   :  { %2761 = vmatprep.subr.bf16.mxu0 %v3232_v0 }
 0xcef   :  { %v2996_v31 = vpop.eup %2995 }
 0xcf0   :  { %1385 = vrot.lane.b32.xlu1 %v2996_v31, %s3228_s22 }
 0xcf1   :  { %2762 = vmatpush3.bf16.msra.mxu0 %v3749_v25 }
 0xcf2   :  { %2775 = vmatprep.subr.bf16.mxu0 %v3232_v0 }
 0xd5e   :  { %v1252_v32 = vpop.permute.xlu0 %1251 }
 0xd5f   :  { %v1254_v33 = vmul.f32 %v3699_v58, %v1252_v32  ;;  %v3790_v58 = vld [vmem:[#allocation8 + $0x10] sm:$0xff]   ;;  %v3818_v32 = vld [vmem:[#allocation7] ss:$0 sm:$0xff] }
 0xd61   :  { %1447 = vrot.lane.b32.xlu1 %v1254_v33, %s3235_s28 }
 0xd62   :  { %v1386_v35 = vpop.permute.xlu1 %1385 }
 0xd63   :  { %v1388_v36 = vmul.f32 %v2984_v61, %v1386_v35 }
 0xd65   :  { %1443 = vrot.lane.b32.xlu0 %v1388_v36, %s3228_s22 }
 0xd69   :  { %1581 = vrot.lane.b32.xlu0 %v1388_v36, %s3236_s29 }
 0xda0   :  { %v3757_v10 = vpop.f32.mrf.mxu0 }
 0xda1   :  { %v1428_v20 = vadd.f32 %v3469_v40, %v3757_v10 }
 0xda2   :  { %v2735_v11 = vpop.f32.mrf.mxu0 }
 0xda3   :  { %v2406_v31 = vmul.f32 -1.442695, %v1428_v20 }
 0xda4   :  { %v1430_v49 = vpop.f32.mrf.mxu0 }
 0xda6   :  { %v2736_v38 = vpop.f32.mrf.mxu0 }
 0xda8   :  { %v3759_v41 = vpop.f32.mrf.mxu0 }
 0xda9   :  { %v1562_v33 = vadd.f32 %v3818_v32, %v3759_v41 }
 0xdaa   :  { %v2755_v9 = vpop.f32.mrf.mxu0 }
 0xdab   :  { %v2412_v35 = vmul.f32 -1.442695, %v1562_v33 }
 0xdac   :  { %v1564_v50 = vpop.f32.mrf.mxu0 }
 0xdae   :  { %v2756_v54 = vpop.f32.mrf.mxu0 }
 0xdd3   :  { %v1448_v12 = vpop.permute.xlu1 %1447 }
 0xdd7   :  { %v1444_v51 = vpop.permute.xlu0 %1443 }
 0xdd8   :  { %v1450_v43 = vsel %vm157_vm3, %v1444_v51, %v1448_v12 }
 0xdd9   :  { %v1451_v52 = vpack.c.bf16 %v1450_v43, %v1450_v43 }
 0xddb   :  { %v1582_v45 = vpop.permute.xlu0 %1581  ;;  %2746 = vmatmul.mubr.msk.bf16.vlgmr.msra.gmra.mxu1 %vm395_vm4, %v1451_v52 }
 0xddc   :  { %v1584_v47 = vsel %vm215_vm1, %v2409_v44, %v1582_v45  ;;  %2768 = vmatpush3.bf16.msra.mxu1 %v3770_v16  ;;  %2771 = vmatprep.mubr.msk.bf16.mxu1 %vm3233_vm0, %v3232_v0 }
 0xddd   :  { %v1585_v48 = vpack.c.bf16 %v1584_v47, %v1584_v47  ;;  %2769 = vmatprep.subr.bf16.mxu1 %v3232_v0 }
 0xddf   :  { %2764 = vmatmul.mubr.msk.bf16.vlgmr.msra.gmra.mxu0 %vm236_vm2, %v1585_v48 }
 0xde0   :  { %2770 = vmatpush3.bf16.msra.mxu1 %v3780_v56  ;;  %2776 = vmatpush3.bf16.msra.mxu0 %v3783_v57 }
 0xde1   :  { %2787 = vmatprep.subr.bf16.mxu1 %v3232_v0  ;;  %2777 = vmatprep.subr.bf16.mxu0 %v3232_v0 }
 0xde2   :  { %2783 = vmatprep.mubr.msk.bf16.mxu0 %vm3233_vm0, %v3232_v0 }
 0xde4   :  { %2778 = vmatpush3.bf16.msra.mxu0 %v3790_v58 }
 0xde5   :  { %2779 = vmatprep.subr.bf16.mxu0 %v3232_v0 }
 0xde8   :  { %2780 = vmatpush3.bf16.msra.mxu0 %v3794_v59 }
 0xde9   :  { %2781 = vmatprep.subr.bf16.mxu0 %v3232_v0 }
 0xdec   :  { %2782 = vmatpush3.bf16.msra.mxu0 %v3798_v55 }
 0xded   :  { %2805 = vmatprep.subr.bf16.mxu0 %v3232_v0 }
 0xe9b   :  { %v1489_v61 = vpop.f32.mrf.mxu1 }
 0xe9c   :  { %v1490_v53 = vadd.f32 %v3455_v8, %v1489_v61  ;;  %v2410_v8 = vld [vmem:[%s4009_s1 + $0x28] sm:$0xff] }
 0xe9d   :  { %v2747_v62 = vpop.f32.mrf.mxu1 }
 0xe9e   :  { %2997 = vtanh.f32 %v1490_v53  ;;  %v2408_v3 = vmul.f32 -1.442695, %v1490_v53 }
 0xe9f   :  { %v1492_v63 = vpop.f32.mrf.mxu1  ;;  %v1623_v24 = vpop.f32.mrf.mxu0 }
 0xea0   :  { %v1624_v6 = vadd.f32 %v3806_v1, %v1623_v24 }
 0xea1   :  { %v2748_v13 = vpop.f32.mrf.mxu1  ;;  %v2765_v39 = vpop.f32.mrf.mxu0 }
 0xea2   :  { %2999 = vtanh.f32 %v1624_v6  ;;  %v2414_v4 = vmul.f32 -1.442695, %v1624_v6 }
 0xea3   :  { %v1626_v14 = vpop.f32.mrf.mxu0  ;;  %3001 = vpow2.f32 %v2408_v3 }
 0xea4   :  { %3003 = vpow2.f32 %v2414_v4 }
 0xea5   :  { %v2766_v15 = vpop.f32.mrf.mxu0 }
 0xeab   :  { %v2998_v37 = vpop.eup %2997 }
 0xeac   :  { %1504 = vrot.lane.b32.xlu1 %v2998_v37, %s3228_s22 }
 0xeaf   :  { %v3000_v2 = vpop.eup %2999 }
 0xeb0   :  { %1638 = vrot.lane.b32.xlu0 %v3000_v2, %s3228_s22  ;;  %1576 = vperm.xlu1 %2877, %v2410_v8   ;;  %v3002_v42 = vpop.eup %3001 }
 0xeb1   :  { %v1498_v34 = vadd.f32 1.0, %v3002_v42  ;;  %v3004_v18 = vpop.eup %3003 }
 0xeb2   :  { %v1632_v19 = vadd.f32 1.0, %v3004_v18 }
 0xeb3   :  { %3005 = vrcp.f32 %v1498_v34 }
 0xeb4   :  { %3007 = vrcp.f32 %v1632_v19  ;;  %v2419_v19 = vld [vmem:[%s4008_s0 + $0x30] sm:$0xff] }
 0xeb5   :  { %3009 = vpow2.f32 %v2406_v31 }
 0xeb6   :  { %3011 = vpow2.f32 %v2412_v35 }
 0xec0   :  { %v3006_v5 = vpop.eup %3005 }
 0xec1   :  { %v3008_v46 = vpop.eup %3007 }
 0xec2   :  { %v3010_v36 = vpop.eup %3009 }
 0xec3   :  { %v1436_v11 = vadd.f32 1.0, %v3010_v36  ;;  %v3012_v49 = vpop.eup %3011 }
 0xec4   :  { %v1570_v38 = vadd.f32 1.0, %v3012_v49 }
 0xec5   :  { %3013 = vrcp.f32 %v1436_v11 }
 0xec6   :  { %3015 = vrcp.f32 %v1570_v38 }
 0xed2   :  { %v3014_v9 = vpop.eup %3013 }
 0xed3   :  { %v1439_v40 = vsub.f32 %v3715_v22, %v3014_v9  ;;  %v1440_v10 = vmul.f32 %v3014_v9, %v3708_v28  ;;  %v3016_v54 = vpop.eup %3015 }
 0xed4   :  { %v1573_v41 = vsub.f32 %v3720_v60, %v3016_v54 }
 0xed5   :  { %v1441_v51 = vadd.f32 %v1440_v10, %v1439_v40  ;;  %v2420_v40 = vld [vmem:[%s4009_s1 + $0x30] sm:$0xff] }
 0xed7   :  { %v1502_v52 = vmul.f32 %v3006_v5, %v1441_v51 }
 0xf1e   :  { %v1505_v21 = vpop.permute.xlu1 %1504 }
 0xf1f   :  { %v1507_v23 = vmul.f32 %v3006_v5, %v1505_v21 }
 0xf21   :  { %1509 = vrot.lane.b32.xlu0 %v1507_v23, %s3235_s28 }
 0xf22   :  { %v1639_v26 = vpop.permute.xlu0 %1638 }
 0xf23   :  { %v1641_v27 = vmul.f32 %v3008_v46, %v1639_v26  ;;  %v3889_v26 = vld [vmem:[%s4015_s7] ss:$0 sm:$0xff] }
 0xf25   :  { %1643 = vrot.lane.b32.xlu1 %v1641_v27, %s3235_s28 }
 0xf2b   :  { %v3822_v50 = vpop.permute.xlu1 %1576 }
 0xf2c   :  { %v1579_v12 = vmul.f32 %v3016_v54, %v3822_v50 }
 0xf2e   :  { %v1580_v43 = vadd.f32 %v1579_v12, %v1573_v41 }
 0xf30   :  { %v1636_v48 = vmul.f32 %v3008_v46, %v1580_v43 }
 0xf93   :  { %v1510_v44 = vpop.permute.xlu0 %1509 }
 0xf94   :  { %v3828_v45 = vadd.f32 %v1510_v44, %v1502_v52 }
 0xf96   :  { %3017 = vtanh.f32 %v3828_v45  ;;  %v1653_v47 = vpack.c.bf16 %v3828_v45, %v3828_v45 }
 0xf97   :  { %v1644_v22 = vpop.permute.xlu1 %1643 }
 0xf98   :  { %v3833_v61 = vadd.f32 %v1644_v22, %v1636_v48  ;;  %2772 = vmatmul.mubr.msk.bf16.vlgmr.msra.gmra.mxu1 %vm157_vm3, %v1653_v47 }
 0xf99   :  { %2788 = vmatpush3.bf16.msra.mxu1 %v3723_v7  ;;  %2791 = vmatprep.mubr.msk.bf16.mxu1 %vm3233_vm0, %v3232_v0 }
 0xf9a   :  { %3019 = vtanh.f32 %v3833_v61  ;;  %2789 = vmatprep.subr.bf16.mxu1 %v3232_v0  ;;  %v1787_v28 = vpack.c.bf16 %v3833_v61, %v3833_v61 }
 0xf9d   :  { %2790 = vmatpush3.bf16.msra.mxu1 %v3730_v17 }
 0xf9e   :  { %2795 = vmatprep.subr.bf16.mxu1 %v3232_v0 }
 0xfa0   :  { %2792 = vmatmul.mubr.msk.bf16.vlgmr.msra.gmra.mxu1 %vm157_vm3, %v1787_v28 }
 0xfa1   :  { %2796 = vmatpush3.bf16.msra.mxu1 %v3737_v29  ;;  %2801 = vmatprep.mubr.msk.bf16.mxu1 %vm3233_vm0, %v3232_v0 }
 0xfa2   :  { %2797 = vmatprep.subr.bf16.mxu1 %v3232_v0 }
 0xfa3   :  { %v3018_v60 = vpop.eup %3017 }
 0xfa4   :  { %1515 = vrot.lane.b32.xlu0 %v3018_v60, %s3228_s22 }
 0xfa5   :  { %2798 = vmatpush3.bf16.msra.mxu1 %v3744_v30 }
 0xfa6   :  { %2799 = vmatprep.subr.bf16.mxu1 %v3232_v0 }
 0xfa7   :  { %v3020_v53 = vpop.eup %3019 }
 0xfa8   :  { %1649 = vrot.lane.b32.xlu1 %v3020_v53, %s3228_s22  ;;  %v3903_v53 = vld [vmem:[%s4017_s9] ss:$0 sm:$0xff] }
 0xfa9   :  { %2800 = vmatpush3.bf16.msra.mxu1 %v3749_v25 }
 0xfaa   :  { %2813 = vmatprep.subr.bf16.mxu1 %v3232_v0 }
0x1016   :  { %v1516_v62 = vpop.permute.xlu0 %1515 }
0x1017   :  { %v1518_v63 = vmul.f32 %v3006_v5, %v1516_v62 }
0x1019   :  { %1711 = vrot.lane.b32.xlu1 %v1518_v63, %s3235_s28 }
0x101a   :  { %v1650_v24 = vpop.permute.xlu1 %1649 }
0x101b   :  { %v1652_v6 = vmul.f32 %v3008_v46, %v1650_v24 }
0x101d   :  { %1707 = vrot.lane.b32.xlu0 %v1652_v6, %s3228_s22 }
0x1021   :  { %1845 = vrot.lane.b32.xlu0 %v1652_v6, %s3236_s29 }
0x1058   :  { %v3859_v13 = vpop.f32.mrf.mxu1 }
0x1059   :  { %v1692_v62 = vadd.f32 %v3903_v53, %v3859_v13 }
0x105a   :  { %v2773_v39 = vpop.f32.mrf.mxu1 }
0x105b   :  { %v2416_v63 = vmul.f32 -1.442695, %v1692_v62 }
0x105c   :  { %v1694_v14 = vpop.f32.mrf.mxu1 }
0x105e   :  { %v2774_v15 = vpop.f32.mrf.mxu1 }
0x1060   :  { %v3861_v37 = vpop.f32.mrf.mxu1 }
0x1061   :  { %v1826_v24 = vadd.f32 %v3818_v32, %v3861_v37 }
0x1062   :  { %v2793_v8 = vpop.f32.mrf.mxu1 }
0x1063   :  { %v2422_v6 = vmul.f32 -1.442695, %v1826_v24 }
0x1064   :  { %v1828_v2 = vpop.f32.mrf.mxu1 }
0x1066   :  { %v2794_v3 = vpop.f32.mrf.mxu1 }
0x108b   :  { %v1712_v4 = vpop.permute.xlu1 %1711 }
0x108f   :  { %v1708_v42 = vpop.permute.xlu0 %1707 }
0x1090   :  { %v1714_v34 = vsel %vm157_vm3, %v1708_v42, %v1712_v4 }
0x1091   :  { %v1715_v18 = vpack.c.bf16 %v1714_v34, %v1714_v34 }
0x1093   :  { %2784 = vmatmul.mubr.msk.bf16.vlgmr.msra.gmra.mxu0 %vm395_vm4, %v1715_v18  ;;  %v1846_v5 = vpop.permute.xlu0 %1845 }
0x1094   :  { %v1848_v21 = vsel %vm215_vm1, %v2419_v19, %v1846_v5  ;;  %2806 = vmatpush3.bf16.msra.mxu0 %v3770_v16  ;;  %2809 = vmatprep.mubr.msk.bf16.mxu0 %vm3233_vm0, %v3232_v0 }
0x1095   :  { %v1849_v23 = vpack.c.bf16 %v1848_v21, %v1848_v21  ;;  %2807 = vmatprep.subr.bf16.mxu0 %v3232_v0 }
0x1097   :  { %2802 = vmatmul.mubr.msk.bf16.vlgmr.msra.gmra.mxu1 %vm236_vm2, %v1849_v23 }
0x1098   :  { %2808 = vmatpush3.bf16.msra.mxu0 %v3780_v56  ;;  %2814 = vmatpush3.bf16.msra.mxu1 %v3783_v57 }
0x1099   :  { %2825 = vmatprep.subr.bf16.mxu0 %v3232_v0  ;;  %2815 = vmatprep.subr.bf16.mxu1 %v3232_v0 }
0x109a   :  { %2821 = vmatprep.mubr.msk.bf16.mxu1 %vm3233_vm0, %v3232_v0 }
0x109c   :  { %2816 = vmatpush3.bf16.msra.mxu1 %v3790_v58 }
0x109d   :  { %2817 = vmatprep.subr.bf16.mxu1 %v3232_v0 }
0x10a0   :  { %2818 = vmatpush3.bf16.msra.mxu1 %v3794_v59 }
0x10a1   :  { %2819 = vmatprep.subr.bf16.mxu1 %v3232_v0 }
0x10a4   :  { %2820 = vmatpush3.bf16.msra.mxu1 %v3798_v55 }
0x10a5   :  { %2843 = vmatprep.subr.bf16.mxu1 %v3232_v0 }
0x1153   :  { %v1753_v46 = vpop.f32.mrf.mxu0 }
0x1154   :  { %v1754_v27 = vadd.f32 %v3889_v26, %v1753_v46 }
0x1155   :  { %v2785_v20 = vpop.f32.mrf.mxu0 }
0x1156   :  { %3021 = vtanh.f32 %v1754_v27  ;;  %v2418_v54 = vmul.f32 -1.442695, %v1754_v27 }
0x1157   :  { %v1756_v31 = vpop.f32.mrf.mxu0  ;;  %v1887_v33 = vpop.f32.mrf.mxu1 }
0x1158   :  { %v1888_v35 = vadd.f32 %v3806_v1, %v1887_v33 }
0x1159   :  { %v2786_v36 = vpop.f32.mrf.mxu0  ;;  %v2803_v11 = vpop.f32.mrf.mxu1 }
0x115a   :  { %3023 = vtanh.f32 %v1888_v35  ;;  %v2424_v12 = vmul.f32 -1.442695, %v1888_v35 }
0x115b   :  { %v1890_v49 = vpop.f32.mrf.mxu1  ;;  %3025 = vpow2.f32 %v2418_v54 }
0x115c   :  { %3027 = vpow2.f32 %v2424_v12 }
0x115d   :  { %v2804_v38 = vpop.f32.mrf.mxu1 }
0x1163   :  { %v3022_v9 = vpop.eup %3021 }
0x1164   :  { %1768 = vrot.lane.b32.xlu1 %v3022_v9, %s3228_s22 }
0x1167   :  { %v3024_v10 = vpop.eup %3023 }
0x1168   :  { %1840 = vperm.xlu1 %2877, %v2420_v40   ;;  %1902 = vrot.lane.b32.xlu0 %v3024_v10, %s3228_s22  ;;  %v3026_v41 = vpop.eup %3025 }
0x1169   :  { %v1762_v51 = vadd.f32 1.0, %v3026_v41  ;;  %v3028_v43 = vpop.eup %3027  ;;  %v2429_v41 = vld [vmem:[%s4008_s0 + $0x38] sm:$0xff] }
0x116a   :  { %v1896_v52 = vadd.f32 1.0, %v3028_v43 }
0x116b   :  { %3029 = vrcp.f32 %v1762_v51 }
0x116c   :  { %3031 = vrcp.f32 %v1896_v52 }
0x116d   :  { %3033 = vpow2.f32 %v2416_v63 }
0x116e   :  { %3035 = vpow2.f32 %v2422_v6 }
0x1178   :  { %v3030_v44 = vpop.eup %3029 }
0x1179   :  { %v3032_v22 = vpop.eup %3031 }
0x117a   :  { %v3034_v39 = vpop.eup %3033 }
0x117b   :  { %v1700_v14 = vadd.f32 1.0, %v3034_v39  ;;  %v3036_v15 = vpop.eup %3035 }
0x117c   :  { %v1834_v8 = vadd.f32 1.0, %v3036_v15 }
0x117d   :  { %3037 = vrcp.f32 %v1700_v14 }
0x117e   :  { %3039 = vrcp.f32 %v1834_v8 }
0x118a   :  { %v3038_v2 = vpop.eup %3037 }
0x118b   :  { %v1703_v4 = vsub.f32 %v3828_v45, %v3038_v2  ;;  %v1704_v13 = vmul.f32 %v3038_v2, %v3822_v50  ;;  %v3040_v42 = vpop.eup %3039 }
0x118c   :  { %v1837_v37 = vsub.f32 %v3833_v61, %v3040_v42 }
0x118d   :  { %v1705_v18 = vadd.f32 %v1704_v13, %v1703_v4 }
0x118f   :  { %v1766_v5 = vmul.f32 %v3030_v44, %v1705_v18 }
0x11d6   :  { %v1769_v47 = vpop.permute.xlu1 %1768 }
0x11d7   :  { %v1771_v48 = vmul.f32 %v3030_v44, %v1769_v47 }
0x11d9   :  { %1773 = vrot.lane.b32.xlu0 %v1771_v48, %s3235_s28 }
0x11da   :  { %v1903_v28 = vpop.permute.xlu0 %1902 }
0x11db   :  { %v1905_v60 = vmul.f32 %v3032_v22, %v1903_v28 }
0x11dd   :  { %1907 = vrot.lane.b32.xlu1 %v1905_v60, %s3235_s28 }
0x11e3   :  { %v3909_v3 = vpop.permute.xlu1 %1840 }
0x11e4   :  { %v1843_v34 = vmul.f32 %v3040_v42, %v3909_v3 }
0x11e6   :  { %v1844_v19 = vadd.f32 %v1843_v34, %v1837_v37 }
0x11e8   :  { %v1900_v27 = vmul.f32 %v3032_v22, %v1844_v19 }
0x124b   :  { %v1774_v21 = vpop.permute.xlu0 %1773 }
0x124c   :  { %v3915_v23 = vadd.f32 %v1774_v21, %v1766_v5 }
0x124e   :  { %3041 = vtanh.f32 %v3915_v23  ;;  %v1917_v46 = vpack.c.bf16 %v3915_v23, %v3915_v23 }
0x124f   :  { %v1908_v45 = vpop.permute.xlu1 %1907 }
0x1250   :  { %v3920_v20 = vadd.f32 %v1908_v45, %v1900_v27  ;;  %2810 = vmatmul.mubr.msk.bf16.vlgmr.msra.gmra.mxu0 %vm157_vm3, %v1917_v46 }
0x1251   :  { %2826 = vmatpush3.bf16.msra.mxu0 %v3723_v7  ;;  %2829 = vmatprep.mubr.msk.bf16.mxu0 %vm3233_vm0, %v3232_v0 }
0x1252   :  { %3043 = vtanh.f32 %v3920_v20  ;;  %2827 = vmatprep.subr.bf16.mxu0 %v3232_v0  ;;  %v2051_v50 = vpack.c.bf16 %v3920_v20, %v3920_v20 }
0x1255   :  { %2828 = vmatpush3.bf16.msra.mxu0 %v3730_v17 }
0x1256   :  { %2833 = vmatprep.subr.bf16.mxu0 %v3232_v0 }
0x1258   :  { %2830 = vmatmul.mubr.msk.bf16.vlgmr.msra.gmra.mxu0 %vm157_vm3, %v2051_v50 }
0x1259   :  { %2834 = vmatpush3.bf16.msra.mxu0 %v3737_v29  ;;  %2839 = vmatprep.mubr.msk.bf16.mxu0 %vm3233_vm0, %v3232_v0 }
0x125a   :  { %2835 = vmatprep.subr.bf16.mxu0 %v3232_v0 }
0x125b   :  { %v3042_v7 = vpop.eup %3041 }
0x125c   :  { %1779 = vrot.lane.b32.xlu0 %v3042_v7, %s3228_s22 }
0x125d   :  { %2836 = vmatpush3.bf16.msra.mxu0 %v3744_v30 }
0x125e   :  { %2837 = vmatprep.subr.bf16.mxu0 %v3232_v0 }
0x125f   :  { %v3044_v17 = vpop.eup %3043 }
0x1260   :  { %1913 = vrot.lane.b32.xlu1 %v3044_v17, %s3228_s22 }
0x1261   :  { %2838 = vmatpush3.bf16.msra.mxu0 %v3749_v25 }
0x1262   :  { %2851 = vmatprep.subr.bf16.mxu0 %v3232_v0 }
0x12ce   :  { %v1780_v29 = vpop.permute.xlu0 %1779 }
0x12cf   :  { %v1782_v61 = vmul.f32 %v3030_v44, %v1780_v29 }
0x12d1   :  { %1975 = vrot.lane.b32.xlu1 %v1782_v61, %s3235_s28 }
0x12d2   :  { %v1914_v31 = vpop.permute.xlu1 %1913 }
0x12d3   :  { %v1916_v33 = vmul.f32 %v3032_v22, %v1914_v31 }
0x12d5   :  { %1971 = vrot.lane.b32.xlu0 %v1916_v33, %s3228_s22 }
0x12d9   :  { %2109 = vrot.lane.b32.xlu0 %v1916_v33, %s3236_s29 }
0x1310   :  { %v3946_v30 = vpop.f32.mrf.mxu0 }
0x1311   :  { %v1956_v42 = vadd.f32 %v3903_v53, %v3946_v30 }
0x1312   :  { %v2811_v35 = vpop.f32.mrf.mxu0 }
0x1313   :  { %v2426_v34 = vmul.f32 -1.442695, %v1956_v42 }
0x1314   :  { %v1958_v36 = vpop.f32.mrf.mxu0 }
0x1316   :  { %v2812_v11 = vpop.f32.mrf.mxu0 }
0x1318   :  { %v3948_v49 = vpop.f32.mrf.mxu0 }
0x1319   :  { %v2090_v37 = vadd.f32 %v3818_v32, %v3948_v49 }
0x131a   :  { %v2831_v25 = vpop.f32.mrf.mxu0 }
0x131b   :  { %v2432_v18 = vmul.f32 -1.442695, %v2090_v37 }
0x131c   :  { %v2092_v38 = vpop.f32.mrf.mxu0 }
0x131e   :  { %v2832_v9 = vpop.f32.mrf.mxu0 }
0x1343   :  { %v1976_v40 = vpop.permute.xlu1 %1975 }
0x1347   :  { %v1972_v10 = vpop.permute.xlu0 %1971 }
0x1348   :  { %v1978_v54 = vsel %vm157_vm3, %v1972_v10, %v1976_v40 }
0x1349   :  { %v1979_v12 = vpack.c.bf16 %v1978_v54, %v1978_v54 }
0x134b   :  { %v2110_v51 = vpop.permute.xlu0 %2109  ;;  %2822 = vmatmul.mubr.msk.bf16.vlgmr.msra.gmra.mxu1 %vm395_vm4, %v1979_v12 }
0x134c   :  { %v2112_v43 = vsel %vm215_vm1, %v2429_v41, %v2110_v51  ;;  %2844 = vmatpush3.bf16.msra.mxu1 %v3770_v16  ;;  %2847 = vmatprep.mubr.msk.bf16.mxu1 %vm3233_vm0, %v3232_v0 }
0x134d   :  { %v2113_v52 = vpack.c.bf16 %v2112_v43, %v2112_v43  ;;  %2845 = vmatprep.subr.bf16.mxu1 %v3232_v0 }
0x134f   :  { %2840 = vmatmul.mubr.msk.bf16.vlgmr.msra.gmra.mxu0 %vm236_vm2, %v2113_v52 }
0x1350   :  { %2846 = vmatpush3.bf16.msra.mxu1 %v3780_v56  ;;  %2852 = vmatpush3.bf16.msra.mxu0 %v3783_v57 }
0x1351   :  { %2853 = vmatprep.subr.bf16.mxu0 %v3232_v0  ;;  %2859 = vmatprep.mubr.msk.bf16.mxu0 %vm3233_vm0, %v3232_v0 }
0x1354   :  { %2854 = vmatpush3.bf16.msra.mxu0 %v3790_v58 }
0x1355   :  { %2855 = vmatprep.subr.bf16.mxu0 %v3232_v0 }
0x1358   :  { %2856 = vmatpush3.bf16.msra.mxu0 %v3794_v59 }
0x1359   :  { %2857 = vmatprep.subr.bf16.mxu0 %v3232_v0  ;;  %v2430_v0 = vld [vmem:[%s4009_s1 + $0x38] sm:$0xff]  ;;  %s3237_s1 = smov [#allocation11]  }
0x135c   :  { %2858 = vmatpush3.bf16.msra.mxu0 %v3798_v55 }
0x140b   :  { %v2017_v16 = vpop.f32.mrf.mxu1 }
0x140c   :  { %v2018_v56 = vadd.f32 %v3889_v26, %v2017_v16 }
0x140d   :  { %v2823_v44 = vpop.f32.mrf.mxu1 }
0x140e   :  { %3045 = vtanh.f32 %v2018_v56  ;;  %v2428_v55 = vmul.f32 -1.442695, %v2018_v56 }
0x140f   :  { %v2020_v57 = vpop.f32.mrf.mxu1  ;;  %v2151_v47 = vpop.f32.mrf.mxu0 }
0x1410   :  { %v2152_v48 = vadd.f32 %v3806_v1, %v2151_v47 }
0x1411   :  { %v2824_v22 = vpop.f32.mrf.mxu1  ;;  %v2841_v28 = vpop.f32.mrf.mxu0 }
0x1412   :  { %3047 = vtanh.f32 %v2152_v48  ;;  %v2434_v63 = vmul.f32 -1.442695, %v2152_v48 }
0x1413   :  { %v2154_v58 = vpop.f32.mrf.mxu0  ;;  %3049 = vpow2.f32 %v2428_v55 }
0x1414   :  { %3051 = vpow2.f32 %v2434_v63 }
0x1415   :  { %v2842_v60 = vpop.f32.mrf.mxu0 }
0x141b   :  { %v3046_v62 = vpop.eup %3045 }
0x141c   :  { %2032 = vrot.lane.b32.xlu1 %v3046_v62, %s3228_s22 }
0x141f   :  { %v3048_v59 = vpop.eup %3047 }
0x1420   :  { %2166 = vrot.lane.b32.xlu0 %v3048_v59, %s3228_s22  ;;  %2104 = vperm.xlu1 %2877, %v2430_v0   ;;  %v3050_v1 = vpop.eup %3049 }
0x1421   :  { %v2026_v24 = vadd.f32 1.0, %v3050_v1  ;;  %v3052_v6 = vpop.eup %3051 }
0x1422   :  { %v2160_v39 = vadd.f32 1.0, %v3052_v6 }
0x1423   :  { %3053 = vrcp.f32 %v2026_v24 }
0x1424   :  { %3055 = vrcp.f32 %v2160_v39 }
0x1425   :  { %3057 = vpow2.f32 %v2426_v34 }
0x1426   :  { %3059 = vpow2.f32 %v2432_v18 }
0x1430   :  { %v3054_v14 = vpop.eup %3053 }
0x1431   :  { %v3056_v2 = vpop.eup %3055 }
0x1432   :  { %v3058_v19 = vpop.eup %3057 }
0x1433   :  { %v1964_v5 = vadd.f32 1.0, %v3058_v19  ;;  %v3060_v21 = vpop.eup %3059 }
0x1434   :  { %v2098_v46 = vadd.f32 1.0, %v3060_v21 }
0x1435   :  { %3061 = vrcp.f32 %v1964_v5 }
0x1436   :  { %3063 = vrcp.f32 %v2098_v46 }
0x1442   :  { %v3062_v27 = vpop.eup %3061 }
0x1443   :  { %v1967_v50 = vsub.f32 %v3915_v23, %v3062_v27  ;;  %v1968_v7 = vmul.f32 %v3062_v27, %v3909_v3  ;;  %v3064_v17 = vpop.eup %3063 }
0x1444   :  { %v2101_v61 = vsub.f32 %v3920_v20, %v3064_v17 }
0x1445   :  { %v1969_v32 = vadd.f32 %v1968_v7, %v1967_v50 }
0x1447   :  { %v2030_v33 = vmul.f32 %v3054_v14, %v1969_v32 }
0x148e   :  { %v2033_v15 = vpop.permute.xlu1 %2032 }
0x148f   :  { %v2035_v8 = vmul.f32 %v3054_v14, %v2033_v15 }
0x1491   :  { %2037 = vrot.lane.b32.xlu0 %v2035_v8, %s3235_s28 }
0x1492   :  { %v2167_v4 = vpop.permute.xlu0 %2166 }
0x1493   :  { %v2169_v13 = vmul.f32 %v3056_v2, %v2167_v4 }
0x1495   :  { %2171 = vrot.lane.b32.xlu1 %v2169_v13, %s3235_s28 }
0x149b   :  { %v2105_v45 = vpop.permute.xlu1 %2104 }
0x149c   :  { %v2107_v29 = vmul.f32 %v3064_v17, %v2105_v45 }
0x149e   :  { %v2108_v31 = vadd.f32 %v2107_v29, %v2101_v61 }
0x14a0   :  { %v2164_v11 = vmul.f32 %v3056_v2, %v2108_v31 }
0x1503   :  { %v2038_v30 = vpop.permute.xlu0 %2037 }
0x1504   :  { %v2040_v35 = vadd.f32 %v2038_v30, %v2030_v33 }
0x1506   :  { %3065 = vtanh.f32 %v2040_v35  ;;  %v2181_v36 = vpack.c.bf16 %v2040_v35, %v2040_v35 }
0x1507   :  { %v2172_v49 = vpop.permute.xlu1 %2171 }
0x1508   :  { %v2174_v25 = vadd.f32 %v2172_v49, %v2164_v11  ;;  %2848 = vmatmul.mubr.msk.bf16.vlgmr.msra.gmra.mxu1 %vm157_vm3, %v2181_v36 }
0x150a   :  { %3067 = vtanh.f32 %v2174_v25 }
0x1513   :  { %v3066_v23 = vpop.eup %3065 }
0x1514   :  { %2043 = vrot.lane.b32.xlu0 %v3066_v23, %s3228_s22 }
0x1517   :  { %v3068_v3 = vpop.eup %3067 }
0x1518   :  { %2177 = vrot.lane.b32.xlu1 %v3068_v3, %s3228_s22 }
0x1586   :  { %v2044_v20 = vpop.permute.xlu0 %2043 }
0x1587   :  { %v2046_v38 = vmul.f32 %v3054_v14, %v2044_v20 }
0x1589   :  { %2239 = vrot.lane.b32.xlu1 %v2046_v38, %s3235_s28 }
0x158a   :  { %v2178_v9 = vpop.permute.xlu1 %2177 }
0x158b   :  { %v2180_v40 = vmul.f32 %v3056_v2, %v2178_v9 }
0x158d   :  { %2235 = vrot.lane.b32.xlu0 %v2180_v40, %s3228_s22 }
0x15c8   :  { %v2219_v10 = vpop.f32.mrf.mxu1 }
0x15c9   :  { %v2220_v55 = vadd.f32 %v3903_v53, %v2219_v10 }
0x15ca   :  { %v2849_v54 = vpop.f32.mrf.mxu1 }
0x15cc   :  { %v2222_v12 = vpop.f32.mrf.mxu1 }
0x15ce   :  { %v2850_v41 = vpop.f32.mrf.mxu1 }
0x15fb   :  { %v2240_v51 = vpop.permute.xlu1 %2239 }
0x15ff   :  { %v2236_v43 = vpop.permute.xlu0 %2235 }
0x1600   :  { %v2242_v52 = vsel %vm157_vm3, %v2236_v43, %v2240_v51 }
0x1601   :  { %v2243_v16 = vpack.c.bf16 %v2242_v52, %v2242_v52 }
0x1603   :  { %2860 = vmatmul.mubr.msk.bf16.vlgmr.msra.gmra.mxu0 %vm395_vm4, %v2243_v16 }
0x16c3   :  { %v2281_v56 = vpop.f32.mrf.mxu0 }
0x16c4   :  { %v2282_v44 = vadd.f32 %v3889_v26, %v2281_v56  ;;  %v2436_v26 = vmul.f32 -1.442695, %v2220_v55 }
0x16c5   :  { %v2861_v57 = vpop.f32.mrf.mxu0 }
0x16c6   :  { %3069 = vtanh.f32 %v2282_v44  ;;  %v2438_v28 = vmul.f32 -1.442695, %v2282_v44 }
0x16c7   :  { %v2284_v47 = vpop.f32.mrf.mxu0 }
0x16c8   :  { %3071 = vpow2.f32 %v2438_v28 }
0x16c9   :  { %v2862_v48 = vpop.f32.mrf.mxu0 }
0x16d3   :  { %v3070_v22 = vpop.eup %3069 }
0x16d4   :  { %2296 = vrot.lane.b32.xlu0 %v3070_v22, %s3228_s22 }
0x16d5   :  { %v3072_v58 = vpop.eup %3071 }
0x16d6   :  { %v2290_v60 = vadd.f32 1.0, %v3072_v58 }
0x16d8   :  { %3073 = vrcp.f32 %v2290_v60 }
0x16d9   :  { %3075 = vpow2.f32 %v2436_v26 }
0x16e5   :  { %v3074_v62 = vpop.eup %3073 }
0x16e6   :  { %v3076_v63 = vpop.eup %3075 }
0x16e7   :  { %v2228_v1 = vadd.f32 1.0, %v3076_v63 }
0x16e9   :  { %3077 = vrcp.f32 %v2228_v1 }
0x16f6   :  { %v3078_v24 = vpop.eup %3077 }
0x16f7   :  { %v2231_v6 = vsub.f32 %v2040_v35, %v3078_v24  ;;  %v2232_v39 = vmul.f32 %v3078_v24, %v2105_v45 }
0x16f9   :  { %v2233_v14 = vadd.f32 %v2232_v39, %v2231_v6 }
0x16fb   :  { %v2294_v15 = vmul.f32 %v3074_v62, %v2233_v14 }
0x1746   :  { %v2297_v0 = vpop.permute.xlu0 %2296 }
0x1747   :  { %v2299_v59 = vmul.f32 %v3074_v62, %v2297_v0 }
0x1749   :  { %2301 = vrot.lane.b32.xlu1 %v2299_v59, %s3235_s28  ;;  %s2333_s28 = sshll.u32 %s3237_s1, 4  ;;  %s2334_s28 = int_to_ptr.vmem [resolvable:$true] %s2333_s28 }
0x174a   :  { %s3176_s24 = scalar_lea.vmem %s2334_s28, 128  ;;  %p3181_p7 = scmp.lt.s32.totalorder %s2334_s28, %s2334_s28 }
0x174b   :  { %p3177_p6 = scmp.ne.s32.totalorder %s2334_s28, %s3176_s24  ;;  %p3182_p8 = scmp.lt.s32.totalorder %s3176_s24, %s3176_s24 }
0x174d   :  { %p3183_p9 = por %p3182_p8, %p3181_p7 }
0x174f   :  { %p3184_p10 = pnand %p3183_p9, %p3177_p6 }
0x17bb   :  { %v2302_v8 = vpop.permute.xlu1 %2301 }
0x17bc   :  { %v2304_v2 = vadd.f32 %v2302_v8, %v2294_v15 }
0x17be   :  { %3079 = vtanh.f32 %v2304_v2  ;;  %2316 = vst.msk [vmem:[#allocation11] sm:$0xff] %vm157_vm3, %v2304_v2 }
0x17cb   :  { %v3080_v4 = vpop.eup %3079 }
0x17cc   :  { %2307 = vrot.lane.b32.xlu0 %v3080_v4, %s3228_s22 }
0x17cd   :  { %3187 = shalt.err (!%p3184_p10)
}
0x17ce   :  { %2336 = dma.vmem_to_hbm [thread:$0]  %s2334_s28, 128, %s4019_s11, [#allocation12]  }
0x17cf   :  { %s3238_s27 = smov [#allocation10]  }
0x17d0   :  { %s2323_s30 = sshll.u32 %s3238_s27, 4  ;;  %s2324_s30 = int_to_ptr.vmem [resolvable:$true] %s2323_s30 }
0x17d1   :  { %s3196_s12 = scalar_lea.vmem %s2324_s30, 128  ;;  %p3201_p12 = scmp.lt.s32.totalorder %s2324_s30, %s2324_s30 }
0x17d2   :  { %p3197_p11 = scmp.ne.s32.totalorder %s2324_s30, %s3196_s12  ;;  %p3202_p13 = scmp.lt.s32.totalorder %s3196_s12, %s3196_s12 }
0x17d4   :  { %p3203_p0 = por %p3202_p13, %p3201_p12 }
0x17d6   :  { %p3204_p1 = pnand %p3203_p0, %p3197_p11 }
0x183e   :  { %v2308_v53 = vpop.permute.xlu0 %2307 }
0x183f   :  { %v2310_v13 = vmul.f32 %v3074_v62, %v2308_v53 }
0x1841   :  { %2312 = vrot.lane.b32.xlu1 %v2310_v13, %s3228_s22 }
0x18b3   :  { %v2313_v42 = vpop.permute.xlu1 %2312 }
0x18b4   :  { %2315 = vst.msk [vmem:[#allocation10] sm:$0xff] %vm157_vm3, %v2313_v42 }
0x18b5   :  { %3207 = shalt.err (!%p3204_p1)
}
0x18b6   :  { %2326 = dma.vmem_to_hbm [thread:$0]  %s2324_s30, 128, %s4018_s10, [#allocation4]  }
0x18b7   :  { %3222 = dma.done.wait [#allocation4], 128  }
0x18b8   :  { %3223 = vsyncadd [#allocation4], 4294967168 }
0x18b9   :  { %3224 = dma.done.wait [#allocation12], 128  }
0x18ba   :  { %3225 = vsyncadd [#allocation12], 4294967168 }
0x18bb   :  { %2343 = vsyncpa [#allocation3], 1 }
0x18bc   :  { %2344 = vsyncpa [#allocation6], 1 }
0x18bd   :  { %2345 = vsyncpa [#allocation9], 1 }
0x18be   :  { %2346 = vsyncpa [#allocation4], 1 }
0x18bf   :  { %2347 = vsyncpa [#allocation12], 1 }

</bundles_post_ra>
